<compile_context>
chip_gen: v7x
topology: tpu7x:2x2x1
jax: 0.10.0
libtpu: 0.0.40
codegen_flags: <defaults>
</compile_context>

<pallas_src>
import functools

import jax
import jax.numpy as jnp
from jax import lax
from jax.experimental import pallas as pl
from jax.experimental.pallas import tpu as pltpu


LEAKY_SLOPE = 0.2
BN_EPS = 0.8  # faithful to nn.BatchNorm1d(n, 0.8)

# Packed-vector layout (lane-aligned offsets, all multiples of 128).
_VEC_SLICES = {
    "b1": (0, 128),
    "g2": (128, 384),
    "be2": (384, 640),
    "g3": (640, 1152),
    "be3": (1152, 1664),
    "g4": (1664, 2688),
    "be4": (2688, 3712),
    "b5": (3712, 4608),
}
_VEC_WIDTH = 4608  # 36 * 128


def _leaky_relu(x, slope=LEAKY_SLOPE):
    # max(x, 0.2*x) == LeakyReLU(0.2): one vmax instead of cmp+select.
    return jnp.maximum(x, slope * x)


def _bn_leaky(x, gamma, beta, epi_dtype, eps=BN_EPS):
    """Training-mode BatchNorm1d (biased batch stats) + LeakyReLU.

    Statistics / scale / shift in f32 (one pass over x); the normalize +
    activation epilogue runs in `epi_dtype` (bf16 on v6e/v7x, f32 on v5e).
    One-pass E[x^2]-mu^2 is safe here only because eps=0.8; switch to a
    two-pass variance if eps is ever made standard (1e-5).
    """
    inv_n = 1.0 / x.shape[0]
    mu = jnp.sum(x, axis=0, keepdims=True) * inv_n
    mean_sq = jnp.sum(x * x, axis=0, keepdims=True) * inv_n
    var = mean_sq - mu * mu
    scale = gamma * lax.rsqrt(var + eps)          # rsqrt -> EUP (free slot)
    shift = beta - mu * scale
    y = (x.astype(epi_dtype) * scale.astype(epi_dtype)
         + shift.astype(epi_dtype))
    return _leaky_relu(y)


def generator_kernel(epi_dtype,
                     z_ref, w1_ref, vec_ref,
                     w2_hbm, w3_hbm, w4_hbm, w5_hbm,
                     out_ref,
                     w2_buf, w3_buf, w4_buf, w5_buf, dma_sems):
    # Issue all deep-layer weight DMAs up front; each layer's matmul/epilogue
    # overlaps the remaining transfers, and each matmul waits only for its own
    # weights instead of for the whole weight set.
    copies = []
    for i, (src, dst) in enumerate(((w2_hbm, w2_buf), (w3_hbm, w3_buf),
                                    (w4_hbm, w4_buf), (w5_hbm, w5_buf))):
        cp = pltpu.make_async_copy(src, dst, dma_sems.at[i])
        cp.start()
        copies.append(cp)

    def mm(x, w):
        # bf16 operands, f32 accumulation on the MXU.
        return jnp.dot(x.astype(jnp.bfloat16), w,
                       preferred_element_type=jnp.float32)

    def vec(name):
        lo, hi = _VEC_SLICES[name]
        return vec_ref[:, lo:hi]              # static, lane-aligned slice

    # Layer 1 (w1 + packed vectors are already VMEM-resident).
    h = _leaky_relu((mm(z_ref[...], w1_ref[...]) + vec("b1")).astype(epi_dtype))

    # b2/b3/b4 omitted: a Linear bias immediately followed by training-mode
    # BatchNorm is exactly cancelled by the batch-mean subtraction.
    copies[0].wait()
    h = _bn_leaky(mm(h, w2_buf[...]), vec("g2"), vec("be2"), epi_dtype)
    copies[1].wait()
    h = _bn_leaky(mm(h, w3_buf[...]), vec("g3"), vec("be3"), epi_dtype)
    copies[2].wait()
    h = _bn_leaky(mm(h, w4_buf[...]), vec("g4"), vec("be4"), epi_dtype)
    copies[3].wait()
    out_ref[...] = jnp.tanh(mm(h, w5_buf[...]) + vec("b5"))


def _epilogue_dtype():
    """bf16 epilogues only where the VPU/EUP supports bf16 (v6e / v7x)."""
    try:
        kind = jax.devices()[0].device_kind.lower()
    except Exception:  # pragma: no cover - defensive
        return jnp.float32
    if ("v6" in kind) or ("v7" in kind) or ("trillium" in kind):
        return jnp.bfloat16
    return jnp.float32


def make_generator_params(key):
    """Deterministic synthetic parameters (shapes follow the PyTorch module)."""
    dims = [100, 128, 256, 512, 1024, 784]
    params = {}
    keys = jax.random.split(key, 2 * (len(dims) - 1) + 2 * 3)
    ki = 0
    for li in range(len(dims) - 1):
        fan_in, fan_out = dims[li], dims[li + 1]
        bound = 1.0 / jnp.sqrt(fan_in)
        # Stored as (in, out) so the kernel computes x @ W (+ b), matching
        # PyTorch's x @ weight.T + bias with weight of shape (out, in).
        params[f"w{li + 1}"] = jax.random.uniform(
            keys[ki], (fan_in, fan_out), jnp.float32, -bound, bound); ki += 1
        # b2/b3/b4 exist in the module but are mathematically no-ops under
        # training-mode BatchNorm; generated for fidelity, not used.
        params[f"b{li + 1}"] = jax.random.uniform(
            keys[ki], (1, fan_out), jnp.float32, -bound, bound); ki += 1
    for li, nf in zip((2, 3, 4), (256, 512, 1024)):
        params[f"g{li}"] = 1.0 + 0.01 * jax.random.normal(keys[ki], (1, nf), jnp.float32); ki += 1
        params[f"be{li}"] = 0.01 * jax.random.normal(keys[ki], (1, nf), jnp.float32); ki += 1
    return params


def _pad_to(x, target, axis):
    pad = target - x.shape[axis]
    if pad <= 0:
        return x
    widths = [(0, 0)] * x.ndim
    widths[axis] = (0, pad)
    return jnp.pad(x, widths)


def prepare_generator_params(params):
    """One-time conversion: lane-pad + cast weights to bf16, pack the vectors.

    Done once at parameter-setup time so the per-call wrapper does no weight
    HBM traffic beyond the kernel's own reads.
    """
    w1 = _pad_to(params["w1"], 128, axis=0).astype(jnp.bfloat16)   # K 100->128
    w2 = params["w2"].astype(jnp.bfloat16)
    w3 = params["w3"].astype(jnp.bfloat16)
    w4 = params["w4"].astype(jnp.bfloat16)
    w5 = _pad_to(params["w5"], 896, axis=1).astype(jnp.bfloat16)   # N 784->896
    b5 = _pad_to(params["b5"], 896, axis=1)
    vec = jnp.concatenate(
        [params["b1"], params["g2"], params["be2"],
         params["g3"], params["be3"],
         params["g4"], params["be4"], b5], axis=1).astype(jnp.float32)
    assert vec.shape == (1, _VEC_WIDTH), vec.shape
    prep = {"w1": w1, "w2": w2, "w3": w3, "w4": w4, "w5": w5, "vec": vec}
    return jax.tree_util.tree_map(jax.device_put, prep)


@functools.partial(jax.jit)
def generator_forward(z, prep):
    B = z.shape[0]
    # Lane-pad z's ragged K (100 -> 128); padded rows of w1 are zero.
    z_p = _pad_to(z.astype(jnp.float32), 128, axis=1)

    vmem = pl.BlockSpec(memory_space=pltpu.MemorySpace.VMEM)
    hbm = pl.BlockSpec(memory_space=pl.ANY)   # raw HBM ref; DMA'd in-kernel
    kernel = functools.partial(generator_kernel, _epilogue_dtype())

    flat = pl.pallas_call(
        kernel,
        out_shape=jax.ShapeDtypeStruct((B, 896), jnp.float32),
        in_specs=[vmem, vmem, vmem, hbm, hbm, hbm, hbm],
        out_specs=vmem,
        scratch_shapes=[
            pltpu.VMEM((128, 256), jnp.bfloat16),
            pltpu.VMEM((256, 512), jnp.bfloat16),
            pltpu.VMEM((512, 1024), jnp.bfloat16),
            pltpu.VMEM((1024, 896), jnp.bfloat16),
            pltpu.SemaphoreType.DMA((4,)),
        ],
        compiler_params=pltpu.CompilerParams(vmem_limit_bytes=32 << 20),
    )(z_p, prep["w1"], prep["vec"],
      prep["w2"], prep["w3"], prep["w4"], prep["w5"])

    # Same as x.view(x.size(0), 1, 28, 28) in the PyTorch module.
    return flat[:, :784].reshape(B, 1, 28, 28)


def _reference_forward(z, params, epi_dtype):
    """Pure-JAX reference with the same bf16-matmul / epilogue pipeline."""
    def mm(x, w):
        return jnp.dot(x.astype(jnp.bfloat16), w.astype(jnp.bfloat16),
                       preferred_element_type=jnp.float32)

    h = _leaky_relu((mm(z, params["w1"]) + params["b1"]).astype(epi_dtype))
    h = _bn_leaky(mm(h, params["w2"]), params["g2"], params["be2"], epi_dtype)
    h = _bn_leaky(mm(h, params["w3"]), params["g3"], params["be3"], epi_dtype)
    h = _bn_leaky(mm(h, params["w4"]), params["g4"], params["be4"], epi_dtype)
    h = jnp.tanh(mm(h, params["w5"]) + params["b5"])
    return h.reshape(z.shape[0], 1, 28, 28)


if __name__ == "__main__":
    key = jax.random.PRNGKey(0)
    k_param, k_z = jax.random.split(key)
    B = 8  # BatchNorm uses batch statistics, so B > 1 is required
    z = jax.random.normal(k_z, (B, 100), jnp.float32)

    params = make_generator_params(k_param)
    prep = prepare_generator_params(params)      # one-time weight conversion

    img = generator_forward(z, prep)
    img = jax.block_until_ready(img)

    ref = _reference_forward(z, params, _epilogue_dtype())
    assert img.shape == (B, 1, 28, 28), img.shape
    max_err = float(jnp.max(jnp.abs(img - ref)))
    assert jnp.allclose(img, ref, atol=2e-2, rtol=2e-2), f"mismatch, max_err={max_err}"
    print("KERNEL_OK")
</pallas_src>

<mosaic_0001>
module attributes {stable_mosaic.version = 11 : i64} {
  func.func @generator_kernel(%arg0: memref<8x128xf32, #tpu.memory_space<vmem>>, %arg1: memref<128x128xbf16, #tpu.memory_space<vmem>>, %arg2: memref<1x4608xf32, #tpu.memory_space<vmem>>, %arg3: memref<128x256xbf16, #tpu.memory_space<any>>, %arg4: memref<256x512xbf16, #tpu.memory_space<any>>, %arg5: memref<512x1024xbf16, #tpu.memory_space<any>>, %arg6: memref<1024x896xbf16, #tpu.memory_space<any>>, %arg7: memref<8x896xf32, #tpu.memory_space<vmem>>, %arg8: memref<128x256xbf16, #tpu.memory_space<vmem>>, %arg9: memref<256x512xbf16, #tpu.memory_space<vmem>>, %arg10: memref<512x1024xbf16, #tpu.memory_space<vmem>>, %arg11: memref<1024x896xbf16, #tpu.memory_space<vmem>>, %arg12: memref<4x!tpu.dma_semaphore, #tpu.memory_space<semaphore_mem>>) attributes {dimension_semantics = [], scalar_prefetch = 0 : i64, scratch_operands = 5 : i64, tpu.core_type = #tpu.core_type<tc>} {
    %c0_i32 = arith.constant 0 : i32
    %0 = tpu.memref_slice %arg12[%c0_i32] : memref<4x!tpu.dma_semaphore, #tpu.memory_space<semaphore_mem>> -> memref<1x!tpu.dma_semaphore, #tpu.memory_space<semaphore_mem>>
    %1 = tpu.memref_squeeze %0 : memref<1x!tpu.dma_semaphore, #tpu.memory_space<semaphore_mem>> -> memref<!tpu.dma_semaphore, #tpu.memory_space<semaphore_mem>>
    tpu.enqueue_dma source(%arg3 : memref<128x256xbf16, #tpu.memory_space<any>>) target(%arg8 : memref<128x256xbf16, #tpu.memory_space<vmem>>) target_semaphore(%1 : memref<!tpu.dma_semaphore, #tpu.memory_space<semaphore_mem>>)
    %c1_i32 = arith.constant 1 : i32
    %2 = tpu.memref_slice %arg12[%c1_i32] : memref<4x!tpu.dma_semaphore, #tpu.memory_space<semaphore_mem>> -> memref<1x!tpu.dma_semaphore, #tpu.memory_space<semaphore_mem>>
    %3 = tpu.memref_squeeze %2 : memref<1x!tpu.dma_semaphore, #tpu.memory_space<semaphore_mem>> -> memref<!tpu.dma_semaphore, #tpu.memory_space<semaphore_mem>>
    tpu.enqueue_dma source(%arg4 : memref<256x512xbf16, #tpu.memory_space<any>>) target(%arg9 : memref<256x512xbf16, #tpu.memory_space<vmem>>) target_semaphore(%3 : memref<!tpu.dma_semaphore, #tpu.memory_space<semaphore_mem>>)
    %c2_i32 = arith.constant 2 : i32
    %4 = tpu.memref_slice %arg12[%c2_i32] : memref<4x!tpu.dma_semaphore, #tpu.memory_space<semaphore_mem>> -> memref<1x!tpu.dma_semaphore, #tpu.memory_space<semaphore_mem>>
    %5 = tpu.memref_squeeze %4 : memref<1x!tpu.dma_semaphore, #tpu.memory_space<semaphore_mem>> -> memref<!tpu.dma_semaphore, #tpu.memory_space<semaphore_mem>>
    tpu.enqueue_dma source(%arg5 : memref<512x1024xbf16, #tpu.memory_space<any>>) target(%arg10 : memref<512x1024xbf16, #tpu.memory_space<vmem>>) target_semaphore(%5 : memref<!tpu.dma_semaphore, #tpu.memory_space<semaphore_mem>>)
    %c3_i32 = arith.constant 3 : i32
    %6 = tpu.memref_slice %arg12[%c3_i32] : memref<4x!tpu.dma_semaphore, #tpu.memory_space<semaphore_mem>> -> memref<1x!tpu.dma_semaphore, #tpu.memory_space<semaphore_mem>>
    %7 = tpu.memref_squeeze %6 : memref<1x!tpu.dma_semaphore, #tpu.memory_space<semaphore_mem>> -> memref<!tpu.dma_semaphore, #tpu.memory_space<semaphore_mem>>
    tpu.enqueue_dma source(%arg6 : memref<1024x896xbf16, #tpu.memory_space<any>>) target(%arg11 : memref<1024x896xbf16, #tpu.memory_space<vmem>>) target_semaphore(%7 : memref<!tpu.dma_semaphore, #tpu.memory_space<semaphore_mem>>)
    %c0 = arith.constant 0 : index
    %c0_0 = arith.constant 0 : index
    %8 = vector.load %arg0[%c0, %c0_0] : memref<8x128xf32, #tpu.memory_space<vmem>>, vector<8x128xf32>
    %c0_1 = arith.constant 0 : index
    %c0_2 = arith.constant 0 : index
    %9 = vector.load %arg1[%c0_1, %c0_2] : memref<128x128xbf16, #tpu.memory_space<vmem>>, vector<128x128xbf16>
    %10 = arith.truncf %8 : vector<8x128xf32> to vector<8x128xbf16>
    %cst = arith.constant dense<0.000000e+00> : vector<8x128xf32>
    %11 = tpu.matmul %10, %9, %cst {dimension_numbers = #tpu.dot_dimension_numbers<[1], [0], [0], [1], [0, 0, 1, 1], [], []>} : vector<8x128xbf16>, vector<128x128xbf16>, vector<8x128xf32> -> vector<8x128xf32>
    %c0_3 = arith.constant 0 : index
    %c0_4 = arith.constant 0 : index
    %12 = vector.load %arg2[%c0_3, %c0_4] : memref<1x4608xf32, #tpu.memory_space<vmem>>, vector<1x128xf32>
    %13 = vector.broadcast %12 : vector<1x128xf32> to vector<8x128xf32>
    %14 = arith.addf %11, %13 : vector<8x128xf32>
    %cst_5 = arith.constant 2.000000e-01 : f32
    %15 = vector.broadcast %cst_5 : f32 to vector<8x128xf32>
    %16 = arith.mulf %15, %14 : vector<8x128xf32>
    %17 = arith.maximumf %14, %16 : vector<8x128xf32>
    %c0_i32_6 = arith.constant 0 : i32
    %18 = tpu.memref_slice %arg12[%c0_i32_6] : memref<4x!tpu.dma_semaphore, #tpu.memory_space<semaphore_mem>> -> memref<1x!tpu.dma_semaphore, #tpu.memory_space<semaphore_mem>>
    %19 = tpu.memref_squeeze %18 : memref<1x!tpu.dma_semaphore, #tpu.memory_space<semaphore_mem>> -> memref<!tpu.dma_semaphore, #tpu.memory_space<semaphore_mem>>
    tpu.wait_dma2 semaphore(%19 : memref<!tpu.dma_semaphore, #tpu.memory_space<semaphore_mem>>) src(%arg3 : memref<128x256xbf16, #tpu.memory_space<any>>) dst(%arg8 : memref<128x256xbf16, #tpu.memory_space<vmem>>)
    %c0_7 = arith.constant 0 : index
    %c0_8 = arith.constant 0 : index
    %20 = vector.load %arg8[%c0_7, %c0_8] : memref<128x256xbf16, #tpu.memory_space<vmem>>, vector<128x256xbf16>
    %21 = arith.truncf %17 : vector<8x128xf32> to vector<8x128xbf16>
    %cst_9 = arith.constant dense<0.000000e+00> : vector<8x256xf32>
    %22 = tpu.matmul %21, %20, %cst_9 {dimension_numbers = #tpu.dot_dimension_numbers<[1], [0], [0], [1], [0, 0, 1, 1], [], []>} : vector<8x128xbf16>, vector<128x256xbf16>, vector<8x256xf32> -> vector<8x256xf32>
    %c0_10 = arith.constant 0 : index
    %c128 = arith.constant 128 : index
    %23 = vector.load %arg2[%c0_10, %c128] : memref<1x4608xf32, #tpu.memory_space<vmem>>, vector<1x256xf32>
    %c0_11 = arith.constant 0 : index
    %c384 = arith.constant 384 : index
    %24 = vector.load %arg2[%c0_11, %c384] : memref<1x4608xf32, #tpu.memory_space<vmem>>, vector<1x256xf32>
    %cst_12 = arith.constant dense<0.000000e+00> : vector<256xf32>
    %25 = vector.multi_reduction <add>, %22, %cst_12 [0] : vector<8x256xf32> to vector<256xf32>
    %26 = vector.shape_cast %25 : vector<256xf32> to vector<1x256xf32>
    %cst_13 = arith.constant 1.250000e-01 : f32
    %27 = vector.broadcast %cst_13 : f32 to vector<1x256xf32>
    %28 = arith.mulf %26, %27 : vector<1x256xf32>
    %29 = arith.mulf %22, %22 : vector<8x256xf32>
    %cst_14 = arith.constant dense<0.000000e+00> : vector<256xf32>
    %30 = vector.multi_reduction <add>, %29, %cst_14 [0] : vector<8x256xf32> to vector<256xf32>
    %31 = vector.shape_cast %30 : vector<256xf32> to vector<1x256xf32>
    %cst_15 = arith.constant 1.250000e-01 : f32
    %32 = vector.broadcast %cst_15 : f32 to vector<1x256xf32>
    %33 = arith.mulf %31, %32 : vector<1x256xf32>
    %34 = arith.mulf %28, %28 : vector<1x256xf32>
    %35 = arith.subf %33, %34 : vector<1x256xf32>
    %cst_16 = arith.constant 8.000000e-01 : f32
    %36 = vector.broadcast %cst_16 : f32 to vector<1x256xf32>
    %37 = arith.addf %35, %36 : vector<1x256xf32>
    %38 = math.rsqrt %37 : vector<1x256xf32>
    %39 = arith.mulf %23, %38 : vector<1x256xf32>
    %40 = arith.mulf %28, %39 : vector<1x256xf32>
    %41 = arith.subf %24, %40 : vector<1x256xf32>
    %42 = vector.broadcast %39 : vector<1x256xf32> to vector<8x256xf32>
    %43 = arith.mulf %22, %42 : vector<8x256xf32>
    %44 = vector.broadcast %41 : vector<1x256xf32> to vector<8x256xf32>
    %45 = arith.addf %43, %44 : vector<8x256xf32>
    %cst_17 = arith.constant 2.000000e-01 : f32
    %46 = vector.broadcast %cst_17 : f32 to vector<8x256xf32>
    %47 = arith.mulf %46, %45 : vector<8x256xf32>
    %48 = arith.maximumf %45, %47 : vector<8x256xf32>
    %c1_i32_18 = arith.constant 1 : i32
    %49 = tpu.memref_slice %arg12[%c1_i32_18] : memref<4x!tpu.dma_semaphore, #tpu.memory_space<semaphore_mem>> -> memref<1x!tpu.dma_semaphore, #tpu.memory_space<semaphore_mem>>
    %50 = tpu.memref_squeeze %49 : memref<1x!tpu.dma_semaphore, #tpu.memory_space<semaphore_mem>> -> memref<!tpu.dma_semaphore, #tpu.memory_space<semaphore_mem>>
    tpu.wait_dma2 semaphore(%50 : memref<!tpu.dma_semaphore, #tpu.memory_space<semaphore_mem>>) src(%arg4 : memref<256x512xbf16, #tpu.memory_space<any>>) dst(%arg9 : memref<256x512xbf16, #tpu.memory_space<vmem>>)
    %c0_19 = arith.constant 0 : index
    %c0_20 = arith.constant 0 : index
    %51 = vector.load %arg9[%c0_19, %c0_20] : memref<256x512xbf16, #tpu.memory_space<vmem>>, vector<256x512xbf16>
    %52 = arith.truncf %48 : vector<8x256xf32> to vector<8x256xbf16>
    %cst_21 = arith.constant dense<0.000000e+00> : vector<8x512xf32>
    %53 = tpu.matmul %52, %51, %cst_21 {dimension_numbers = #tpu.dot_dimension_numbers<[1], [0], [0], [1], [0, 0, 1, 1], [], []>} : vector<8x256xbf16>, vector<256x512xbf16>, vector<8x512xf32> -> vector<8x512xf32>
    %c0_22 = arith.constant 0 : index
    %c640 = arith.constant 640 : index
    %54 = vector.load %arg2[%c0_22, %c640] : memref<1x4608xf32, #tpu.memory_space<vmem>>, vector<1x512xf32>
    %c0_23 = arith.constant 0 : index
    %c1152 = arith.constant 1152 : index
    %55 = vector.load %arg2[%c0_23, %c1152] : memref<1x4608xf32, #tpu.memory_space<vmem>>, vector<1x512xf32>
    %cst_24 = arith.constant dense<0.000000e+00> : vector<512xf32>
    %56 = vector.multi_reduction <add>, %53, %cst_24 [0] : vector<8x512xf32> to vector<512xf32>
    %57 = vector.shape_cast %56 : vector<512xf32> to vector<1x512xf32>
    %cst_25 = arith.constant 1.250000e-01 : f32
    %58 = vector.broadcast %cst_25 : f32 to vector<1x512xf32>
    %59 = arith.mulf %57, %58 : vector<1x512xf32>
    %60 = arith.mulf %53, %53 : vector<8x512xf32>
    %cst_26 = arith.constant dense<0.000000e+00> : vector<512xf32>
    %61 = vector.multi_reduction <add>, %60, %cst_26 [0] : vector<8x512xf32> to vector<512xf32>
    %62 = vector.shape_cast %61 : vector<512xf32> to vector<1x512xf32>
    %cst_27 = arith.constant 1.250000e-01 : f32
    %63 = vector.broadcast %cst_27 : f32 to vector<1x512xf32>
    %64 = arith.mulf %62, %63 : vector<1x512xf32>
    %65 = arith.mulf %59, %59 : vector<1x512xf32>
    %66 = arith.subf %64, %65 : vector<1x512xf32>
    %cst_28 = arith.constant 8.000000e-01 : f32
    %67 = vector.broadcast %cst_28 : f32 to vector<1x512xf32>
    %68 = arith.addf %66, %67 : vector<1x512xf32>
    %69 = math.rsqrt %68 : vector<1x512xf32>
    %70 = arith.mulf %54, %69 : vector<1x512xf32>
    %71 = arith.mulf %59, %70 : vector<1x512xf32>
    %72 = arith.subf %55, %71 : vector<1x512xf32>
    %73 = vector.broadcast %70 : vector<1x512xf32> to vector<8x512xf32>
    %74 = arith.mulf %53, %73 : vector<8x512xf32>
    %75 = vector.broadcast %72 : vector<1x512xf32> to vector<8x512xf32>
    %76 = arith.addf %74, %75 : vector<8x512xf32>
    %cst_29 = arith.constant 2.000000e-01 : f32
    %77 = vector.broadcast %cst_29 : f32 to vector<8x512xf32>
    %78 = arith.mulf %77, %76 : vector<8x512xf32>
    %79 = arith.maximumf %76, %78 : vector<8x512xf32>
    %c2_i32_30 = arith.constant 2 : i32
    %80 = tpu.memref_slice %arg12[%c2_i32_30] : memref<4x!tpu.dma_semaphore, #tpu.memory_space<semaphore_mem>> -> memref<1x!tpu.dma_semaphore, #tpu.memory_space<semaphore_mem>>
    %81 = tpu.memref_squeeze %80 : memref<1x!tpu.dma_semaphore, #tpu.memory_space<semaphore_mem>> -> memref<!tpu.dma_semaphore, #tpu.memory_space<semaphore_mem>>
    tpu.wait_dma2 semaphore(%81 : memref<!tpu.dma_semaphore, #tpu.memory_space<semaphore_mem>>) src(%arg5 : memref<512x1024xbf16, #tpu.memory_space<any>>) dst(%arg10 : memref<512x1024xbf16, #tpu.memory_space<vmem>>)
    %c0_31 = arith.constant 0 : index
    %c0_32 = arith.constant 0 : index
    %82 = vector.load %arg10[%c0_31, %c0_32] : memref<512x1024xbf16, #tpu.memory_space<vmem>>, vector<512x1024xbf16>
    %83 = arith.truncf %79 : vector<8x512xf32> to vector<8x512xbf16>
    %cst_33 = arith.constant dense<0.000000e+00> : vector<8x1024xf32>
    %84 = tpu.matmul %83, %82, %cst_33 {dimension_numbers = #tpu.dot_dimension_numbers<[1], [0], [0], [1], [0, 0, 1, 1], [], []>} : vector<8x512xbf16>, vector<512x1024xbf16>, vector<8x1024xf32> -> vector<8x1024xf32>
    %c0_34 = arith.constant 0 : index
    %c1664 = arith.constant 1664 : index
    %85 = vector.load %arg2[%c0_34, %c1664] : memref<1x4608xf32, #tpu.memory_space<vmem>>, vector<1x1024xf32>
    %c0_35 = arith.constant 0 : index
    %c2688 = arith.constant 2688 : index
    %86 = vector.load %arg2[%c0_35, %c2688] : memref<1x4608xf32, #tpu.memory_space<vmem>>, vector<1x1024xf32>
    %cst_36 = arith.constant dense<0.000000e+00> : vector<1024xf32>
    %87 = vector.multi_reduction <add>, %84, %cst_36 [0] : vector<8x1024xf32> to vector<1024xf32>
    %88 = vector.shape_cast %87 : vector<1024xf32> to vector<1x1024xf32>
    %cst_37 = arith.constant 1.250000e-01 : f32
    %89 = vector.broadcast %cst_37 : f32 to vector<1x1024xf32>
    %90 = arith.mulf %88, %89 : vector<1x1024xf32>
    %91 = arith.mulf %84, %84 : vector<8x1024xf32>
    %cst_38 = arith.constant dense<0.000000e+00> : vector<1024xf32>
    %92 = vector.multi_reduction <add>, %91, %cst_38 [0] : vector<8x1024xf32> to vector<1024xf32>
    %93 = vector.shape_cast %92 : vector<1024xf32> to vector<1x1024xf32>
    %cst_39 = arith.constant 1.250000e-01 : f32
    %94 = vector.broadcast %cst_39 : f32 to vector<1x1024xf32>
    %95 = arith.mulf %93, %94 : vector<1x1024xf32>
    %96 = arith.mulf %90, %90 : vector<1x1024xf32>
    %97 = arith.subf %95, %96 : vector<1x1024xf32>
    %cst_40 = arith.constant 8.000000e-01 : f32
    %98 = vector.broadcast %cst_40 : f32 to vector<1x1024xf32>
    %99 = arith.addf %97, %98 : vector<1x1024xf32>
    %100 = math.rsqrt %99 : vector<1x1024xf32>
    %101 = arith.mulf %85, %100 : vector<1x1024xf32>
    %102 = arith.mulf %90, %101 : vector<1x1024xf32>
    %103 = arith.subf %86, %102 : vector<1x1024xf32>
    %104 = vector.broadcast %101 : vector<1x1024xf32> to vector<8x1024xf32>
    %105 = arith.mulf %84, %104 : vector<8x1024xf32>
    %106 = vector.broadcast %103 : vector<1x1024xf32> to vector<8x1024xf32>
    %107 = arith.addf %105, %106 : vector<8x1024xf32>
    %cst_41 = arith.constant 2.000000e-01 : f32
    %108 = vector.broadcast %cst_41 : f32 to vector<8x1024xf32>
    %109 = arith.mulf %108, %107 : vector<8x1024xf32>
    %110 = arith.maximumf %107, %109 : vector<8x1024xf32>
    %c3_i32_42 = arith.constant 3 : i32
    %111 = tpu.memref_slice %arg12[%c3_i32_42] : memref<4x!tpu.dma_semaphore, #tpu.memory_space<semaphore_mem>> -> memref<1x!tpu.dma_semaphore, #tpu.memory_space<semaphore_mem>>
    %112 = tpu.memref_squeeze %111 : memref<1x!tpu.dma_semaphore, #tpu.memory_space<semaphore_mem>> -> memref<!tpu.dma_semaphore, #tpu.memory_space<semaphore_mem>>
    tpu.wait_dma2 semaphore(%112 : memref<!tpu.dma_semaphore, #tpu.memory_space<semaphore_mem>>) src(%arg6 : memref<1024x896xbf16, #tpu.memory_space<any>>) dst(%arg11 : memref<1024x896xbf16, #tpu.memory_space<vmem>>)
    %c0_43 = arith.constant 0 : index
    %c0_44 = arith.constant 0 : index
    %113 = vector.load %arg11[%c0_43, %c0_44] : memref<1024x896xbf16, #tpu.memory_space<vmem>>, vector<1024x896xbf16>
    %114 = arith.truncf %110 : vector<8x1024xf32> to vector<8x1024xbf16>
    %cst_45 = arith.constant dense<0.000000e+00> : vector<8x896xf32>
    %115 = tpu.matmul %114, %113, %cst_45 {dimension_numbers = #tpu.dot_dimension_numbers<[1], [0], [0], [1], [0, 0, 1, 1], [], []>} : vector<8x1024xbf16>, vector<1024x896xbf16>, vector<8x896xf32> -> vector<8x896xf32>
    %c0_46 = arith.constant 0 : index
    %c3712 = arith.constant 3712 : index
    %116 = vector.load %arg2[%c0_46, %c3712] : memref<1x4608xf32, #tpu.memory_space<vmem>>, vector<1x896xf32>
    %117 = vector.broadcast %116 : vector<1x896xf32> to vector<8x896xf32>
    %118 = arith.addf %115, %117 : vector<8x896xf32>
    %119 = math.tanh %118 : vector<8x896xf32>
    %c0_47 = arith.constant 0 : index
    %c0_48 = arith.constant 0 : index
    %120 = vector.load %arg7[%c0_47, %c0_48] : memref<8x896xf32, #tpu.memory_space<vmem>>, vector<8x896xf32>
    tpu.vector_store %arg7[%c0_47, %c0_48], %119 {strides = array<i32>} : memref<8x896xf32, #tpu.memory_space<vmem>>, vector<8x896xf32>,
    return
  }
}

</mosaic_0001>

<bundles_post_ra>
// kernel: generator_forward.1
= control target key start
LH: loop header
LB: loop body
LE: loop exit
PB: predicated region body
PF: predicated region fallthrough
CT: control target
= control target key end

     0   :  { %12 = vsyncpa [#allocation8], 0  ;;  %s3838_s0 = inlined_call_operand.vmem [shape: f32[8,128], index: 0, kind: input, shape index: {}]   ;;  %s3839_s1 = inlined_call_operand.hbm [shape: bf16[128,128], index: 1, kind: input, shape index: {}]   ;;  %s3840_s2 = inlined_call_operand.hbm [shape: f32[1,4608], index: 2, kind: input, shape index: {}]   ;;  %s3841_s3 = inlined_call_operand.hbm [shape: bf16[128,256], index: 3, kind: input, shape index: {}]   ;;  %s3842_s4 = inlined_call_operand.hbm [shape: bf16[256,512], index: 4, kind: input, shape index: {}]   ;;  %s3843_s5 = inlined_call_operand.hbm [shape: bf16[512,1024], index: 5, kind: input, shape index: {}]   ;;  %s3844_s6 = inlined_call_operand.hbm [shape: bf16[1024,896], index: 6, kind: input, shape index: {}]   ;;  %s3845_s7 = inlined_call_operand.vmem [shape: f32[8,896], index: 7, kind: output, shape index: {}]  }
   0x1   :  { %13 = vsyncpa [#allocation10], 0  ;;  %s3337_s24 = smov [#allocation7]   ;;  %s3281_s28 = scalar_lea.hbm %s3839_s1, 1024 }
   0x2   :  { %s21_s25 = sshll.u32 %s3337_s24, 4  ;;  %p3282_p0 = scmp.ne.s32.totalorder %s3839_s1, %s3281_s28  ;;  %s22_s25 = int_to_ptr.vmem [resolvable:$true] %s21_s25 }
   0x3   :  { %p3285_p1 = scmp.lt.u32.totalorder %s3281_s28, %s3839_s1 }
   0x5   :  { %p3287_p2 = pnand %p3285_p1, %p3282_p0 }
   0x7   :  { %3290 = shalt.err (!%p3287_p2)
}
   0x8   :  { %s3291_s10 = scalar_lea.vmem %s22_s25, 1024  ;;  %p3296_p4 = scmp.lt.s32.totalorder %s22_s25, %s22_s25 }
   0x9   :  { %p3292_p3 = scmp.ne.s32.totalorder %s22_s25, %s3291_s10  ;;  %p3297_p5 = scmp.lt.s32.totalorder %s3291_s10, %s3291_s10 }
   0xb   :  { %p3298_p6 = por %p3297_p5, %p3296_p4 }
   0xd   :  { %p3299_p7 = pnand %p3298_p6, %p3292_p3 }
   0xf   :  { %3302 = shalt.err (!%p3299_p7)
}
  0x10   :  { %s3338_s11 = smov 64   ;;  %s3339_s12 = smov 4  }
  0x11   :  { %27 = dma.hbm_to_vmem [thread:$0]  %s3839_s1, 1024, %s22_s25, [#allocation8], %s3338_s11, %s3338_s11, %s3339_s12  }
  0x12   :  { %s3340_s15 = smov [#allocation9]   ;;  %s3303_s19 = scalar_lea.hbm %s3840_s2, 576 }
  0x13   :  { %s34_s16 = sshll.u32 %s3340_s15, 4  ;;  %p3304_p8 = scmp.ne.s32.totalorder %s3840_s2, %s3303_s19  ;;  %s35_s16 = int_to_ptr.vmem [resolvable:$true] %s34_s16 }
  0x14   :  { %p3307_p9 = scmp.lt.u32.totalorder %s3303_s19, %s3840_s2 }
  0x16   :  { %p3309_p10 = pnand %p3307_p9, %p3304_p8 }
  0x18   :  { %3312 = shalt.err (!%p3309_p10)
}
  0x19   :  { %s3313_s24 = scalar_lea.vmem %s35_s16, 576  ;;  %p3318_p12 = scmp.lt.s32.totalorder %s35_s16, %s35_s16 }
  0x1a   :  { %p3314_p11 = scmp.ne.s32.totalorder %s35_s16, %s3313_s24  ;;  %p3319_p13 = scmp.lt.s32.totalorder %s3313_s24, %s3313_s24 }
  0x1c   :  { %p3320_p0 = por %p3319_p13, %p3318_p12 }
  0x1e   :  { %p3321_p1 = pnand %p3320_p0, %p3314_p11 }
  0x20   :  { %3324 = shalt.err (!%p3321_p1)
}
  0x21   :  { %37 = dma.hbm_to_vmem [thread:$0]  %s3840_s2, 576, %s35_s16, [#allocation10]  }
  0x22   :  { %3325 = dma.done.wait [#allocation8], 1024  }
  0x23   :  { %3326 = vsyncadd [#allocation8], 4294966272 }
  0x24   :  { %3327 = dma.done.wait [#allocation10], 576  }
  0x25   :  { %3328 = vsyncadd [#allocation10], 4294966720  ;;  %s49_s26 = sld [smem:[#allocation0]]   ;;  %s3341_s27 = smov 2   ;;  %v3342_v0 = vmov 0.0   ;;  %vm3343_vm0 = vmmov 0  }
  0x26   :  { %65 = sst [smem:[#allocation12 + $0x2]] %s3341_s27  ;;  %3124 = vmatprep.subr.bf16.mxu0 %v3342_v0  ;;  %3140 = vmatprep.mubr.msk.bf16.mxu0 %vm3343_vm0, %v3342_v0  ;;  %s3344_s28 = smov 128  }
  0x27   :  { %67 = sst [smem:[#allocation12 + $0x3]] %s3338_s11  ;;  %s3345_s2 = smov [#allocation2]  }
  0x28   :  { %69 = sst [smem:[#allocation12 + $0x4]] %s3344_s28  ;;  %s57_s29 = sshll.u32 %s3345_s2, 4  ;;  %s58_s29 = int_to_ptr.vmem [resolvable:$true] %s57_s29 }
  0x29   :  { %71 = sst [smem:[#allocation12 + $0x5]] %s3341_s27  ;;  %s3346_s9 = smov 256  }
  0x2a   :  { %73 = sst [smem:[#allocation12 + $0x6]] %s3344_s28  ;;  %s3347_s10 = smov [#allocation6]  }
  0x2b   :  { %75 = sst [smem:[#allocation12 + $0x7]] %s3338_s11  ;;  %s3006_s30 = sshll.u32 %s49_s26, 26 }
  0x2c   :  { %77 = sst [smem:[#allocation12 + $0x8]] %s3339_s12  ;;  %s3442_s8 = sadd.s32 134217728, %s3006_s30 }
  0x2d   :  { %61 = sst [smem:[#allocation12]] %s3346_s9  ;;  %s3348_s13 = smov [#allocation11]  }
  0x2e   :  { %63 = sst [smem:[#allocation12 + $0x1]] %s3346_s9  ;;  %s3349_s16 = smov 512  }
  0x2f   :  { %79 = dma.general %s3841_s3, 2048, %s58_s29, %s3347_s10, %s3348_s13, [#allocation12], %s3442_s8, 0  }
  0x30   :  { %100 = sst [smem:[#allocation14 + $0x2]] %s3339_s12  ;;  %s3350_s17 = smov [#allocation3]  }
  0x31   :  { %96 = sst [smem:[#allocation14]] %s3349_s16  ;;  %s92_s18 = sshll.u32 %s3350_s17, 4  ;;  %s93_s18 = int_to_ptr.vmem [resolvable:$true] %s92_s18 }
  0x32   :  { %98 = sst [smem:[#allocation14 + $0x1]] %s3349_s16  ;;  %s3351_s3 = smov [#allocation6 + $0x1]  }
  0x33   :  { %102 = sst [smem:[#allocation14 + $0x3]] %s3338_s11  ;;  %s3352_s19 = smov [#allocation13]  }
  0x34   :  { %104 = sst [smem:[#allocation14 + $0x4]] %s3344_s28  ;;  %s3353_s22 = smov 1024  }
  0x35   :  { %106 = sst [smem:[#allocation14 + $0x5]] %s3341_s27  ;;  %s3354_s23 = smov [#allocation4]  }
  0x36   :  { %108 = sst [smem:[#allocation14 + $0x6]] %s3346_s9  ;;  %s127_s24 = sshll.u32 %s3354_s23, 4  ;;  %s128_s24 = int_to_ptr.vmem [resolvable:$true] %s127_s24 }
  0x37   :  { %110 = sst [smem:[#allocation14 + $0x7]] %s3338_s11  ;;  %s3355_s1 = smov 8  }
  0x38   :  { %112 = sst [smem:[#allocation14 + $0x8]] %s3339_s12  ;;  %s3357_s25 = smov [#allocation15]  }
  0x39   :  { %114 = dma.general %s3842_s4, 8192, %s93_s18, %s3351_s3, %s3352_s19, [#allocation14], %s3442_s8, 0  }
  0x3a   :  { %131 = sst [smem:[#allocation16]] %s3353_s22  ;;  %s3356_s4 = smov [#allocation6 + $0x2]  }
  0x3b   :  { %133 = sst [smem:[#allocation16 + $0x1]] %s3353_s22  ;;  %s3358_s29 = smov 896  }
  0x3c   :  { %135 = sst [smem:[#allocation16 + $0x2]] %s3355_s1  ;;  %s3359_s30 = smov [#allocation5]  }
  0x3d   :  { %137 = sst [smem:[#allocation16 + $0x3]] %s3338_s11  ;;  %s162_s9 = sshll.u32 %s3359_s30, 4  ;;  %s163_s9 = int_to_ptr.vmem [resolvable:$true] %s162_s9 }
  0x3e   :  { %139 = sst [smem:[#allocation16 + $0x4]] %s3344_s28  ;;  %s3360_s10 = smov 7  }
  0x3f   :  { %141 = sst [smem:[#allocation16 + $0x5]] %s3341_s27  ;;  %s3361_s13 = smov 448  }
  0x40   :  { %143 = sst [smem:[#allocation16 + $0x6]] %s3349_s16  ;;  %s3363_s14 = smov [#allocation17]  }
  0x41   :  { %145 = sst [smem:[#allocation16 + $0x7]] %s3338_s11 }
  0x42   :  { %147 = sst [smem:[#allocation16 + $0x8]] %s3339_s12 }
  0x43   :  { %149 = dma.general %s3843_s5, 32768, %s128_s24, %s3356_s4, %s3357_s25, [#allocation16], %s3442_s8, 0  }
  0x44   :  { %166 = sst [smem:[#allocation18]] %s3358_s29  ;;  %s3362_s5 = smov [#allocation6 + $0x3]  }
  0x45   :  { %168 = sst [smem:[#allocation18 + $0x1]] %s3358_s29 }
  0x46   :  { %170 = sst [smem:[#allocation18 + $0x2]] %s3360_s10 }
  0x47   :  { %172 = sst [smem:[#allocation18 + $0x3]] %s3338_s11 }
  0x48   :  { %174 = sst [smem:[#allocation18 + $0x4]] %s3344_s28 }
  0x49   :  { %176 = sst [smem:[#allocation18 + $0x5]] %s3341_s27 }
  0x4a   :  { %178 = sst [smem:[#allocation18 + $0x6]] %s3361_s13 }
  0x4b   :  { %180 = sst [smem:[#allocation18 + $0x7]] %s3338_s11 }
  0x4c   :  { %182 = sst [smem:[#allocation18 + $0x8]] %s3339_s12 }
  0x4d   :  { %184 = dma.general %s3844_s6, 57344, %s163_s9, %s3362_s5, %s3363_s14, [#allocation18], %s3442_s8, 0  }
  0x4e   :  { %v3231_v1 = vld [vmem:[#allocation7] sm:$0xff]   ;;  %v3232_v2 = vld [vmem:[#allocation7 + $0x8] sm:$0xff]   ;;  %v3233_v3 = vld [vmem:[#allocation7 + $0x10] sm:$0xff]  }
  0x4f   :  { %3125 = vmatpush3.bf16.msra.mxu0 %v3231_v1  ;;  %v3234_v4 = vld [vmem:[#allocation7 + $0x18] sm:$0xff]   ;;  %v3235_v5 = vld [vmem:[#allocation7 + $0x20] sm:$0xff]   ;;  %v3236_v6 = vld [vmem:[#allocation7 + $0x28] sm:$0xff]  }
  0x50   :  { %3126 = vmatprep.subr.bf16.mxu0 %v3342_v0  ;;  %v3237_v7 = vld [vmem:[#allocation7 + $0x30] sm:$0xff]   ;;  %v3238_v8 = vld [vmem:[#allocation7 + $0x38] sm:$0xff]   ;;  %v185_v9 = vld [vmem:[%s3838_s0] sm:$0xff] }
  0x51   :  { %v202_v10 = vpack.c.bf16 %v185_v9, %v185_v9  ;;  %v3014_v11 = vld [vmem:[#allocation9] ss:$0 sm:$0xff] }
  0x53   :  { %3127 = vmatpush3.bf16.msra.mxu0 %v3232_v2 }
  0x54   :  { %3128 = vmatprep.subr.bf16.mxu0 %v3342_v0 }
  0x57   :  { %3129 = vmatpush3.bf16.msra.mxu0 %v3233_v3 }
  0x58   :  { %3130 = vmatprep.subr.bf16.mxu0 %v3342_v0 }
  0x5b   :  { %3131 = vmatpush3.bf16.msra.mxu0 %v3234_v4 }
  0x5c   :  { %3132 = vmatprep.subr.bf16.mxu0 %v3342_v0 }
  0x5f   :  { %3133 = vmatpush3.bf16.msra.mxu0 %v3235_v5 }
  0x60   :  { %3134 = vmatprep.subr.bf16.mxu0 %v3342_v0 }
  0x63   :  { %3135 = vmatpush3.bf16.msra.mxu0 %v3236_v6 }
  0x64   :  { %3136 = vmatprep.subr.bf16.mxu0 %v3342_v0 }
  0x67   :  { %3137 = vmatpush3.bf16.msra.mxu0 %v3237_v7 }
  0x68   :  { %3138 = vmatprep.subr.bf16.mxu0 %v3342_v0 }
  0x6b   :  { %3139 = vmatpush3.bf16.msra.mxu0 %v3238_v8 }
  0x6e   :  { %3141 = vmatmul.mubr.bf16.vlgmr.msra.gmra.mrb[0].mxu0 %v202_v10 }
 0x141   :  { %v292_v12 = vpop.f32.mrb[0].mxu0 }
 0x142   :  { %v293_v13 = vadd.f32 %v3014_v11, %v292_v12  ;;  %v3142_v14 = vpop.f32.mrb[1].mxu0 }
 0x143   :  { %v295_v15 = vpop.f32.mrb[2].mxu0 }
 0x144   :  { %v298_v16 = vmul.f32 0.2, %v293_v13  ;;  %v3143_v17 = vpop.f32.mrb[3].mxu0 }
 0x146   :  { %v299_v18 = vmax.f32 %v293_v13, %v298_v16 }
 0x147   :  { %3329 = dma.done.wait [#allocation6], 2048 }
 0x148   :  { %3330 = vsyncadd [#allocation6], 4294965248  ;;  %v3364_v19 = vmov 0   ;;  %v305_v20 = vld [vmem:[#allocation2 + $0x8] sm:$0xff]  ;;  %v304_v21 = vld [vmem:[#allocation2] sm:$0xff]  ;;  %v320_v36 = vpack.c.bf16 %v299_v18, %v299_v18  ;;  %v408_v15 = vlaneseq }
 0x149   :  { %353 = vmatprep.mubr.bf16.mxu1 %v3364_v19  ;;  %v307_v22 = vld [vmem:[#allocation2 + $0x18] sm:$0xff]  ;;  %321 = vmatprep.subr.bf16.mxu1 %v305_v20  ;;  %v306_v23 = vld [vmem:[#allocation2 + $0x10] sm:$0xff]  ;;  %v309_v24 = vld [vmem:[#allocation2 + $0x28] sm:$0xff]  ;;  %v3365_v13 = vmov 1966171168  }
 0x14a   :  { %322 = vmatpush1.bf16.msra.mxu1 %v304_v21  ;;  %v308_v25 = vld [vmem:[#allocation2 + $0x20] sm:$0xff]  ;;  %v311_v26 = vld [vmem:[#allocation2 + $0x38] sm:$0xff]  ;;  %v310_v27 = vld [vmem:[#allocation2 + $0x30] sm:$0xff]  ;;  %v406_v14 = vunpack.c.l.s4 %v3365_v13  ;;  %v3486_v17 = vshrl.u32 %v408_v15, 7 }
 0x14b   :  { %323 = vmatprep.subr.bf16.mxu1 %v307_v22  ;;  %v313_v28 = vld [vmem:[#allocation2 + $0x48] sm:$0xff]  ;;  %v312_v29 = vld [vmem:[#allocation2 + $0x40] sm:$0xff]  ;;  %v315_v30 = vld [vmem:[#allocation2 + $0x58] sm:$0xff] }
 0x14c   :  { %v314_v31 = vld [vmem:[#allocation2 + $0x50] sm:$0xff]  ;;  %v317_v32 = vld [vmem:[#allocation2 + $0x68] sm:$0xff]  ;;  %v316_v33 = vld [vmem:[#allocation2 + $0x60] sm:$0xff]  ;;  %v407_v16 = vunpack.c.0.s8 %v406_v14 }
 0x14d   :  { %v319_v34 = vld [vmem:[#allocation2 + $0x78] sm:$0xff]  ;;  %v318_v35 = vld [vmem:[#allocation2 + $0x70] sm:$0xff] }
 0x14e   :  { %324 = vmatpush1.bf16.msra.mxu1 %v306_v23  ;;  %v3489_v19 = vsub.s32 %v407_v16, %v3486_v17  ;;  %v362_v23 = vld [vmem:[#allocation9 + $0x1] sm:$0x3] }
 0x14f   :  { %325 = vmatprep.subr.bf16.mxu1 %v309_v24 }
 0x152   :  { %326 = vmatpush1.bf16.msra.mxu1 %v308_v25  ;;  %v3494_v25 = vsub.s32 0, %v3486_v17 }
 0x153   :  { %327 = vmatprep.subr.bf16.mxu1 %v311_v26  ;;  %v3497_v26 = vsub.s32 1, %v3486_v17 }
 0x156   :  { %328 = vmatpush1.bf16.msra.mxu1 %v310_v27 }
 0x157   :  { %329 = vmatprep.subr.bf16.mxu1 %v313_v28 }
 0x15a   :  { %330 = vmatpush1.bf16.msra.mxu1 %v312_v29 }
 0x15b   :  { %331 = vmatprep.subr.bf16.mxu1 %v315_v30 }
 0x15e   :  { %332 = vmatpush1.bf16.msra.mxu1 %v314_v31 }
 0x15f   :  { %333 = vmatprep.subr.bf16.mxu1 %v317_v32 }
 0x162   :  { %334 = vmatpush1.bf16.msra.mxu1 %v316_v33 }
 0x163   :  { %335 = vmatprep.subr.bf16.mxu1 %v319_v34 }
 0x166   :  { %336 = vmatpush1.bf16.msra.mxu1 %v318_v35 }
 0x169   :  { %354 = vmatmul.mubr.bf16.vlgmr.msra.gmra.mrb[0].mxu1 %v320_v36  ;;  %v363_v36 = vld [vmem:[#allocation9 + $0x3] sm:$0x3] }
 0x23c   :  { %v355_v37 = vpop.f32.mrb[0].mxu1 }
 0x23d   :  { %v364_v38 = vrot.slane %v355_v37, 4  ;;  %v378_v39 = vmul.f32 %v355_v37, %v355_v37  ;;  %v357_v40 = vpop.f32.mrb[1].mxu1 }
 0x23e   :  { %v370_v41 = vrot.slane %v357_v40, 4  ;;  %v379_v42 = vmul.f32 %v357_v40, %v357_v40  ;;  %v359_v43 = vpop.f32.mrb[2].mxu1 }
 0x23f   :  { %v365_v44 = vadd.f32 %v364_v38, %v355_v37  ;;  %v380_v45 = vrot.slane %v378_v39, 4  ;;  %v360_v46 = vpop.f32.mrb[3].mxu1 }
 0x240   :  { %v371_v47 = vadd.f32 %v370_v41, %v357_v40  ;;  %v386_v48 = vrot.slane %v379_v42, 4 }
 0x241   :  { %v366_v49 = vrot.slane %v365_v44, 2  ;;  %v381_v50 = vadd.f32 %v380_v45, %v378_v39 }
 0x242   :  { %v372_v51 = vrot.slane %v371_v47, 2  ;;  %v387_v52 = vadd.f32 %v386_v48, %v379_v42 }
 0x243   :  { %v367_v53 = vadd.f32 %v366_v49, %v365_v44  ;;  %v382_v54 = vrot.slane %v381_v50, 2 }
 0x244   :  { %v373_v55 = vadd.f32 %v372_v51, %v371_v47  ;;  %v388_v56 = vrot.slane %v387_v52, 2 }
 0x245   :  { %v368_v57 = vrot.slane %v367_v53, 1  ;;  %v383_v58 = vadd.f32 %v382_v54, %v381_v50 }
 0x246   :  { %v374_v59 = vrot.slane %v373_v55, 1  ;;  %v389_v60 = vadd.f32 %v388_v56, %v387_v52 }
 0x247   :  { %v369_v61 = vadd.f32 %v368_v57, %v367_v53  ;;  %v384_v62 = vrot.slane %v383_v58, 1 }
 0x248   :  { %v375_v63 = vadd.f32 %v374_v59, %v373_v55  ;;  %v390_v0 = vrot.slane %v389_v60, 1 }
 0x249   :  { %v376_v1 = vmul.f32 0.125, %v369_v61  ;;  %v385_v2 = vadd.f32 %v384_v62, %v383_v58 }
 0x24a   :  { %v377_v3 = vmul.f32 0.125, %v375_v63  ;;  %v391_v4 = vadd.f32 %v390_v0, %v389_v60 }
 0x24b   :  { %v392_v5 = vmul.f32 0.125, %v385_v2  ;;  %v394_v6 = vmul.f32 %v376_v1, %v376_v1 }
 0x24c   :  { %v393_v7 = vmul.f32 0.125, %v391_v4  ;;  %v395_v8 = vmul.f32 %v377_v3, %v377_v3 }
 0x24d   :  { %v396_v9 = vsub.f32 %v392_v5, %v394_v6 }
 0x24e   :  { %v397_v10 = vsub.f32 %v393_v7, %v395_v8 }
 0x24f   :  { %v398_v11 = vadd.f32 0.8, %v396_v9 }
 0x250   :  { %v399_v12 = vadd.f32 0.8, %v397_v10 }
 0x251   :  { %3239 = vrsqrt.f32 %v398_v11 }
 0x252   :  { %3241 = vrsqrt.f32 %v399_v12 }
 0x25b   :  { %v3240_v18 = vpop.eup %3239 }
 0x25c   :  { %v3242_v20 = vpop.eup %3241 }
 0x25d   :  { %v404_v21 = vcombine.low %v3240_v18, %v3242_v20 }
 0x25f   :  { %v411_v22 = vrot.slane %v404_v21, %v3489_v19 }
 0x261   :  { %v418_v24 = vrot.slane %v411_v22, %v3489_v19 }
 0x263   :  { %v420_v27 = vmul.f32 %v418_v24, %v362_v23 }
 0x265   :  { %v425_v28 = vrot.slane %v420_v27, %v3494_v25  ;;  %v429_v29 = vrot.slane %v420_v27, %v3497_v26 }
 0x267   :  { %v432_v30 = vmul.f32 %v425_v28, %v376_v1  ;;  %v433_v31 = vmul.f32 %v429_v29, %v377_v3  ;;  %v453_v32 = vmul.f32 %v425_v28, %v355_v37  ;;  %v454_v33 = vmul.f32 %v429_v29, %v357_v40 }
 0x269   :  { %v436_v34 = vcombine.low %v432_v30, %v433_v31 }
 0x26b   :  { %v443_v35 = vrot.slane %v436_v34, %v3489_v19 }
 0x26d   :  { %v450_v38 = vrot.slane %v443_v35, %v3489_v19 }
 0x26f   :  { %v452_v39 = vsub.f32 %v363_v36, %v450_v38 }
 0x271   :  { %v459_v41 = vrot.slane %v452_v39, %v3494_v25  ;;  %v463_v42 = vrot.slane %v452_v39, %v3497_v26 }
 0x273   :  { %v466_v43 = vadd.f32 %v459_v41, %v453_v32  ;;  %v467_v44 = vadd.f32 %v463_v42, %v454_v33 }
 0x275   :  { %v468_v45 = vmul.f32 0.2, %v466_v43  ;;  %v469_v46 = vmul.f32 0.2, %v467_v44 }
 0x277   :  { %v3505_v47 = vmax.f32 %v466_v43, %v468_v45  ;;  %v471_v48 = vmax.f32 %v467_v44, %v469_v46 }
 0x278   :  { %3331 = dma.done.wait [#allocation6 + $0x1], 8192 }
 0x279   :  { %3332 = vsyncadd [#allocation6 + $0x1], 4294959104  ;;  %v3507_v37 = vpack.c.bf16 %v471_v48, %v471_v48  ;;  %v477_v40 = vld [vmem:[#allocation3 + $0x8] sm:$0xff]  ;;  %v476_v49 = vld [vmem:[#allocation3] sm:$0xff]  ;;  %v3512_v18 = vpack.c.bf16 %v3505_v47, %v3505_v47 }
 0x27a   :  { %v481_v50 = vld [vmem:[#allocation3 + $0x28] sm:$0xff]  ;;  %542 = vmatprep.subr.bf16.mxu1 %v477_v40  ;;  %v480_v51 = vld [vmem:[#allocation3 + $0x20] sm:$0xff]  ;;  %v479_v16 = vld [vmem:[#allocation3 + $0x18] sm:$0xff] }
 0x27b   :  { %574 = vmatprep.mubr.bf16.mxu1 %v3507_v37  ;;  %543 = vmatpush1.bf16.msra.mxu1 %v476_v49  ;;  %v485_v52 = vld [vmem:[#allocation3 + $0x48] sm:$0xff]  ;;  %v484_v53 = vld [vmem:[#allocation3 + $0x40] sm:$0xff]  ;;  %v478_v20 = vld [vmem:[#allocation3 + $0x10] sm:$0xff] }
 0x27c   :  { %544 = vmatprep.subr.bf16.mxu1 %v481_v50  ;;  %v489_v54 = vld [vmem:[#allocation3 + $0x68] sm:$0xff]  ;;  %v488_v55 = vld [vmem:[#allocation3 + $0x60] sm:$0xff]  ;;  %v483_v21 = vld [vmem:[#allocation3 + $0x38] sm:$0xff] }
 0x27d   :  { %v493_v56 = vld [vmem:[#allocation3 + $0x88] sm:$0xff]  ;;  %v492_v57 = vld [vmem:[#allocation3 + $0x80] sm:$0xff]  ;;  %v482_v22 = vld [vmem:[#allocation3 + $0x30] sm:$0xff] }
 0x27e   :  { %v497_v58 = vld [vmem:[#allocation3 + $0xa8] sm:$0xff]  ;;  %v496_v59 = vld [vmem:[#allocation3 + $0xa0] sm:$0xff]  ;;  %v487_v23 = vld [vmem:[#allocation3 + $0x58] sm:$0xff] }
 0x27f   :  { %545 = vmatpush1.bf16.msra.mxu1 %v480_v51  ;;  %v501_v60 = vld [vmem:[#allocation3 + $0xc8] sm:$0xff]  ;;  %v500_v61 = vld [vmem:[#allocation3 + $0xc0] sm:$0xff]  ;;  %v486_v24 = vld [vmem:[#allocation3 + $0x50] sm:$0xff] }
 0x280   :  { %546 = vmatprep.subr.bf16.mxu1 %v485_v52  ;;  %v505_v62 = vld [vmem:[#allocation3 + $0xe8] sm:$0xff]  ;;  %v504_v63 = vld [vmem:[#allocation3 + $0xe0] sm:$0xff]  ;;  %v491_v27 = vld [vmem:[#allocation3 + $0x78] sm:$0xff] }
 0x281   :  { %v509_v0 = vld [vmem:[#allocation3 + $0x108] sm:$0xff]  ;;  %v508_v1 = vld [vmem:[#allocation3 + $0x100] sm:$0xff]  ;;  %v490_v28 = vld [vmem:[#allocation3 + $0x70] sm:$0xff] }
 0x282   :  { %v513_v2 = vld [vmem:[#allocation3 + $0x128] sm:$0xff]  ;;  %v512_v3 = vld [vmem:[#allocation3 + $0x120] sm:$0xff]  ;;  %v495_v29 = vld [vmem:[#allocation3 + $0x98] sm:$0xff] }
 0x283   :  { %547 = vmatpush1.bf16.msra.mxu1 %v484_v53  ;;  %v517_v4 = vld [vmem:[#allocation3 + $0x148] sm:$0xff]  ;;  %v516_v5 = vld [vmem:[#allocation3 + $0x140] sm:$0xff]  ;;  %v494_v30 = vld [vmem:[#allocation3 + $0x90] sm:$0xff] }
 0x284   :  { %548 = vmatprep.subr.bf16.mxu1 %v489_v54  ;;  %v521_v6 = vld [vmem:[#allocation3 + $0x168] sm:$0xff]  ;;  %v520_v7 = vld [vmem:[#allocation3 + $0x160] sm:$0xff]  ;;  %v499_v31 = vld [vmem:[#allocation3 + $0xb8] sm:$0xff] }
 0x285   :  { %v525_v8 = vld [vmem:[#allocation3 + $0x188] sm:$0xff]  ;;  %v524_v9 = vld [vmem:[#allocation3 + $0x180] sm:$0xff]  ;;  %v498_v32 = vld [vmem:[#allocation3 + $0xb0] sm:$0xff] }
 0x286   :  { %v529_v10 = vld [vmem:[#allocation3 + $0x1a8] sm:$0xff]  ;;  %v528_v11 = vld [vmem:[#allocation3 + $0x1a0] sm:$0xff]  ;;  %v503_v33 = vld [vmem:[#allocation3 + $0xd8] sm:$0xff] }
 0x287   :  { %549 = vmatpush1.bf16.msra.mxu1 %v488_v55  ;;  %v533_v12 = vld [vmem:[#allocation3 + $0x1c8] sm:$0xff]  ;;  %v532_v13 = vld [vmem:[#allocation3 + $0x1c0] sm:$0xff]  ;;  %v502_v34 = vld [vmem:[#allocation3 + $0xd0] sm:$0xff] }
 0x288   :  { %550 = vmatprep.subr.bf16.mxu1 %v493_v56  ;;  %v537_v14 = vld [vmem:[#allocation3 + $0x1e8] sm:$0xff]  ;;  %v536_v15 = vld [vmem:[#allocation3 + $0x1e0] sm:$0xff]  ;;  %v507_v35 = vld [vmem:[#allocation3 + $0xf8] sm:$0xff] }
 0x289   :  { %v506_v36 = vld [vmem:[#allocation3 + $0xf0] sm:$0xff]  ;;  %v511_v38 = vld [vmem:[#allocation3 + $0x118] sm:$0xff] }
 0x28a   :  { %v510_v39 = vld [vmem:[#allocation3 + $0x110] sm:$0xff]  ;;  %v515_v41 = vld [vmem:[#allocation3 + $0x138] sm:$0xff] }
 0x28b   :  { %551 = vmatpush1.bf16.msra.mxu1 %v492_v57  ;;  %v514_v42 = vld [vmem:[#allocation3 + $0x130] sm:$0xff]  ;;  %v519_v43 = vld [vmem:[#allocation3 + $0x158] sm:$0xff] }
 0x28c   :  { %552 = vmatprep.subr.bf16.mxu1 %v497_v58  ;;  %v518_v44 = vld [vmem:[#allocation3 + $0x150] sm:$0xff]  ;;  %v523_v45 = vld [vmem:[#allocation3 + $0x178] sm:$0xff] }
 0x28d   :  { %v522_v46 = vld [vmem:[#allocation3 + $0x170] sm:$0xff]  ;;  %v527_v47 = vld [vmem:[#allocation3 + $0x198] sm:$0xff] }
 0x28e   :  { %v526_v48 = vld [vmem:[#allocation3 + $0x190] sm:$0xff]  ;;  %v535_v49 = vld [vmem:[#allocation3 + $0x1d8] sm:$0xff] }
 0x28f   :  { %553 = vmatpush1.bf16.msra.mxu1 %v496_v59  ;;  %v530_v40 = vld [vmem:[#allocation3 + $0x1b0] sm:$0xff]  ;;  %v539_v51 = vld [vmem:[#allocation3 + $0x1f8] sm:$0xff] }
 0x290   :  { %554 = vmatprep.subr.bf16.mxu1 %v501_v60  ;;  %v534_v50 = vld [vmem:[#allocation3 + $0x1d0] sm:$0xff] }
 0x291   :  { %v538_v52 = vld [vmem:[#allocation3 + $0x1f0] sm:$0xff] }
 0x293   :  { %555 = vmatpush1.bf16.msra.mxu1 %v500_v61 }
 0x294   :  { %556 = vmatprep.subr.bf16.mxu1 %v505_v62 }
 0x297   :  { %557 = vmatpush1.bf16.msra.mxu1 %v504_v63 }
 0x298   :  { %558 = vmatprep.subr.bf16.mxu1 %v509_v0 }
 0x29b   :  { %559 = vmatpush1.bf16.msra.mxu1 %v508_v1 }
 0x29c   :  { %560 = vmatprep.subr.bf16.mxu1 %v513_v2 }
 0x29f   :  { %561 = vmatpush1.bf16.msra.mxu1 %v512_v3 }
 0x2a0   :  { %562 = vmatprep.subr.bf16.mxu1 %v517_v4 }
 0x2a3   :  { %563 = vmatpush1.bf16.msra.mxu1 %v516_v5 }
 0x2a4   :  { %564 = vmatprep.subr.bf16.mxu1 %v521_v6 }
 0x2a7   :  { %565 = vmatpush1.bf16.msra.mxu1 %v520_v7 }
 0x2a8   :  { %566 = vmatprep.subr.bf16.mxu1 %v525_v8 }
 0x2ab   :  { %567 = vmatpush1.bf16.msra.mxu1 %v524_v9 }
 0x2ac   :  { %568 = vmatprep.subr.bf16.mxu1 %v529_v10 }
 0x2af   :  { %569 = vmatpush1.bf16.msra.mxu1 %v528_v11 }
 0x2b0   :  { %570 = vmatprep.subr.bf16.mxu1 %v533_v12 }
 0x2b3   :  { %571 = vmatpush1.bf16.msra.mxu1 %v532_v13 }
 0x2b4   :  { %572 = vmatprep.subr.bf16.mxu1 %v537_v14 }
 0x2b7   :  { %573 = vmatpush1.bf16.msra.mxu1 %v536_v15 }
 0x2b8   :  { %583 = vmatprep.subr.bf16.mxu1 %v479_v16 }
 0x2ba   :  { %575 = vmatmul.mubr.bf16.vlgmr.msra.gmra.mrb[4].mxu1 %v3512_v18 }
 0x2bb   :  { %584 = vmatpush1.bf16.msra.mxu1 %v478_v20  ;;  %615 = vmatprep.mubr.bf16.mxu1 %v3507_v37  ;;  %v531_v37 = vld [vmem:[#allocation3 + $0x1b8] sm:$0xff] }
 0x2bc   :  { %585 = vmatprep.subr.bf16.mxu1 %v483_v21 }
 0x2bf   :  { %586 = vmatpush1.bf16.msra.mxu1 %v482_v22 }
 0x2c0   :  { %587 = vmatprep.subr.bf16.mxu1 %v487_v23 }
 0x2c3   :  { %588 = vmatpush1.bf16.msra.mxu1 %v486_v24 }
 0x2c4   :  { %589 = vmatprep.subr.bf16.mxu1 %v491_v27 }
 0x2c7   :  { %590 = vmatpush1.bf16.msra.mxu1 %v490_v28 }
 0x2c8   :  { %591 = vmatprep.subr.bf16.mxu1 %v495_v29 }
 0x2cb   :  { %592 = vmatpush1.bf16.msra.mxu1 %v494_v30 }
 0x2cc   :  { %593 = vmatprep.subr.bf16.mxu1 %v499_v31 }
 0x2cf   :  { %594 = vmatpush1.bf16.msra.mxu1 %v498_v32 }
 0x2d0   :  { %595 = vmatprep.subr.bf16.mxu1 %v503_v33 }
 0x2d3   :  { %596 = vmatpush1.bf16.msra.mxu1 %v502_v34 }
 0x2d4   :  { %597 = vmatprep.subr.bf16.mxu1 %v507_v35 }
 0x2d7   :  { %598 = vmatpush1.bf16.msra.mxu1 %v506_v36 }
 0x2d8   :  { %599 = vmatprep.subr.bf16.mxu1 %v511_v38 }
 0x2db   :  { %600 = vmatpush1.bf16.msra.mxu1 %v510_v39 }
 0x2dc   :  { %601 = vmatprep.subr.bf16.mxu1 %v515_v41 }
 0x2df   :  { %602 = vmatpush1.bf16.msra.mxu1 %v514_v42 }
 0x2e0   :  { %603 = vmatprep.subr.bf16.mxu1 %v519_v43 }
 0x2e3   :  { %604 = vmatpush1.bf16.msra.mxu1 %v518_v44 }
 0x2e4   :  { %605 = vmatprep.subr.bf16.mxu1 %v523_v45 }
 0x2e7   :  { %606 = vmatpush1.bf16.msra.mxu1 %v522_v46 }
 0x2e8   :  { %607 = vmatprep.subr.bf16.mxu1 %v527_v47 }
 0x2eb   :  { %608 = vmatpush1.bf16.msra.mxu1 %v526_v48 }
 0x2ec   :  { %609 = vmatprep.subr.bf16.mxu1 %v531_v37 }
 0x2ef   :  { %610 = vmatpush1.bf16.msra.mxu1 %v530_v40 }
 0x2f0   :  { %611 = vmatprep.subr.bf16.mxu1 %v535_v49 }
 0x2f3   :  { %612 = vmatpush1.bf16.msra.mxu1 %v534_v50 }
 0x2f4   :  { %613 = vmatprep.subr.bf16.mxu1 %v539_v51 }
 0x2f7   :  { %614 = vmatpush1.bf16.msra.mxu1 %v538_v52 }
 0x2fa   :  { %616 = vmatmul.mubr.bf16.vlgmr.msra.gmra.mrb[8].mxu1 %v3512_v18 }
 0x38d   :  { %v3517_v53 = vpop.f32.mrb[4].mxu1 }
 0x38e   :  { %v626_v54 = vrot.slane %v3517_v53, 4  ;;  %v654_v55 = vmul.f32 %v3517_v53, %v3517_v53  ;;  %v3522_v56 = vpop.f32.mrb[5].mxu1 }
 0x38f   :  { %v632_v57 = vrot.slane %v3522_v56, 4  ;;  %v655_v58 = vmul.f32 %v3522_v56, %v3522_v56  ;;  %v580_v59 = vpop.f32.mrb[6].mxu1 }
 0x390   :  { %v627_v60 = vadd.f32 %v626_v54, %v3517_v53  ;;  %v658_v61 = vrot.slane %v654_v55, 4  ;;  %v581_v62 = vpop.f32.mrb[7].mxu1 }
 0x391   :  { %v633_v63 = vadd.f32 %v632_v57, %v3522_v56  ;;  %v664_v0 = vrot.slane %v655_v58, 4 }
 0x392   :  { %v628_v1 = vrot.slane %v627_v60, 2  ;;  %v659_v2 = vadd.f32 %v658_v61, %v654_v55 }
 0x393   :  { %v634_v3 = vrot.slane %v633_v63, 2  ;;  %v665_v4 = vadd.f32 %v664_v0, %v655_v58 }
 0x394   :  { %v629_v5 = vadd.f32 %v628_v1, %v627_v60  ;;  %v660_v6 = vrot.slane %v659_v2, 2 }
 0x395   :  { %v635_v7 = vadd.f32 %v634_v3, %v633_v63  ;;  %v666_v8 = vrot.slane %v665_v4, 2 }
 0x396   :  { %v630_v9 = vrot.slane %v629_v5, 1  ;;  %v661_v10 = vadd.f32 %v660_v6, %v659_v2 }
 0x397   :  { %v636_v11 = vrot.slane %v635_v7, 1  ;;  %v667_v12 = vadd.f32 %v666_v8, %v665_v4 }
 0x398   :  { %v631_v13 = vadd.f32 %v630_v9, %v629_v5  ;;  %v662_v14 = vrot.slane %v661_v10, 1 }
 0x399   :  { %v637_v15 = vadd.f32 %v636_v11, %v635_v7  ;;  %v668_v16 = vrot.slane %v667_v12, 1 }
 0x39a   :  { %v3529_v18 = vmul.f32 0.125, %v631_v13  ;;  %v663_v20 = vadd.f32 %v662_v14, %v661_v10 }
 0x39b   :  { %v3531_v21 = vmul.f32 0.125, %v637_v15  ;;  %v669_v22 = vadd.f32 %v668_v16, %v667_v12 }
 0x39c   :  { %v682_v23 = vmul.f32 0.125, %v663_v20  ;;  %v686_v24 = vmul.f32 %v3529_v18, %v3529_v18 }
 0x39d   :  { %v683_v27 = vmul.f32 0.125, %v669_v22  ;;  %v687_v28 = vmul.f32 %v3531_v21, %v3531_v21 }
 0x39e   :  { %v690_v29 = vsub.f32 %v682_v23, %v686_v24  ;;  %v624_v24 = vld [vmem:[#allocation9 + $0x5] sm:$0xf] }
 0x39f   :  { %v691_v30 = vsub.f32 %v683_v27, %v687_v28  ;;  %v3547_v28 = vsub.s32 2, %v3486_v17 }
 0x3a0   :  { %v694_v31 = vadd.f32 0.8, %v690_v29  ;;  %v3550_v29 = vsub.s32 3, %v3486_v17 }
 0x3a1   :  { %v695_v32 = vadd.f32 0.8, %v691_v30 }
 0x3a2   :  { %3243 = vrsqrt.f32 %v694_v31 }
 0x3a3   :  { %3245 = vrsqrt.f32 %v695_v32 }
 0x3ac   :  { %v3244_v33 = vpop.eup %3243 }
 0x3ad   :  { %v3246_v34 = vpop.eup %3245 }
 0x3ae   :  { %v706_v35 = vcombine.low %v3244_v33, %v3246_v34 }
 0x3b0   :  { %v714_v20 = vrot.slane %v706_v35, %v3489_v19 }
 0x3cd   :  { %v3537_v36 = vpop.f32.mrb[8].mxu1 }
 0x3ce   :  { %v638_v38 = vrot.slane %v3537_v36, 4  ;;  %v656_v39 = vmul.f32 %v3537_v36, %v3537_v36  ;;  %v619_v41 = vpop.f32.mrb[9].mxu1 }
 0x3cf   :  { %v644_v42 = vrot.slane %v619_v41, 4  ;;  %v657_v43 = vmul.f32 %v619_v41, %v619_v41  ;;  %v621_v44 = vpop.f32.mrb[10].mxu1 }
 0x3d0   :  { %v639_v45 = vadd.f32 %v638_v38, %v3537_v36  ;;  %v670_v46 = vrot.slane %v656_v39, 4  ;;  %v622_v47 = vpop.f32.mrb[11].mxu1 }
 0x3d1   :  { %v645_v48 = vadd.f32 %v644_v42, %v619_v41  ;;  %v676_v37 = vrot.slane %v657_v43, 4 }
 0x3d2   :  { %v640_v40 = vrot.slane %v639_v45, 2  ;;  %v671_v49 = vadd.f32 %v670_v46, %v656_v39 }
 0x3d3   :  { %v646_v50 = vrot.slane %v645_v48, 2  ;;  %v677_v51 = vadd.f32 %v676_v37, %v657_v43 }
 0x3d4   :  { %v641_v52 = vadd.f32 %v640_v40, %v639_v45  ;;  %v672_v54 = vrot.slane %v671_v49, 2 }
 0x3d5   :  { %v647_v55 = vadd.f32 %v646_v50, %v645_v48  ;;  %v678_v57 = vrot.slane %v677_v51, 2  ;;  %v625_v50 = vld [vmem:[#allocation9 + $0x9] sm:$0xf] }
 0x3d6   :  { %v642_v58 = vrot.slane %v641_v52, 1  ;;  %v673_v59 = vadd.f32 %v672_v54, %v671_v49 }
 0x3d7   :  { %v648_v60 = vrot.slane %v647_v55, 1  ;;  %v679_v61 = vadd.f32 %v678_v57, %v677_v51 }
 0x3d8   :  { %v643_v62 = vadd.f32 %v642_v58, %v641_v52  ;;  %v674_v63 = vrot.slane %v673_v59, 1 }
 0x3d9   :  { %v649_v0 = vadd.f32 %v648_v60, %v647_v55  ;;  %v680_v1 = vrot.slane %v679_v61, 1 }
 0x3da   :  { %v652_v2 = vmul.f32 0.125, %v643_v62  ;;  %v675_v3 = vadd.f32 %v674_v63, %v673_v59 }
 0x3db   :  { %v653_v4 = vmul.f32 0.125, %v649_v0  ;;  %v681_v5 = vadd.f32 %v680_v1, %v679_v61 }
 0x3dc   :  { %v684_v6 = vmul.f32 0.125, %v675_v3  ;;  %v688_v7 = vmul.f32 %v652_v2, %v652_v2 }
 0x3dd   :  { %v685_v8 = vmul.f32 0.125, %v681_v5  ;;  %v689_v9 = vmul.f32 %v653_v4, %v653_v4 }
 0x3de   :  { %v692_v10 = vsub.f32 %v684_v6, %v688_v7 }
 0x3df   :  { %v693_v11 = vsub.f32 %v685_v8, %v689_v9 }
 0x3e0   :  { %v696_v12 = vadd.f32 0.8, %v692_v10 }
 0x3e1   :  { %v697_v13 = vadd.f32 0.8, %v693_v11 }
 0x3e2   :  { %3247 = vrsqrt.f32 %v696_v12 }
 0x3e3   :  { %3249 = vrsqrt.f32 %v697_v13 }
 0x3ec   :  { %v3248_v14 = vpop.eup %3247 }
 0x3ed   :  { %v3250_v15 = vpop.eup %3249 }
 0x3ee   :  { %v707_v16 = vcombine.low %v3248_v14, %v3250_v15 }
 0x3f0   :  { %v721_v22 = vrot.slane %v707_v16, %v3489_v19 }
 0x3f2   :  { %v722_v23 = vcombine.low %v714_v20, %v721_v22 }
 0x3f4   :  { %v729_v27 = vrot.slane %v722_v23, %v3489_v19 }
 0x3f6   :  { %v731_v30 = vmul.f32 %v729_v27, %v624_v24 }
 0x3f8   :  { %v736_v31 = vrot.slane %v731_v30, %v3494_v25  ;;  %v740_v32 = vrot.slane %v731_v30, %v3497_v26  ;;  %v744_v33 = vrot.slane %v731_v30, %v3547_v28  ;;  %v748_v34 = vrot.slane %v731_v30, %v3550_v29 }
 0x3fa   :  { %v753_v35 = vmul.f32 %v736_v31, %v3529_v18  ;;  %v754_v38 = vmul.f32 %v740_v32, %v3531_v21  ;;  %v755_v39 = vmul.f32 %v744_v33, %v652_v2  ;;  %v756_v42 = vmul.f32 %v748_v34, %v653_v4 }
 0x3fb   :  { %v787_v43 = vmul.f32 %v736_v31, %v3517_v53  ;;  %v788_v44 = vmul.f32 %v740_v32, %v3522_v56  ;;  %v789_v45 = vmul.f32 %v744_v33, %v3537_v36  ;;  %v790_v46 = vmul.f32 %v748_v34, %v619_v41 }
 0x3fc   :  { %v761_v47 = vcombine.low %v753_v35, %v754_v38  ;;  %v762_v48 = vcombine.low %v755_v39, %v756_v42 }
 0x3fe   :  { %v769_v37 = vrot.slane %v761_v47, %v3489_v19  ;;  %v776_v40 = vrot.slane %v762_v48, %v3489_v19 }
 0x400   :  { %v777_v49 = vcombine.low %v769_v37, %v776_v40 }
 0x402   :  { %v784_v18 = vrot.slane %v777_v49, %v3489_v19 }
 0x404   :  { %v786_v21 = vsub.f32 %v625_v50, %v784_v18 }
 0x406   :  { %v795_v51 = vrot.slane %v786_v21, %v3494_v25  ;;  %v799_v53 = vrot.slane %v786_v21, %v3497_v26  ;;  %v803_v56 = vrot.slane %v786_v21, %v3547_v28  ;;  %v807_v36 = vrot.slane %v786_v21, %v3550_v29 }
 0x408   :  { %v812_v41 = vadd.f32 %v795_v51, %v787_v43  ;;  %v813_v52 = vadd.f32 %v799_v53, %v788_v44  ;;  %v814_v54 = vadd.f32 %v803_v56, %v789_v45  ;;  %v815_v55 = vadd.f32 %v807_v36, %v790_v46 }
 0x40a   :  { %v816_v57 = vmul.f32 0.2, %v812_v41  ;;  %v817_v58 = vmul.f32 0.2, %v813_v52  ;;  %v818_v59 = vmul.f32 0.2, %v814_v54 }
 0x40b   :  { %v819_v60 = vmul.f32 0.2, %v815_v55 }
 0x40c   :  { %v3568_v61 = vmax.f32 %v812_v41, %v816_v57  ;;  %v821_v62 = vmax.f32 %v813_v52, %v817_v58  ;;  %v3570_v63 = vmax.f32 %v814_v54, %v818_v59 }
 0x40d   :  { %v3572_v0 = vmax.f32 %v815_v55, %v819_v60 }
 0x40e   :  { %3333 = dma.done.wait [#allocation6 + $0x2], 32768 }
 0x40f   :  { %3334 = vsyncadd [#allocation6 + $0x2], 4294934528  ;;  %v3574_v1 = vpack.c.bf16 %v821_v62, %v821_v62  ;;  %v829_v2 = vld [vmem:[#allocation4 + $0x8] sm:$0xff]  ;;  %v831_v3 = vld [vmem:[#allocation4 + $0x18] sm:$0xff] }
 0x410   :  { %v828_v4 = vld [vmem:[#allocation4] sm:$0xff]  ;;  %1088 = vmatprep.subr.bf16.mxu0 %v829_v2  ;;  %1170 = vmatprep.subr.bf16.mxu1 %v831_v3  ;;  %v830_v5 = vld [vmem:[#allocation4 + $0x10] sm:$0xff]  ;;  %v837_v6 = vld [vmem:[#allocation4 + $0x48] sm:$0xff] }
 0x411   :  { %1120 = vmatprep.mubr.bf16.mxu0 %v3574_v1  ;;  %1202 = vmatprep.mubr.bf16.mxu1 %v3574_v1  ;;  %v839_v7 = vld [vmem:[#allocation4 + $0x58] sm:$0xff]  ;;  %v836_v8 = vld [vmem:[#allocation4 + $0x40] sm:$0xff]  ;;  %v838_v9 = vld [vmem:[#allocation4 + $0x50] sm:$0xff] }
 0x412   :  { %1089 = vmatpush1.bf16.msra.mxu0 %v828_v4  ;;  %1171 = vmatpush1.bf16.msra.mxu1 %v830_v5  ;;  %v845_v10 = vld [vmem:[#allocation4 + $0x88] sm:$0xff]  ;;  %v847_v11 = vld [vmem:[#allocation4 + $0x98] sm:$0xff]  ;;  %v844_v12 = vld [vmem:[#allocation4 + $0x80] sm:$0xff] }
 0x413   :  { %1090 = vmatprep.subr.bf16.mxu0 %v837_v6  ;;  %1172 = vmatprep.subr.bf16.mxu1 %v839_v7  ;;  %v846_v13 = vld [vmem:[#allocation4 + $0x90] sm:$0xff]  ;;  %v853_v14 = vld [vmem:[#allocation4 + $0xc8] sm:$0xff]  ;;  %v855_v15 = vld [vmem:[#allocation4 + $0xd8] sm:$0xff] }
 0x414   :  { %v852_v16 = vld [vmem:[#allocation4 + $0xc0] sm:$0xff]  ;;  %v854_v20 = vld [vmem:[#allocation4 + $0xd0] sm:$0xff]  ;;  %v861_v22 = vld [vmem:[#allocation4 + $0x108] sm:$0xff] }
 0x415   :  { %v863_v23 = vld [vmem:[#allocation4 + $0x118] sm:$0xff]  ;;  %v860_v24 = vld [vmem:[#allocation4 + $0x100] sm:$0xff]  ;;  %v862_v27 = vld [vmem:[#allocation4 + $0x110] sm:$0xff] }
 0x416   :  { %1091 = vmatpush1.bf16.msra.mxu0 %v836_v8  ;;  %1173 = vmatpush1.bf16.msra.mxu1 %v838_v9  ;;  %v869_v30 = vld [vmem:[#allocation4 + $0x148] sm:$0xff]  ;;  %v871_v31 = vld [vmem:[#allocation4 + $0x158] sm:$0xff]  ;;  %v868_v32 = vld [vmem:[#allocation4 + $0x140] sm:$0xff] }
 0x417   :  { %1092 = vmatprep.subr.bf16.mxu0 %v845_v10  ;;  %1174 = vmatprep.subr.bf16.mxu1 %v847_v11  ;;  %v870_v33 = vld [vmem:[#allocation4 + $0x150] sm:$0xff]  ;;  %v877_v34 = vld [vmem:[#allocation4 + $0x188] sm:$0xff]  ;;  %v879_v35 = vld [vmem:[#allocation4 + $0x198] sm:$0xff] }
 0x418   :  { %v876_v38 = vld [vmem:[#allocation4 + $0x180] sm:$0xff]  ;;  %v878_v39 = vld [vmem:[#allocation4 + $0x190] sm:$0xff]  ;;  %v885_v42 = vld [vmem:[#allocation4 + $0x1c8] sm:$0xff] }
 0x419   :  { %v887_v43 = vld [vmem:[#allocation4 + $0x1d8] sm:$0xff]  ;;  %v884_v44 = vld [vmem:[#allocation4 + $0x1c0] sm:$0xff]  ;;  %v886_v45 = vld [vmem:[#allocation4 + $0x1d0] sm:$0xff] }
 0x41a   :  { %1093 = vmatpush1.bf16.msra.mxu0 %v844_v12  ;;  %1175 = vmatpush1.bf16.msra.mxu1 %v846_v13  ;;  %v893_v46 = vld [vmem:[#allocation4 + $0x208] sm:$0xff]  ;;  %v895_v47 = vld [vmem:[#allocation4 + $0x218] sm:$0xff]  ;;  %v892_v48 = vld [vmem:[#allocation4 + $0x200] sm:$0xff] }
 0x41b   :  { %1094 = vmatprep.subr.bf16.mxu0 %v853_v14  ;;  %1176 = vmatprep.subr.bf16.mxu1 %v855_v15  ;;  %v894_v37 = vld [vmem:[#allocation4 + $0x210] sm:$0xff]  ;;  %v901_v40 = vld [vmem:[#allocation4 + $0x248] sm:$0xff]  ;;  %v903_v49 = vld [vmem:[#allocation4 + $0x258] sm:$0xff]  ;;  %v3580_v14 = vpack.c.bf16 %v3568_v61, %v3568_v61 }
 0x41c   :  { %v900_v50 = vld [vmem:[#allocation4 + $0x240] sm:$0xff]  ;;  %v902_v18 = vld [vmem:[#allocation4 + $0x250] sm:$0xff]  ;;  %v909_v21 = vld [vmem:[#allocation4 + $0x288] sm:$0xff] }
 0x41d   :  { %v911_v51 = vld [vmem:[#allocation4 + $0x298] sm:$0xff]  ;;  %v908_v53 = vld [vmem:[#allocation4 + $0x280] sm:$0xff]  ;;  %v910_v56 = vld [vmem:[#allocation4 + $0x290] sm:$0xff] }
 0x41e   :  { %1095 = vmatpush1.bf16.msra.mxu0 %v852_v16  ;;  %1177 = vmatpush1.bf16.msra.mxu1 %v854_v20  ;;  %v917_v36 = vld [vmem:[#allocation4 + $0x2c8] sm:$0xff]  ;;  %v919_v41 = vld [vmem:[#allocation4 + $0x2d8] sm:$0xff]  ;;  %v916_v52 = vld [vmem:[#allocation4 + $0x2c0] sm:$0xff] }
 0x41f   :  { %1096 = vmatprep.subr.bf16.mxu0 %v861_v22  ;;  %1178 = vmatprep.subr.bf16.mxu1 %v863_v23  ;;  %v918_v54 = vld [vmem:[#allocation4 + $0x2d0] sm:$0xff]  ;;  %v925_v55 = vld [vmem:[#allocation4 + $0x308] sm:$0xff]  ;;  %v927_v57 = vld [vmem:[#allocation4 + $0x318] sm:$0xff]  ;;  %v3584_v23 = vpack.c.bf16 %v3572_v0, %v3572_v0 }
 0x420   :  { %v924_v58 = vld [vmem:[#allocation4 + $0x300] sm:$0xff]  ;;  %v926_v59 = vld [vmem:[#allocation4 + $0x310] sm:$0xff]  ;;  %v933_v60 = vld [vmem:[#allocation4 + $0x348] sm:$0xff] }
 0x421   :  { %v935_v62 = vld [vmem:[#allocation4 + $0x358] sm:$0xff]  ;;  %v932_v2 = vld [vmem:[#allocation4 + $0x340] sm:$0xff]  ;;  %v934_v3 = vld [vmem:[#allocation4 + $0x350] sm:$0xff] }
 0x422   :  { %1097 = vmatpush1.bf16.msra.mxu0 %v860_v24  ;;  %1179 = vmatpush1.bf16.msra.mxu1 %v862_v27  ;;  %v941_v4 = vld [vmem:[#allocation4 + $0x388] sm:$0xff]  ;;  %v943_v5 = vld [vmem:[#allocation4 + $0x398] sm:$0xff]  ;;  %v940_v6 = vld [vmem:[#allocation4 + $0x380] sm:$0xff] }
 0x423   :  { %1098 = vmatprep.subr.bf16.mxu0 %v869_v30  ;;  %1180 = vmatprep.subr.bf16.mxu1 %v871_v31  ;;  %v942_v7 = vld [vmem:[#allocation4 + $0x390] sm:$0xff]  ;;  %v949_v8 = vld [vmem:[#allocation4 + $0x3c8] sm:$0xff]  ;;  %v951_v9 = vld [vmem:[#allocation4 + $0x3d8] sm:$0xff] }
 0x424   :  { %v948_v10 = vld [vmem:[#allocation4 + $0x3c0] sm:$0xff]  ;;  %v950_v11 = vld [vmem:[#allocation4 + $0x3d0] sm:$0xff]  ;;  %v957_v12 = vld [vmem:[#allocation4 + $0x408] sm:$0xff] }
 0x425   :  { %v959_v13 = vld [vmem:[#allocation4 + $0x418] sm:$0xff]  ;;  %v956_v15 = vld [vmem:[#allocation4 + $0x400] sm:$0xff]  ;;  %v958_v16 = vld [vmem:[#allocation4 + $0x410] sm:$0xff] }
 0x426   :  { %1099 = vmatpush1.bf16.msra.mxu0 %v868_v32  ;;  %1181 = vmatpush1.bf16.msra.mxu1 %v870_v33  ;;  %v965_v20 = vld [vmem:[#allocation4 + $0x448] sm:$0xff]  ;;  %v967_v22 = vld [vmem:[#allocation4 + $0x458] sm:$0xff]  ;;  %v964_v61 = vld [vmem:[#allocation4 + $0x440] sm:$0xff] }
 0x427   :  { %1100 = vmatprep.subr.bf16.mxu0 %v877_v34  ;;  %1182 = vmatprep.subr.bf16.mxu1 %v879_v35  ;;  %v966_v24 = vld [vmem:[#allocation4 + $0x450] sm:$0xff]  ;;  %v973_v27 = vld [vmem:[#allocation4 + $0x488] sm:$0xff]  ;;  %v975_v30 = vld [vmem:[#allocation4 + $0x498] sm:$0xff] }
 0x428   :  { %v972_v0 = vld [vmem:[#allocation4 + $0x480] sm:$0xff]  ;;  %v974_v31 = vld [vmem:[#allocation4 + $0x490] sm:$0xff]  ;;  %v981_v32 = vld [vmem:[#allocation4 + $0x4c8] sm:$0xff] }
 0x429   :  { %v983_v33 = vld [vmem:[#allocation4 + $0x4d8] sm:$0xff]  ;;  %v980_v34 = vld [vmem:[#allocation4 + $0x4c0] sm:$0xff]  ;;  %v982_v35 = vld [vmem:[#allocation4 + $0x4d0] sm:$0xff] }
 0x42a   :  { %1101 = vmatpush1.bf16.msra.mxu0 %v876_v38  ;;  %1183 = vmatpush1.bf16.msra.mxu1 %v878_v39  ;;  %v989_v38 = vld [vmem:[#allocation4 + $0x508] sm:$0xff]  ;;  %v991_v39 = vld [vmem:[#allocation4 + $0x518] sm:$0xff] }
 0x42b   :  { %1102 = vmatprep.subr.bf16.mxu0 %v885_v42  ;;  %1184 = vmatprep.subr.bf16.mxu1 %v887_v43  ;;  %v988_v42 = vld [vmem:[#allocation4 + $0x500] sm:$0xff]  ;;  %v990_v43 = vld [vmem:[#allocation4 + $0x510] sm:$0xff] }
 0x42e   :  { %1103 = vmatpush1.bf16.msra.mxu0 %v884_v44  ;;  %1185 = vmatpush1.bf16.msra.mxu1 %v886_v45  ;;  %v997_v44 = vld [vmem:[#allocation4 + $0x548] sm:$0xff]  ;;  %v999_v45 = vld [vmem:[#allocation4 + $0x558] sm:$0xff] }
 0x42f   :  { %1104 = vmatprep.subr.bf16.mxu0 %v893_v46  ;;  %1186 = vmatprep.subr.bf16.mxu1 %v895_v47  ;;  %v996_v46 = vld [vmem:[#allocation4 + $0x540] sm:$0xff]  ;;  %v998_v47 = vld [vmem:[#allocation4 + $0x550] sm:$0xff] }
 0x432   :  { %1105 = vmatpush1.bf16.msra.mxu0 %v892_v48  ;;  %1187 = vmatpush1.bf16.msra.mxu1 %v894_v37  ;;  %v1005_v48 = vld [vmem:[#allocation4 + $0x588] sm:$0xff]  ;;  %v1007_v37 = vld [vmem:[#allocation4 + $0x598] sm:$0xff] }
 0x433   :  { %1106 = vmatprep.subr.bf16.mxu0 %v901_v40  ;;  %1188 = vmatprep.subr.bf16.mxu1 %v903_v49  ;;  %v1004_v40 = vld [vmem:[#allocation4 + $0x580] sm:$0xff]  ;;  %v1006_v49 = vld [vmem:[#allocation4 + $0x590] sm:$0xff] }
 0x436   :  { %1107 = vmatpush1.bf16.msra.mxu0 %v900_v50  ;;  %1189 = vmatpush1.bf16.msra.mxu1 %v902_v18  ;;  %v1013_v50 = vld [vmem:[#allocation4 + $0x5c8] sm:$0xff]  ;;  %v1015_v18 = vld [vmem:[#allocation4 + $0x5d8] sm:$0xff] }
 0x437   :  { %1108 = vmatprep.subr.bf16.mxu0 %v909_v21  ;;  %1190 = vmatprep.subr.bf16.mxu1 %v911_v51  ;;  %v1012_v21 = vld [vmem:[#allocation4 + $0x5c0] sm:$0xff]  ;;  %v1014_v51 = vld [vmem:[#allocation4 + $0x5d0] sm:$0xff] }
 0x43a   :  { %1109 = vmatpush1.bf16.msra.mxu0 %v908_v53  ;;  %1191 = vmatpush1.bf16.msra.mxu1 %v910_v56  ;;  %v1021_v53 = vld [vmem:[#allocation4 + $0x608] sm:$0xff]  ;;  %v1023_v56 = vld [vmem:[#allocation4 + $0x618] sm:$0xff] }
 0x43b   :  { %1110 = vmatprep.subr.bf16.mxu0 %v917_v36  ;;  %1192 = vmatprep.subr.bf16.mxu1 %v919_v41  ;;  %v1020_v36 = vld [vmem:[#allocation4 + $0x600] sm:$0xff]  ;;  %v1022_v41 = vld [vmem:[#allocation4 + $0x610] sm:$0xff] }
 0x43e   :  { %1111 = vmatpush1.bf16.msra.mxu0 %v916_v52  ;;  %1193 = vmatpush1.bf16.msra.mxu1 %v918_v54  ;;  %v1029_v52 = vld [vmem:[#allocation4 + $0x648] sm:$0xff]  ;;  %v1031_v54 = vld [vmem:[#allocation4 + $0x658] sm:$0xff] }
 0x43f   :  { %1112 = vmatprep.subr.bf16.mxu0 %v925_v55  ;;  %1194 = vmatprep.subr.bf16.mxu1 %v927_v57  ;;  %v1028_v55 = vld [vmem:[#allocation4 + $0x640] sm:$0xff]  ;;  %v1030_v57 = vld [vmem:[#allocation4 + $0x650] sm:$0xff] }
 0x442   :  { %1113 = vmatpush1.bf16.msra.mxu0 %v924_v58  ;;  %1195 = vmatpush1.bf16.msra.mxu1 %v926_v59  ;;  %v1037_v58 = vld [vmem:[#allocation4 + $0x688] sm:$0xff]  ;;  %v1039_v59 = vld [vmem:[#allocation4 + $0x698] sm:$0xff] }
 0x443   :  { %1114 = vmatprep.subr.bf16.mxu0 %v933_v60  ;;  %1196 = vmatprep.subr.bf16.mxu1 %v935_v62  ;;  %v1036_v60 = vld [vmem:[#allocation4 + $0x680] sm:$0xff]  ;;  %v1038_v62 = vld [vmem:[#allocation4 + $0x690] sm:$0xff] }
 0x446   :  { %1115 = vmatpush1.bf16.msra.mxu0 %v932_v2  ;;  %1197 = vmatpush1.bf16.msra.mxu1 %v934_v3  ;;  %v1045_v2 = vld [vmem:[#allocation4 + $0x6c8] sm:$0xff]  ;;  %v1047_v3 = vld [vmem:[#allocation4 + $0x6d8] sm:$0xff] }
 0x447   :  { %1116 = vmatprep.subr.bf16.mxu0 %v941_v4  ;;  %1198 = vmatprep.subr.bf16.mxu1 %v943_v5  ;;  %v1044_v4 = vld [vmem:[#allocation4 + $0x6c0] sm:$0xff]  ;;  %v1046_v5 = vld [vmem:[#allocation4 + $0x6d0] sm:$0xff] }
 0x44a   :  { %1117 = vmatpush1.bf16.msra.mxu0 %v940_v6  ;;  %1199 = vmatpush1.bf16.msra.mxu1 %v942_v7  ;;  %v1053_v6 = vld [vmem:[#allocation4 + $0x708] sm:$0xff]  ;;  %v1055_v7 = vld [vmem:[#allocation4 + $0x718] sm:$0xff] }
 0x44b   :  { %1118 = vmatprep.subr.bf16.mxu0 %v949_v8  ;;  %1200 = vmatprep.subr.bf16.mxu1 %v951_v9  ;;  %v1052_v8 = vld [vmem:[#allocation4 + $0x700] sm:$0xff]  ;;  %v1054_v9 = vld [vmem:[#allocation4 + $0x710] sm:$0xff] }
 0x44e   :  { %1119 = vmatpush1.bf16.msra.mxu0 %v948_v10  ;;  %1201 = vmatpush1.bf16.msra.mxu1 %v950_v11  ;;  %v1061_v10 = vld [vmem:[#allocation4 + $0x748] sm:$0xff]  ;;  %v1063_v11 = vld [vmem:[#allocation4 + $0x758] sm:$0xff] }
 0x44f   :  { %1129 = vmatprep.subr.bf16.mxu0 %v957_v12  ;;  %1211 = vmatprep.subr.bf16.mxu1 %v959_v13  ;;  %v1060_v12 = vld [vmem:[#allocation4 + $0x740] sm:$0xff]  ;;  %v1062_v13 = vld [vmem:[#allocation4 + $0x750] sm:$0xff] }
 0x451   :  { %1121 = vmatmul.mubr.bf16.vlgmr.msra.gmra.mrb[4].mxu0 %v3580_v14  ;;  %1203 = vmatmul.mubr.bf16.vlgmr.msra.gmra.mrb[12].mxu1 %v3580_v14 }
 0x452   :  { %1130 = vmatpush1.bf16.msra.mxu0 %v956_v15  ;;  %1212 = vmatpush1.bf16.msra.mxu1 %v958_v16  ;;  %v1069_v15 = vld [vmem:[#allocation4 + $0x788] sm:$0xff]  ;;  %v1071_v16 = vld [vmem:[#allocation4 + $0x798] sm:$0xff] }
 0x453   :  { %1131 = vmatprep.subr.bf16.mxu0 %v965_v20  ;;  %1213 = vmatprep.subr.bf16.mxu1 %v967_v22  ;;  %v1068_v20 = vld [vmem:[#allocation4 + $0x780] sm:$0xff]  ;;  %v1070_v22 = vld [vmem:[#allocation4 + $0x790] sm:$0xff] }
 0x454   :  { %1161 = vmatprep.mubr.bf16.mxu0 %v3584_v23  ;;  %1243 = vmatprep.mubr.bf16.mxu1 %v3584_v23 }
 0x456   :  { %1132 = vmatpush1.bf16.msra.mxu0 %v964_v61  ;;  %1214 = vmatpush1.bf16.msra.mxu1 %v966_v24  ;;  %v1077_v61 = vld [vmem:[#allocation4 + $0x7c8] sm:$0xff]  ;;  %v1079_v24 = vld [vmem:[#allocation4 + $0x7d8] sm:$0xff] }
 0x457   :  { %1133 = vmatprep.subr.bf16.mxu0 %v973_v27  ;;  %1215 = vmatprep.subr.bf16.mxu1 %v975_v30  ;;  %v1076_v27 = vld [vmem:[#allocation4 + $0x7c0] sm:$0xff]  ;;  %v1078_v30 = vld [vmem:[#allocation4 + $0x7d0] sm:$0xff] }
 0x45a   :  { %1134 = vmatpush1.bf16.msra.mxu0 %v972_v0  ;;  %1216 = vmatpush1.bf16.msra.mxu1 %v974_v31  ;;  %v833_v0 = vld [vmem:[#allocation4 + $0x28] sm:$0xff]  ;;  %v835_v31 = vld [vmem:[#allocation4 + $0x38] sm:$0xff] }
 0x45b   :  { %1135 = vmatprep.subr.bf16.mxu0 %v981_v32  ;;  %1217 = vmatprep.subr.bf16.mxu1 %v983_v33  ;;  %v3592_v32 = vpack.c.bf16 %v3570_v63, %v3570_v63  ;;  %v832_v33 = vld [vmem:[#allocation4 + $0x20] sm:$0xff]  ;;  %v849_v63 = vld [vmem:[#allocation4 + $0xa8] sm:$0xff] }
 0x45e   :  { %1136 = vmatpush1.bf16.msra.mxu0 %v980_v34  ;;  %1218 = vmatpush1.bf16.msra.mxu1 %v982_v35  ;;  %v834_v34 = vld [vmem:[#allocation4 + $0x30] sm:$0xff]  ;;  %v841_v35 = vld [vmem:[#allocation4 + $0x68] sm:$0xff] }
 0x45f   :  { %1137 = vmatprep.subr.bf16.mxu0 %v989_v38  ;;  %1219 = vmatprep.subr.bf16.mxu1 %v991_v39  ;;  %v843_v38 = vld [vmem:[#allocation4 + $0x78] sm:$0xff]  ;;  %v840_v39 = vld [vmem:[#allocation4 + $0x60] sm:$0xff] }
 0x462   :  { %1138 = vmatpush1.bf16.msra.mxu0 %v988_v42  ;;  %1220 = vmatpush1.bf16.msra.mxu1 %v990_v43  ;;  %v842_v42 = vld [vmem:[#allocation4 + $0x70] sm:$0xff]  ;;  %v851_v43 = vld [vmem:[#allocation4 + $0xb8] sm:$0xff] }
 0x463   :  { %1139 = vmatprep.subr.bf16.mxu0 %v997_v44  ;;  %1221 = vmatprep.subr.bf16.mxu1 %v999_v45  ;;  %v848_v44 = vld [vmem:[#allocation4 + $0xa0] sm:$0xff]  ;;  %v850_v45 = vld [vmem:[#allocation4 + $0xb0] sm:$0xff] }
 0x466   :  { %1140 = vmatpush1.bf16.msra.mxu0 %v996_v46  ;;  %1222 = vmatpush1.bf16.msra.mxu1 %v998_v47  ;;  %v857_v46 = vld [vmem:[#allocation4 + $0xe8] sm:$0xff]  ;;  %v859_v47 = vld [vmem:[#allocation4 + $0xf8] sm:$0xff] }
 0x467   :  { %1141 = vmatprep.subr.bf16.mxu0 %v1005_v48  ;;  %1223 = vmatprep.subr.bf16.mxu1 %v1007_v37  ;;  %v856_v48 = vld [vmem:[#allocation4 + $0xe0] sm:$0xff]  ;;  %v858_v37 = vld [vmem:[#allocation4 + $0xf0] sm:$0xff] }
 0x46a   :  { %1142 = vmatpush1.bf16.msra.mxu0 %v1004_v40  ;;  %1224 = vmatpush1.bf16.msra.mxu1 %v1006_v49  ;;  %v865_v40 = vld [vmem:[#allocation4 + $0x128] sm:$0xff]  ;;  %v867_v49 = vld [vmem:[#allocation4 + $0x138] sm:$0xff] }
 0x46b   :  { %1143 = vmatprep.subr.bf16.mxu0 %v1013_v50  ;;  %1225 = vmatprep.subr.bf16.mxu1 %v1015_v18  ;;  %v866_v50 = vld [vmem:[#allocation4 + $0x130] sm:$0xff]  ;;  %v873_v18 = vld [vmem:[#allocation4 + $0x168] sm:$0xff] }
 0x46e   :  { %1144 = vmatpush1.bf16.msra.mxu0 %v1012_v21  ;;  %1226 = vmatpush1.bf16.msra.mxu1 %v1014_v51  ;;  %v875_v21 = vld [vmem:[#allocation4 + $0x178] sm:$0xff]  ;;  %v872_v51 = vld [vmem:[#allocation4 + $0x160] sm:$0xff] }
 0x46f   :  { %1145 = vmatprep.subr.bf16.mxu0 %v1021_v53  ;;  %1227 = vmatprep.subr.bf16.mxu1 %v1023_v56  ;;  %v874_v53 = vld [vmem:[#allocation4 + $0x170] sm:$0xff]  ;;  %v881_v56 = vld [vmem:[#allocation4 + $0x1a8] sm:$0xff] }
 0x472   :  { %1146 = vmatpush1.bf16.msra.mxu0 %v1020_v36  ;;  %1228 = vmatpush1.bf16.msra.mxu1 %v1022_v41  ;;  %v883_v36 = vld [vmem:[#allocation4 + $0x1b8] sm:$0xff]  ;;  %v880_v41 = vld [vmem:[#allocation4 + $0x1a0] sm:$0xff] }
 0x473   :  { %1147 = vmatprep.subr.bf16.mxu0 %v1029_v52  ;;  %1229 = vmatprep.subr.bf16.mxu1 %v1031_v54  ;;  %v882_v52 = vld [vmem:[#allocation4 + $0x1b0] sm:$0xff]  ;;  %v889_v54 = vld [vmem:[#allocation4 + $0x1e8] sm:$0xff] }
 0x476   :  { %1148 = vmatpush1.bf16.msra.mxu0 %v1028_v55  ;;  %1230 = vmatpush1.bf16.msra.mxu1 %v1030_v57  ;;  %v891_v55 = vld [vmem:[#allocation4 + $0x1f8] sm:$0xff]  ;;  %v888_v57 = vld [vmem:[#allocation4 + $0x1e0] sm:$0xff] }
 0x477   :  { %1149 = vmatprep.subr.bf16.mxu0 %v1037_v58  ;;  %1231 = vmatprep.subr.bf16.mxu1 %v1039_v59  ;;  %v890_v58 = vld [vmem:[#allocation4 + $0x1f0] sm:$0xff]  ;;  %v897_v59 = vld [vmem:[#allocation4 + $0x228] sm:$0xff] }
 0x47a   :  { %1150 = vmatpush1.bf16.msra.mxu0 %v1036_v60  ;;  %1232 = vmatpush1.bf16.msra.mxu1 %v1038_v62  ;;  %v899_v60 = vld [vmem:[#allocation4 + $0x238] sm:$0xff]  ;;  %v896_v62 = vld [vmem:[#allocation4 + $0x220] sm:$0xff] }
 0x47b   :  { %1151 = vmatprep.subr.bf16.mxu0 %v1045_v2  ;;  %1233 = vmatprep.subr.bf16.mxu1 %v1047_v3  ;;  %v898_v2 = vld [vmem:[#allocation4 + $0x230] sm:$0xff]  ;;  %v905_v3 = vld [vmem:[#allocation4 + $0x268] sm:$0xff] }
 0x47e   :  { %1152 = vmatpush1.bf16.msra.mxu0 %v1044_v4  ;;  %1234 = vmatpush1.bf16.msra.mxu1 %v1046_v5  ;;  %v907_v4 = vld [vmem:[#allocation4 + $0x278] sm:$0xff]  ;;  %v904_v5 = vld [vmem:[#allocation4 + $0x260] sm:$0xff] }
 0x47f   :  { %1153 = vmatprep.subr.bf16.mxu0 %v1053_v6  ;;  %1235 = vmatprep.subr.bf16.mxu1 %v1055_v7  ;;  %v906_v6 = vld [vmem:[#allocation4 + $0x270] sm:$0xff]  ;;  %v913_v7 = vld [vmem:[#allocation4 + $0x2a8] sm:$0xff] }
 0x482   :  { %1154 = vmatpush1.bf16.msra.mxu0 %v1052_v8  ;;  %1236 = vmatpush1.bf16.msra.mxu1 %v1054_v9  ;;  %v915_v8 = vld [vmem:[#allocation4 + $0x2b8] sm:$0xff]  ;;  %v912_v9 = vld [vmem:[#allocation4 + $0x2a0] sm:$0xff] }
 0x483   :  { %1155 = vmatprep.subr.bf16.mxu0 %v1061_v10  ;;  %1237 = vmatprep.subr.bf16.mxu1 %v1063_v11  ;;  %v914_v10 = vld [vmem:[#allocation4 + $0x2b0] sm:$0xff]  ;;  %v921_v11 = vld [vmem:[#allocation4 + $0x2e8] sm:$0xff] }
 0x486   :  { %1156 = vmatpush1.bf16.msra.mxu0 %v1060_v12  ;;  %1238 = vmatpush1.bf16.msra.mxu1 %v1062_v13  ;;  %v923_v12 = vld [vmem:[#allocation4 + $0x2f8] sm:$0xff]  ;;  %v920_v13 = vld [vmem:[#allocation4 + $0x2e0] sm:$0xff] }
 0x487   :  { %1157 = vmatprep.subr.bf16.mxu0 %v1069_v15  ;;  %1239 = vmatprep.subr.bf16.mxu1 %v1071_v16  ;;  %v922_v15 = vld [vmem:[#allocation4 + $0x2f0] sm:$0xff]  ;;  %v929_v16 = vld [vmem:[#allocation4 + $0x328] sm:$0xff] }
 0x48a   :  { %1158 = vmatpush1.bf16.msra.mxu0 %v1068_v20  ;;  %1240 = vmatpush1.bf16.msra.mxu1 %v1070_v22  ;;  %v931_v20 = vld [vmem:[#allocation4 + $0x338] sm:$0xff]  ;;  %v928_v22 = vld [vmem:[#allocation4 + $0x320] sm:$0xff] }
 0x48b   :  { %1159 = vmatprep.subr.bf16.mxu0 %v1077_v61  ;;  %1241 = vmatprep.subr.bf16.mxu1 %v1079_v24  ;;  %v930_v61 = vld [vmem:[#allocation4 + $0x330] sm:$0xff]  ;;  %v937_v24 = vld [vmem:[#allocation4 + $0x368] sm:$0xff] }
 0x48e   :  { %1160 = vmatpush1.bf16.msra.mxu0 %v1076_v27  ;;  %1242 = vmatpush1.bf16.msra.mxu1 %v1078_v30  ;;  %v939_v27 = vld [vmem:[#allocation4 + $0x378] sm:$0xff]  ;;  %v936_v30 = vld [vmem:[#allocation4 + $0x360] sm:$0xff] }
 0x48f   :  { %1252 = vmatprep.subr.bf16.mxu0 %v833_v0  ;;  %1334 = vmatprep.subr.bf16.mxu1 %v835_v31  ;;  %v938_v0 = vld [vmem:[#allocation4 + $0x370] sm:$0xff]  ;;  %v945_v31 = vld [vmem:[#allocation4 + $0x3a8] sm:$0xff] }
 0x491   :  { %1162 = vmatmul.mubr.bf16.vlgmr.msra.gmra.mrb[4].mxu0 %v3592_v32  ;;  %1244 = vmatmul.mubr.bf16.vlgmr.msra.gmra.mrb[12].mxu1 %v3592_v32 }
 0x492   :  { %1253 = vmatpush1.bf16.msra.mxu0 %v832_v33  ;;  %1335 = vmatpush1.bf16.msra.mxu1 %v834_v34  ;;  %v947_v33 = vld [vmem:[#allocation4 + $0x3b8] sm:$0xff]  ;;  %v944_v34 = vld [vmem:[#allocation4 + $0x3a0] sm:$0xff] }
 0x493   :  { %1254 = vmatprep.subr.bf16.mxu0 %v841_v35  ;;  %1336 = vmatprep.subr.bf16.mxu1 %v843_v38  ;;  %v946_v35 = vld [vmem:[#allocation4 + $0x3b0] sm:$0xff]  ;;  %v953_v38 = vld [vmem:[#allocation4 + $0x3e8] sm:$0xff] }
 0x494   :  { %1284 = vmatprep.mubr.bf16.mxu0 %v3574_v1  ;;  %1366 = vmatprep.mubr.bf16.mxu1 %v3574_v1  ;;  %v864_v1 = vld [vmem:[#allocation4 + $0x120] sm:$0xff] }
 0x496   :  { %1255 = vmatpush1.bf16.msra.mxu0 %v840_v39  ;;  %1337 = vmatpush1.bf16.msra.mxu1 %v842_v42  ;;  %v955_v39 = vld [vmem:[#allocation4 + $0x3f8] sm:$0xff]  ;;  %v952_v42 = vld [vmem:[#allocation4 + $0x3e0] sm:$0xff] }
 0x497   :  { %1256 = vmatprep.subr.bf16.mxu0 %v849_v63  ;;  %1338 = vmatprep.subr.bf16.mxu1 %v851_v43  ;;  %v954_v63 = vld [vmem:[#allocation4 + $0x3f0] sm:$0xff]  ;;  %v961_v43 = vld [vmem:[#allocation4 + $0x428] sm:$0xff] }
 0x49a   :  { %1257 = vmatpush1.bf16.msra.mxu0 %v848_v44  ;;  %1339 = vmatpush1.bf16.msra.mxu1 %v850_v45  ;;  %v963_v44 = vld [vmem:[#allocation4 + $0x438] sm:$0xff]  ;;  %v960_v45 = vld [vmem:[#allocation4 + $0x420] sm:$0xff] }
 0x49b   :  { %1258 = vmatprep.subr.bf16.mxu0 %v857_v46  ;;  %1340 = vmatprep.subr.bf16.mxu1 %v859_v47  ;;  %v962_v46 = vld [vmem:[#allocation4 + $0x430] sm:$0xff]  ;;  %v969_v47 = vld [vmem:[#allocation4 + $0x468] sm:$0xff] }
 0x49e   :  { %1259 = vmatpush1.bf16.msra.mxu0 %v856_v48  ;;  %1341 = vmatpush1.bf16.msra.mxu1 %v858_v37  ;;  %v971_v48 = vld [vmem:[#allocation4 + $0x478] sm:$0xff]  ;;  %v968_v37 = vld [vmem:[#allocation4 + $0x460] sm:$0xff] }
 0x49f   :  { %1260 = vmatprep.subr.bf16.mxu0 %v865_v40  ;;  %1342 = vmatprep.subr.bf16.mxu1 %v867_v49  ;;  %v970_v40 = vld [vmem:[#allocation4 + $0x470] sm:$0xff]  ;;  %v977_v49 = vld [vmem:[#allocation4 + $0x4a8] sm:$0xff] }
 0x4a2   :  { %1261 = vmatpush1.bf16.msra.mxu0 %v864_v1  ;;  %1343 = vmatpush1.bf16.msra.mxu1 %v866_v50  ;;  %v979_v1 = vld [vmem:[#allocation4 + $0x4b8] sm:$0xff]  ;;  %v976_v50 = vld [vmem:[#allocation4 + $0x4a0] sm:$0xff] }
 0x4a3   :  { %1262 = vmatprep.subr.bf16.mxu0 %v873_v18  ;;  %1344 = vmatprep.subr.bf16.mxu1 %v875_v21  ;;  %v978_v18 = vld [vmem:[#allocation4 + $0x4b0] sm:$0xff]  ;;  %v985_v21 = vld [vmem:[#allocation4 + $0x4e8] sm:$0xff] }
 0x4a6   :  { %1263 = vmatpush1.bf16.msra.mxu0 %v872_v51  ;;  %1345 = vmatpush1.bf16.msra.mxu1 %v874_v53  ;;  %v984_v51 = vld [vmem:[#allocation4 + $0x4e0] sm:$0xff]  ;;  %v986_v53 = vld [vmem:[#allocation4 + $0x4f0] sm:$0xff] }
 0x4a7   :  { %1264 = vmatprep.subr.bf16.mxu0 %v881_v56  ;;  %1346 = vmatprep.subr.bf16.mxu1 %v883_v36  ;;  %v993_v56 = vld [vmem:[#allocation4 + $0x528] sm:$0xff]  ;;  %v995_v36 = vld [vmem:[#allocation4 + $0x538] sm:$0xff] }
 0x4aa   :  { %1265 = vmatpush1.bf16.msra.mxu0 %v880_v41  ;;  %1347 = vmatpush1.bf16.msra.mxu1 %v882_v52  ;;  %v994_v41 = vld [vmem:[#allocation4 + $0x530] sm:$0xff]  ;;  %v1001_v52 = vld [vmem:[#allocation4 + $0x568] sm:$0xff] }
 0x4ab   :  { %1266 = vmatprep.subr.bf16.mxu0 %v889_v54  ;;  %1348 = vmatprep.subr.bf16.mxu1 %v891_v55  ;;  %v1003_v54 = vld [vmem:[#allocation4 + $0x578] sm:$0xff]  ;;  %v1000_v55 = vld [vmem:[#allocation4 + $0x560] sm:$0xff] }
 0x4ae   :  { %1267 = vmatpush1.bf16.msra.mxu0 %v888_v57  ;;  %1349 = vmatpush1.bf16.msra.mxu1 %v890_v58  ;;  %v1002_v57 = vld [vmem:[#allocation4 + $0x570] sm:$0xff]  ;;  %v1009_v58 = vld [vmem:[#allocation4 + $0x5a8] sm:$0xff] }
 0x4af   :  { %1268 = vmatprep.subr.bf16.mxu0 %v897_v59  ;;  %1350 = vmatprep.subr.bf16.mxu1 %v899_v60  ;;  %v1011_v59 = vld [vmem:[#allocation4 + $0x5b8] sm:$0xff]  ;;  %v1008_v60 = vld [vmem:[#allocation4 + $0x5a0] sm:$0xff] }
 0x4b2   :  { %1269 = vmatpush1.bf16.msra.mxu0 %v896_v62  ;;  %1351 = vmatpush1.bf16.msra.mxu1 %v898_v2  ;;  %v1010_v62 = vld [vmem:[#allocation4 + $0x5b0] sm:$0xff]  ;;  %v1017_v2 = vld [vmem:[#allocation4 + $0x5e8] sm:$0xff] }
 0x4b3   :  { %1270 = vmatprep.subr.bf16.mxu0 %v905_v3  ;;  %1352 = vmatprep.subr.bf16.mxu1 %v907_v4  ;;  %v1019_v3 = vld [vmem:[#allocation4 + $0x5f8] sm:$0xff]  ;;  %v1016_v4 = vld [vmem:[#allocation4 + $0x5e0] sm:$0xff] }
 0x4b6   :  { %1271 = vmatpush1.bf16.msra.mxu0 %v904_v5  ;;  %1353 = vmatpush1.bf16.msra.mxu1 %v906_v6  ;;  %v1018_v5 = vld [vmem:[#allocation4 + $0x5f0] sm:$0xff]  ;;  %v1025_v6 = vld [vmem:[#allocation4 + $0x628] sm:$0xff] }
 0x4b7   :  { %1272 = vmatprep.subr.bf16.mxu0 %v913_v7  ;;  %1354 = vmatprep.subr.bf16.mxu1 %v915_v8  ;;  %v1027_v7 = vld [vmem:[#allocation4 + $0x638] sm:$0xff]  ;;  %v1024_v8 = vld [vmem:[#allocation4 + $0x620] sm:$0xff] }
 0x4ba   :  { %1273 = vmatpush1.bf16.msra.mxu0 %v912_v9  ;;  %1355 = vmatpush1.bf16.msra.mxu1 %v914_v10  ;;  %v1026_v9 = vld [vmem:[#allocation4 + $0x630] sm:$0xff]  ;;  %v1033_v10 = vld [vmem:[#allocation4 + $0x668] sm:$0xff] }
 0x4bb   :  { %1274 = vmatprep.subr.bf16.mxu0 %v921_v11  ;;  %1356 = vmatprep.subr.bf16.mxu1 %v923_v12  ;;  %v1035_v11 = vld [vmem:[#allocation4 + $0x678] sm:$0xff]  ;;  %v1032_v12 = vld [vmem:[#allocation4 + $0x660] sm:$0xff] }
 0x4be   :  { %1275 = vmatpush1.bf16.msra.mxu0 %v920_v13  ;;  %1357 = vmatpush1.bf16.msra.mxu1 %v922_v15  ;;  %v1034_v13 = vld [vmem:[#allocation4 + $0x670] sm:$0xff]  ;;  %v1041_v15 = vld [vmem:[#allocation4 + $0x6a8] sm:$0xff] }
 0x4bf   :  { %1276 = vmatprep.subr.bf16.mxu0 %v929_v16  ;;  %1358 = vmatprep.subr.bf16.mxu1 %v931_v20  ;;  %v1043_v16 = vld [vmem:[#allocation4 + $0x6b8] sm:$0xff]  ;;  %v1040_v20 = vld [vmem:[#allocation4 + $0x6a0] sm:$0xff] }
 0x4c2   :  { %1277 = vmatpush1.bf16.msra.mxu0 %v928_v22  ;;  %1359 = vmatpush1.bf16.msra.mxu1 %v930_v61  ;;  %v1042_v22 = vld [vmem:[#allocation4 + $0x6b0] sm:$0xff]  ;;  %v1049_v61 = vld [vmem:[#allocation4 + $0x6e8] sm:$0xff] }
 0x4c3   :  { %1278 = vmatprep.subr.bf16.mxu0 %v937_v24  ;;  %1360 = vmatprep.subr.bf16.mxu1 %v939_v27  ;;  %v1051_v24 = vld [vmem:[#allocation4 + $0x6f8] sm:$0xff]  ;;  %v1048_v27 = vld [vmem:[#allocation4 + $0x6e0] sm:$0xff] }
 0x4c6   :  { %1279 = vmatpush1.bf16.msra.mxu0 %v936_v30  ;;  %1361 = vmatpush1.bf16.msra.mxu1 %v938_v0  ;;  %v1050_v30 = vld [vmem:[#allocation4 + $0x6f0] sm:$0xff]  ;;  %v1057_v0 = vld [vmem:[#allocation4 + $0x728] sm:$0xff] }
 0x4c7   :  { %1280 = vmatprep.subr.bf16.mxu0 %v945_v31  ;;  %1362 = vmatprep.subr.bf16.mxu1 %v947_v33  ;;  %v1059_v31 = vld [vmem:[#allocation4 + $0x738] sm:$0xff]  ;;  %v1056_v33 = vld [vmem:[#allocation4 + $0x720] sm:$0xff] }
 0x4ca   :  { %1281 = vmatpush1.bf16.msra.mxu0 %v944_v34  ;;  %1363 = vmatpush1.bf16.msra.mxu1 %v946_v35  ;;  %v1058_v34 = vld [vmem:[#allocation4 + $0x730] sm:$0xff]  ;;  %v1065_v35 = vld [vmem:[#allocation4 + $0x768] sm:$0xff] }
 0x4cb   :  { %1282 = vmatprep.subr.bf16.mxu0 %v953_v38  ;;  %1364 = vmatprep.subr.bf16.mxu1 %v955_v39  ;;  %v1067_v38 = vld [vmem:[#allocation4 + $0x778] sm:$0xff]  ;;  %v1064_v39 = vld [vmem:[#allocation4 + $0x760] sm:$0xff] }
 0x4ce   :  { %1283 = vmatpush1.bf16.msra.mxu0 %v952_v42  ;;  %1365 = vmatpush1.bf16.msra.mxu1 %v954_v63  ;;  %v1066_v42 = vld [vmem:[#allocation4 + $0x770] sm:$0xff]  ;;  %v1073_v63 = vld [vmem:[#allocation4 + $0x7a8] sm:$0xff] }
 0x4cf   :  { %1293 = vmatprep.subr.bf16.mxu0 %v961_v43  ;;  %1375 = vmatprep.subr.bf16.mxu1 %v963_v44  ;;  %v1075_v43 = vld [vmem:[#allocation4 + $0x7b8] sm:$0xff]  ;;  %v1072_v44 = vld [vmem:[#allocation4 + $0x7a0] sm:$0xff] }
 0x4d1   :  { %1285 = vmatmul.mubr.bf16.vlgmr.msra.gmra.mrb[8].mxu0 %v3580_v14  ;;  %1367 = vmatmul.mubr.bf16.vlgmr.msra.gmra.mrb[16].mxu1 %v3580_v14  ;;  %v987_v14 = vld [vmem:[#allocation4 + $0x4f8] sm:$0xff] }
 0x4d2   :  { %1294 = vmatpush1.bf16.msra.mxu0 %v960_v45  ;;  %1376 = vmatpush1.bf16.msra.mxu1 %v962_v46  ;;  %v1074_v45 = vld [vmem:[#allocation4 + $0x7b0] sm:$0xff]  ;;  %v1081_v46 = vld [vmem:[#allocation4 + $0x7e8] sm:$0xff] }
 0x4d3   :  { %1295 = vmatprep.subr.bf16.mxu0 %v969_v47  ;;  %1377 = vmatprep.subr.bf16.mxu1 %v971_v48  ;;  %v1083_v47 = vld [vmem:[#allocation4 + $0x7f8] sm:$0xff]  ;;  %v1080_v48 = vld [vmem:[#allocation4 + $0x7e0] sm:$0xff] }
 0x4d4   :  { %1325 = vmatprep.mubr.bf16.mxu0 %v3584_v23  ;;  %1407 = vmatprep.mubr.bf16.mxu1 %v3584_v23  ;;  %v992_v23 = vld [vmem:[#allocation4 + $0x520] sm:$0xff] }
 0x4d6   :  { %1296 = vmatpush1.bf16.msra.mxu0 %v968_v37  ;;  %1378 = vmatpush1.bf16.msra.mxu1 %v970_v40  ;;  %v1082_v37 = vld [vmem:[#allocation4 + $0x7f0] sm:$0xff] }
 0x4d7   :  { %1297 = vmatprep.subr.bf16.mxu0 %v977_v49  ;;  %1379 = vmatprep.subr.bf16.mxu1 %v979_v1 }
 0x4da   :  { %1298 = vmatpush1.bf16.msra.mxu0 %v976_v50  ;;  %1380 = vmatpush1.bf16.msra.mxu1 %v978_v18 }
 0x4db   :  { %1299 = vmatprep.subr.bf16.mxu0 %v985_v21  ;;  %1381 = vmatprep.subr.bf16.mxu1 %v987_v14 }
 0x4de   :  { %1300 = vmatpush1.bf16.msra.mxu0 %v984_v51  ;;  %1382 = vmatpush1.bf16.msra.mxu1 %v986_v53 }
 0x4df   :  { %1301 = vmatprep.subr.bf16.mxu0 %v993_v56  ;;  %1383 = vmatprep.subr.bf16.mxu1 %v995_v36 }
 0x4e2   :  { %1302 = vmatpush1.bf16.msra.mxu0 %v992_v23  ;;  %1384 = vmatpush1.bf16.msra.mxu1 %v994_v41 }
 0x4e3   :  { %1303 = vmatprep.subr.bf16.mxu0 %v1001_v52  ;;  %1385 = vmatprep.subr.bf16.mxu1 %v1003_v54 }
 0x4e6   :  { %1304 = vmatpush1.bf16.msra.mxu0 %v1000_v55  ;;  %1386 = vmatpush1.bf16.msra.mxu1 %v1002_v57 }
 0x4e7   :  { %1305 = vmatprep.subr.bf16.mxu0 %v1009_v58  ;;  %1387 = vmatprep.subr.bf16.mxu1 %v1011_v59 }
 0x4ea   :  { %1306 = vmatpush1.bf16.msra.mxu0 %v1008_v60  ;;  %1388 = vmatpush1.bf16.msra.mxu1 %v1010_v62 }
 0x4eb   :  { %1307 = vmatprep.subr.bf16.mxu0 %v1017_v2  ;;  %1389 = vmatprep.subr.bf16.mxu1 %v1019_v3 }
 0x4ee   :  { %1308 = vmatpush1.bf16.msra.mxu0 %v1016_v4  ;;  %1390 = vmatpush1.bf16.msra.mxu1 %v1018_v5 }
 0x4ef   :  { %1309 = vmatprep.subr.bf16.mxu0 %v1025_v6  ;;  %1391 = vmatprep.subr.bf16.mxu1 %v1027_v7 }
 0x4f2   :  { %1310 = vmatpush1.bf16.msra.mxu0 %v1024_v8  ;;  %1392 = vmatpush1.bf16.msra.mxu1 %v1026_v9 }
 0x4f3   :  { %1311 = vmatprep.subr.bf16.mxu0 %v1033_v10  ;;  %1393 = vmatprep.subr.bf16.mxu1 %v1035_v11 }
 0x4f6   :  { %1312 = vmatpush1.bf16.msra.mxu0 %v1032_v12  ;;  %1394 = vmatpush1.bf16.msra.mxu1 %v1034_v13 }
 0x4f7   :  { %1313 = vmatprep.subr.bf16.mxu0 %v1041_v15  ;;  %1395 = vmatprep.subr.bf16.mxu1 %v1043_v16 }
 0x4fa   :  { %1314 = vmatpush1.bf16.msra.mxu0 %v1040_v20  ;;  %1396 = vmatpush1.bf16.msra.mxu1 %v1042_v22 }
 0x4fb   :  { %1315 = vmatprep.subr.bf16.mxu0 %v1049_v61  ;;  %1397 = vmatprep.subr.bf16.mxu1 %v1051_v24 }
 0x4fe   :  { %1316 = vmatpush1.bf16.msra.mxu0 %v1048_v27  ;;  %1398 = vmatpush1.bf16.msra.mxu1 %v1050_v30 }
 0x4ff   :  { %1317 = vmatprep.subr.bf16.mxu0 %v1057_v0  ;;  %1399 = vmatprep.subr.bf16.mxu1 %v1059_v31 }
 0x502   :  { %1318 = vmatpush1.bf16.msra.mxu0 %v1056_v33  ;;  %1400 = vmatpush1.bf16.msra.mxu1 %v1058_v34 }
 0x503   :  { %1319 = vmatprep.subr.bf16.mxu0 %v1065_v35  ;;  %1401 = vmatprep.subr.bf16.mxu1 %v1067_v38 }
 0x506   :  { %1320 = vmatpush1.bf16.msra.mxu0 %v1064_v39  ;;  %1402 = vmatpush1.bf16.msra.mxu1 %v1066_v42 }
 0x507   :  { %1321 = vmatprep.subr.bf16.mxu0 %v1073_v63  ;;  %1403 = vmatprep.subr.bf16.mxu1 %v1075_v43 }
 0x50a   :  { %1322 = vmatpush1.bf16.msra.mxu0 %v1072_v44  ;;  %1404 = vmatpush1.bf16.msra.mxu1 %v1074_v45 }
 0x50b   :  { %1323 = vmatprep.subr.bf16.mxu0 %v1081_v46  ;;  %1405 = vmatprep.subr.bf16.mxu1 %v1083_v47 }
 0x50e   :  { %1324 = vmatpush1.bf16.msra.mxu0 %v1080_v48  ;;  %1406 = vmatpush1.bf16.msra.mxu1 %v1082_v37 }
 0x511   :  { %1326 = vmatmul.mubr.bf16.vlgmr.msra.gmra.mrb[8].mxu0 %v3592_v32  ;;  %1408 = vmatmul.mubr.bf16.vlgmr.msra.gmra.mrb[16].mxu1 %v3592_v32 }
 0x564   :  { %v3604_v40 = vpop.f32.mrb[4].mxu0  ;;  %v3606_v49 = vpop.f32.mrb[12].mxu1 }
 0x565   :  { %v1418_v1 = vrot.slane %v3604_v40, 4  ;;  %v1474_v50 = vmul.f32 %v3604_v40, %v3604_v40  ;;  %v1430_v18 = vrot.slane %v3606_v49, 4  ;;  %v1476_v21 = vmul.f32 %v3606_v49, %v3606_v49  ;;  %v3614_v14 = vpop.f32.mrb[5].mxu0  ;;  %v3616_v51 = vpop.f32.mrb[13].mxu1 }
 0x566   :  { %v1424_v32 = vrot.slane %v3614_v14, 4  ;;  %v1475_v53 = vmul.f32 %v3614_v14, %v3614_v14  ;;  %v1436_v56 = vrot.slane %v3616_v51, 4  ;;  %v1477_v36 = vmul.f32 %v3616_v51, %v3616_v51  ;;  %v1167_v23 = vpop.f32.mrb[6].mxu0  ;;  %v1249_v41 = vpop.f32.mrb[14].mxu1 }
 0x567   :  { %v1419_v52 = vadd.f32 %v1418_v1, %v3604_v40  ;;  %v1482_v54 = vrot.slane %v1474_v50, 4  ;;  %v1431_v55 = vadd.f32 %v1430_v18, %v3606_v49  ;;  %v1494_v57 = vrot.slane %v1476_v21, 4  ;;  %v1168_v58 = vpop.f32.mrb[7].mxu0  ;;  %v1250_v59 = vpop.f32.mrb[15].mxu1 }
 0x568   :  { %v1425_v60 = vadd.f32 %v1424_v32, %v3614_v14  ;;  %v1488_v62 = vrot.slane %v1475_v53, 4  ;;  %v1437_v2 = vadd.f32 %v1436_v56, %v3616_v51  ;;  %v1500_v3 = vrot.slane %v1477_v36, 4 }
 0x569   :  { %v1420_v4 = vrot.slane %v1419_v52, 2  ;;  %v1483_v5 = vadd.f32 %v1482_v54, %v1474_v50  ;;  %v1432_v6 = vrot.slane %v1431_v55, 2  ;;  %v1495_v7 = vadd.f32 %v1494_v57, %v1476_v21 }
 0x56a   :  { %v1426_v8 = vrot.slane %v1425_v60, 2  ;;  %v1489_v9 = vadd.f32 %v1488_v62, %v1475_v53  ;;  %v1438_v10 = vrot.slane %v1437_v2, 2  ;;  %v1501_v11 = vadd.f32 %v1500_v3, %v1477_v36 }
 0x56b   :  { %v1421_v12 = vadd.f32 %v1420_v4, %v1419_v52  ;;  %v1484_v13 = vrot.slane %v1483_v5, 2  ;;  %v1433_v15 = vadd.f32 %v1432_v6, %v1431_v55  ;;  %v1496_v16 = vrot.slane %v1495_v7, 2 }
 0x56c   :  { %v1427_v20 = vadd.f32 %v1426_v8, %v1425_v60  ;;  %v1490_v22 = vrot.slane %v1489_v9, 2  ;;  %v1439_v61 = vadd.f32 %v1438_v10, %v1437_v2  ;;  %v1502_v24 = vrot.slane %v1501_v11, 2 }
 0x56d   :  { %v1422_v27 = vrot.slane %v1421_v12, 1  ;;  %v1485_v30 = vadd.f32 %v1484_v13, %v1483_v5  ;;  %v1434_v0 = vrot.slane %v1433_v15, 1  ;;  %v1497_v31 = vadd.f32 %v1496_v16, %v1495_v7 }
 0x56e   :  { %v1428_v33 = vrot.slane %v1427_v20, 1  ;;  %v1491_v34 = vadd.f32 %v1490_v22, %v1489_v9  ;;  %v1440_v35 = vrot.slane %v1439_v61, 1  ;;  %v1503_v38 = vadd.f32 %v1502_v24, %v1501_v11 }
 0x56f   :  { %v1423_v39 = vadd.f32 %v1422_v27, %v1421_v12  ;;  %v1486_v42 = vrot.slane %v1485_v30, 1  ;;  %v1435_v63 = vadd.f32 %v1434_v0, %v1433_v15  ;;  %v1498_v43 = vrot.slane %v1497_v31, 1 }
 0x570   :  { %v1429_v44 = vadd.f32 %v1428_v33, %v1427_v20  ;;  %v1492_v45 = vrot.slane %v1491_v34, 1  ;;  %v1441_v46 = vadd.f32 %v1440_v35, %v1439_v61  ;;  %v1504_v47 = vrot.slane %v1503_v38, 1 }
 0x571   :  { %v3628_v48 = vmul.f32 0.125, %v1423_v39  ;;  %v1487_v37 = vadd.f32 %v1486_v42, %v1485_v30  ;;  %v3630_v1 = vmul.f32 0.125, %v1435_v63  ;;  %v1499_v50 = vadd.f32 %v1498_v43, %v1497_v31 }
 0x572   :  { %v3632_v18 = vmul.f32 0.125, %v1429_v44  ;;  %v1493_v21 = vadd.f32 %v1492_v45, %v1491_v34  ;;  %v3634_v32 = vmul.f32 0.125, %v1441_v46  ;;  %v1505_v53 = vadd.f32 %v1504_v47, %v1503_v38 }
 0x573   :  { %v1530_v56 = vmul.f32 0.125, %v1487_v37  ;;  %v1538_v36 = vmul.f32 %v3628_v48, %v3628_v48  ;;  %v1532_v23 = vmul.f32 0.125, %v1499_v50  ;;  %v1540_v41 = vmul.f32 %v3630_v1, %v3630_v1 }
 0x574   :  { %v1531_v52 = vmul.f32 0.125, %v1493_v21  ;;  %v1539_v54 = vmul.f32 %v3632_v18, %v3632_v18  ;;  %v1533_v55 = vmul.f32 0.125, %v1505_v53  ;;  %v1541_v57 = vmul.f32 %v3634_v32, %v3634_v32 }
 0x575   :  { %v1546_v58 = vsub.f32 %v1530_v56, %v1538_v36  ;;  %v1548_v59 = vsub.f32 %v1532_v23, %v1540_v41 }
 0x576   :  { %v1547_v60 = vsub.f32 %v1531_v52, %v1539_v54  ;;  %v1549_v62 = vsub.f32 %v1533_v55, %v1541_v57 }
 0x577   :  { %v1554_v2 = vadd.f32 0.8, %v1546_v58  ;;  %v1556_v3 = vadd.f32 0.8, %v1548_v59 }
 0x578   :  { %v1555_v4 = vadd.f32 0.8, %v1547_v60  ;;  %v1557_v5 = vadd.f32 0.8, %v1549_v62 }
 0x579   :  { %3251 = vrsqrt.f32 %v1554_v2 }
 0x57a   :  { %3253 = vrsqrt.f32 %v1556_v3 }
 0x57b   :  { %3255 = vrsqrt.f32 %v1555_v4 }
 0x57c   :  { %3257 = vrsqrt.f32 %v1557_v5 }
 0x583   :  { %v3252_v6 = vpop.eup %3251 }
 0x584   :  { %v3254_v7 = vpop.eup %3253 }
 0x585   :  { %v3256_v8 = vpop.eup %3255 }
 0x586   :  { %v3258_v9 = vpop.eup %3257  ;;  %v1578_v10 = vcombine.low %v3252_v6, %v3256_v8 }
 0x587   :  { %v1579_v11 = vcombine.low %v3254_v7, %v3258_v9 }
 0x588   :  { %v3645_v12 = vrot.slane %v1578_v10, %v3489_v19 }
 0x589   :  { %v3648_v13 = vrot.slane %v1579_v11, %v3489_v19 }
 0x58b   :  { %v1610_v15 = vcombine.low %v3645_v12, %v3648_v13 }
 0x5e4   :  { %v3652_v16 = vpop.f32.mrb[8].mxu0  ;;  %v3654_v20 = vpop.f32.mrb[16].mxu1 }
 0x5e5   :  { %v1442_v22 = vrot.slane %v3652_v16, 4  ;;  %v1478_v61 = vmul.f32 %v3652_v16, %v3652_v16  ;;  %v1454_v24 = vrot.slane %v3654_v20, 4  ;;  %v1480_v27 = vmul.f32 %v3654_v20, %v3654_v20  ;;  %v3662_v30 = vpop.f32.mrb[9].mxu0  ;;  %v3664_v0 = vpop.f32.mrb[17].mxu1 }
 0x5e6   :  { %v1448_v31 = vrot.slane %v3662_v30, 4  ;;  %v1479_v33 = vmul.f32 %v3662_v30, %v3662_v30  ;;  %v1460_v34 = vrot.slane %v3664_v0, 4  ;;  %v1481_v35 = vmul.f32 %v3664_v0, %v3664_v0  ;;  %v1331_v38 = vpop.f32.mrb[10].mxu0  ;;  %v1413_v39 = vpop.f32.mrb[18].mxu1 }
 0x5e7   :  { %v1443_v42 = vadd.f32 %v1442_v22, %v3652_v16  ;;  %v1506_v63 = vrot.slane %v1478_v61, 4  ;;  %v1455_v43 = vadd.f32 %v1454_v24, %v3654_v20  ;;  %v1518_v44 = vrot.slane %v1480_v27, 4  ;;  %v1332_v45 = vpop.f32.mrb[11].mxu0  ;;  %v1414_v46 = vpop.f32.mrb[19].mxu1 }
 0x5e8   :  { %v1449_v47 = vadd.f32 %v1448_v31, %v3662_v30  ;;  %v1512_v37 = vrot.slane %v1479_v33, 4  ;;  %v1461_v50 = vadd.f32 %v1460_v34, %v3664_v0  ;;  %v1524_v21 = vrot.slane %v1481_v35, 4 }
 0x5e9   :  { %v1444_v53 = vrot.slane %v1443_v42, 2  ;;  %v1507_v56 = vadd.f32 %v1506_v63, %v1478_v61  ;;  %v1456_v36 = vrot.slane %v1455_v43, 2  ;;  %v1519_v23 = vadd.f32 %v1518_v44, %v1480_v27 }
 0x5ea   :  { %v1450_v41 = vrot.slane %v1449_v47, 2  ;;  %v1513_v52 = vadd.f32 %v1512_v37, %v1479_v33  ;;  %v1462_v54 = vrot.slane %v1461_v50, 2  ;;  %v1525_v55 = vadd.f32 %v1524_v21, %v1481_v35 }
 0x5eb   :  { %v1445_v57 = vadd.f32 %v1444_v53, %v1443_v42  ;;  %v1508_v58 = vrot.slane %v1507_v56, 2  ;;  %v1457_v59 = vadd.f32 %v1456_v36, %v1455_v43  ;;  %v1520_v60 = vrot.slane %v1519_v23, 2 }
 0x5ec   :  { %v1451_v62 = vadd.f32 %v1450_v41, %v1449_v47  ;;  %v1514_v2 = vrot.slane %v1513_v52, 2  ;;  %v1463_v3 = vadd.f32 %v1462_v54, %v1461_v50  ;;  %v1526_v4 = vrot.slane %v1525_v55, 2 }
 0x5ed   :  { %v1446_v5 = vrot.slane %v1445_v57, 1  ;;  %v1509_v6 = vadd.f32 %v1508_v58, %v1507_v56  ;;  %v1458_v7 = vrot.slane %v1457_v59, 1  ;;  %v1521_v8 = vadd.f32 %v1520_v60, %v1519_v23 }
 0x5ee   :  { %v1452_v9 = vrot.slane %v1451_v62, 1  ;;  %v1515_v10 = vadd.f32 %v1514_v2, %v1513_v52  ;;  %v1464_v11 = vrot.slane %v1463_v3, 1  ;;  %v1527_v22 = vadd.f32 %v1526_v4, %v1525_v55 }
 0x5ef   :  { %v1447_v61 = vadd.f32 %v1446_v5, %v1445_v57  ;;  %v1510_v24 = vrot.slane %v1509_v6, 1  ;;  %v1459_v27 = vadd.f32 %v1458_v7, %v1457_v59  ;;  %v1522_v31 = vrot.slane %v1521_v8, 1 }
 0x5f0   :  { %v1453_v33 = vadd.f32 %v1452_v9, %v1451_v62  ;;  %v1516_v34 = vrot.slane %v1515_v10, 1  ;;  %v1465_v35 = vadd.f32 %v1464_v11, %v1463_v3  ;;  %v1528_v38 = vrot.slane %v1527_v22, 1 }
 0x5f1   :  { %v1470_v39 = vmul.f32 0.125, %v1447_v61  ;;  %v1511_v42 = vadd.f32 %v1510_v24, %v1509_v6  ;;  %v1472_v63 = vmul.f32 0.125, %v1459_v27  ;;  %v1523_v43 = vadd.f32 %v1522_v31, %v1521_v8  ;;  %v1416_v61 = vld [vmem:[#allocation9 + $0xd] sm:$0xff] }
 0x5f2   :  { %v1471_v44 = vmul.f32 0.125, %v1453_v33  ;;  %v1517_v45 = vadd.f32 %v1516_v34, %v1515_v10  ;;  %v1473_v46 = vmul.f32 0.125, %v1465_v35  ;;  %v1529_v47 = vadd.f32 %v1528_v38, %v1527_v22 }
 0x5f3   :  { %v1534_v37 = vmul.f32 0.125, %v1511_v42  ;;  %v1542_v50 = vmul.f32 %v1470_v39, %v1470_v39  ;;  %v1536_v21 = vmul.f32 0.125, %v1523_v43  ;;  %v1544_v53 = vmul.f32 %v1472_v63, %v1472_v63 }
 0x5f4   :  { %v1535_v56 = vmul.f32 0.125, %v1517_v45  ;;  %v1543_v36 = vmul.f32 %v1471_v44, %v1471_v44  ;;  %v1537_v23 = vmul.f32 0.125, %v1529_v47  ;;  %v1545_v41 = vmul.f32 %v1473_v46, %v1473_v46 }
 0x5f5   :  { %v1550_v52 = vsub.f32 %v1534_v37, %v1542_v50  ;;  %v1552_v54 = vsub.f32 %v1536_v21, %v1544_v53  ;;  %v1618_v11 = vrot.slane %v1610_v15, %v3489_v19  ;;  %v3684_v27 = vsub.s32 4, %v3486_v17 }
 0x5f6   :  { %v1551_v55 = vsub.f32 %v1535_v56, %v1543_v36  ;;  %v1553_v57 = vsub.f32 %v1537_v23, %v1545_v41  ;;  %v3687_v31 = vsub.s32 5, %v3486_v17  ;;  %v3690_v33 = vsub.s32 6, %v3486_v17 }
 0x5f7   :  { %v1558_v58 = vadd.f32 0.8, %v1550_v52  ;;  %v1560_v59 = vadd.f32 0.8, %v1552_v54  ;;  %v1660_v34 = vsub.s32 7, %v3486_v17 }
 0x5f8   :  { %v1559_v60 = vadd.f32 0.8, %v1551_v55  ;;  %v1561_v62 = vadd.f32 0.8, %v1553_v57 }
 0x5f9   :  { %3259 = vrsqrt.f32 %v1558_v58 }
 0x5fa   :  { %3261 = vrsqrt.f32 %v1560_v59 }
 0x5fb   :  { %3263 = vrsqrt.f32 %v1559_v60 }
 0x5fc   :  { %3265 = vrsqrt.f32 %v1561_v62  ;;  %v1417_v62 = vld [vmem:[#allocation9 + $0x15] sm:$0xff] }
 0x603   :  { %v3260_v2 = vpop.eup %3259 }
 0x604   :  { %v3262_v3 = vpop.eup %3261 }
 0x605   :  { %v3264_v4 = vpop.eup %3263 }
 0x606   :  { %v3266_v5 = vpop.eup %3265  ;;  %v1580_v6 = vcombine.low %v3260_v2, %v3264_v4 }
 0x607   :  { %v1581_v7 = vcombine.low %v3262_v3, %v3266_v5 }
 0x608   :  { %v1602_v8 = vrot.slane %v1580_v6, %v3489_v19 }
 0x609   :  { %v1609_v9 = vrot.slane %v1581_v7, %v3489_v19 }
 0x60b   :  { %v1611_v10 = vcombine.low %v1602_v8, %v1609_v9 }
 0x60d   :  { %v1625_v22 = vrot.slane %v1611_v10, %v3489_v19 }
 0x60f   :  { %v1626_v24 = vcombine.low %v1618_v11, %v1625_v22 }
 0x611   :  { %v1628_v35 = vmul.f32 %v1626_v24, %v1416_v61 }
 0x613   :  { %v1633_v38 = vrot.slane %v1628_v35, %v3494_v25  ;;  %v1637_v12 = vrot.slane %v1628_v35, %v3497_v26  ;;  %v1641_v13 = vrot.slane %v1628_v35, %v3547_v28  ;;  %v1645_v15 = vrot.slane %v1628_v35, %v3550_v29 }
 0x614   :  { %v1649_v42 = vrot.slane %v1628_v35, %v3684_v27  ;;  %v1653_v43 = vrot.slane %v1628_v35, %v3687_v31  ;;  %v1657_v45 = vrot.slane %v1628_v35, %v3690_v33  ;;  %v1661_v47 = vrot.slane %v1628_v35, %v1660_v34 }
 0x615   :  { %v1670_v37 = vmul.f32 %v1633_v38, %v3628_v48  ;;  %v1671_v17 = vmul.f32 %v1637_v12, %v3632_v18  ;;  %v1672_v50 = vmul.f32 %v1641_v13, %v3630_v1  ;;  %v1673_v21 = vmul.f32 %v1645_v15, %v3634_v32 }
 0x616   :  { %v1674_v53 = vmul.f32 %v1649_v42, %v1470_v39  ;;  %v1675_v56 = vmul.f32 %v1653_v43, %v1471_v44  ;;  %v1676_v36 = vmul.f32 %v1657_v45, %v1472_v63  ;;  %v1677_v23 = vmul.f32 %v1661_v47, %v1473_v46 }
 0x617   :  { %v1686_v41 = vcombine.low %v1670_v37, %v1671_v17  ;;  %v1687_v52 = vcombine.low %v1672_v50, %v1673_v21  ;;  %v1737_v54 = vmul.f32 %v1633_v38, %v3604_v40  ;;  %v1738_v55 = vmul.f32 %v1637_v12, %v3614_v14 }
 0x618   :  { %v1688_v57 = vcombine.low %v1674_v53, %v1675_v56  ;;  %v1689_v58 = vcombine.low %v1676_v36, %v1677_v23  ;;  %v1739_v48 = vmul.f32 %v1641_v13, %v3606_v49  ;;  %v1740_v18 = vmul.f32 %v1645_v15, %v3616_v51 }
 0x619   :  { %v1696_v1 = vrot.slane %v1686_v41, %v3489_v19  ;;  %v1703_v32 = vrot.slane %v1687_v52, %v3489_v19  ;;  %v1741_v39 = vmul.f32 %v1649_v42, %v3652_v16  ;;  %v1742_v63 = vmul.f32 %v1653_v43, %v3662_v30 }
 0x61a   :  { %v1710_v44 = vrot.slane %v1688_v57, %v3489_v19  ;;  %v1717_v40 = vrot.slane %v1689_v58, %v3489_v19  ;;  %v1743_v14 = vmul.f32 %v1657_v45, %v3654_v20  ;;  %v1744_v46 = vmul.f32 %v1661_v47, %v3664_v0 }
 0x61b   :  { %v1718_v59 = vcombine.low %v1696_v1, %v1703_v32 }
 0x61c   :  { %v1719_v49 = vcombine.low %v1710_v44, %v1717_v40 }
 0x61d   :  { %v1726_v51 = vrot.slane %v1718_v59, %v3489_v19 }
 0x61e   :  { %v1733_v60 = vrot.slane %v1719_v49, %v3489_v19 }
 0x620   :  { %v1734_v2 = vcombine.low %v1726_v51, %v1733_v60 }
 0x622   :  { %v1736_v3 = vsub.f32 %v1417_v62, %v1734_v2 }
 0x624   :  { %v1749_v16 = vrot.slane %v1736_v3, %v3494_v25  ;;  %v1753_v30 = vrot.slane %v1736_v3, %v3497_v26  ;;  %v1757_v4 = vrot.slane %v1736_v3, %v3547_v28  ;;  %v1761_v5 = vrot.slane %v1736_v3, %v3550_v29 }
 0x625   :  { %v1765_v20 = vrot.slane %v1736_v3, %v3684_v27  ;;  %v1769_v0 = vrot.slane %v1736_v3, %v3687_v31  ;;  %v1773_v6 = vrot.slane %v1736_v3, %v3690_v33  ;;  %v1777_v7 = vrot.slane %v1736_v3, %v1660_v34 }
 0x626   :  { %v1786_v8 = vadd.f32 %v1749_v16, %v1737_v54  ;;  %v1787_v19 = vadd.f32 %v1753_v30, %v1738_v55  ;;  %v1788_v9 = vadd.f32 %v1757_v4, %v1739_v48  ;;  %v1789_v10 = vadd.f32 %v1761_v5, %v1740_v18 }
 0x627   :  { %v1790_v11 = vadd.f32 %v1765_v20, %v1741_v39  ;;  %v1791_v22 = vadd.f32 %v1769_v0, %v1742_v63  ;;  %v1792_v61 = vadd.f32 %v1773_v6, %v1743_v14  ;;  %v1793_v24 = vadd.f32 %v1777_v7, %v1744_v46 }
 0x628   :  { %v1794_v35 = vmul.f32 0.2, %v1786_v8  ;;  %v1795_v38 = vmul.f32 0.2, %v1787_v19  ;;  %v1796_v12 = vmul.f32 0.2, %v1788_v9 }
 0x629   :  { %v1797_v13 = vmul.f32 0.2, %v1789_v10  ;;  %v1798_v15 = vmul.f32 0.2, %v1790_v11  ;;  %v1799_v42 = vmul.f32 0.2, %v1791_v22 }
 0x62a   :  { %v1800_v43 = vmul.f32 0.2, %v1792_v61  ;;  %v1801_v45 = vmul.f32 0.2, %v1793_v24  ;;  %v3725_v47 = vmax.f32 %v1786_v8, %v1794_v35  ;;  %v1803_v37 = vmax.f32 %v1787_v19, %v1795_v38 }
 0x62b   :  { %v3727_v34 = vmax.f32 %v1788_v9, %v1796_v12  ;;  %v3729_v17 = vmax.f32 %v1789_v10, %v1797_v13  ;;  %v3731_v50 = vmax.f32 %v1790_v11, %v1798_v15  ;;  %v3733_v21 = vmax.f32 %v1791_v22, %v1799_v42 }
 0x62c   :  { %v3735_v53 = vmax.f32 %v1792_v61, %v1800_v43  ;;  %v3737_v56 = vmax.f32 %v1793_v24, %v1801_v45 }
 0x62d   :  { %3335 = dma.done.wait [#allocation6 + $0x3], 57344 }
 0x62e   :  { %3336 = vsyncadd [#allocation6 + $0x3], 4294909952  ;;  %v3739_v36 = vpack.c.bf16 %v1803_v37, %v1803_v37  ;;  %v1815_v23 = vld [vmem:[#allocation5 + $0x8] sm:$0xff]  ;;  %v1817_v41 = vld [vmem:[#allocation5 + $0x18] sm:$0xff] }
 0x62f   :  { %v1814_v52 = vld [vmem:[#allocation5] sm:$0xff]  ;;  %2307 = vmatprep.subr.bf16.mxu0 %v1815_v23  ;;  %2471 = vmatprep.subr.bf16.mxu1 %v1817_v41  ;;  %v1816_v54 = vld [vmem:[#allocation5 + $0x10] sm:$0xff]  ;;  %v1821_v58 = vld [vmem:[#allocation5 + $0x38] sm:$0xff] }
 0x630   :  { %2339 = vmatprep.mubr.bf16.mxu0 %v3739_v36  ;;  %2503 = vmatprep.mubr.bf16.mxu1 %v3739_v36  ;;  %v1822_v55 = vld [vmem:[#allocation5 + $0x40] sm:$0xff]  ;;  %v1824_v57 = vld [vmem:[#allocation5 + $0x50] sm:$0xff]  ;;  %v1823_v48 = vld [vmem:[#allocation5 + $0x48] sm:$0xff] }
 0x631   :  { %2308 = vmatpush1.bf16.msra.mxu0 %v1814_v52  ;;  %2472 = vmatpush1.bf16.msra.mxu1 %v1816_v54  ;;  %v1829_v18 = vld [vmem:[#allocation5 + $0x78] sm:$0xff]  ;;  %v1831_v1 = vld [vmem:[#allocation5 + $0x88] sm:$0xff]  ;;  %v1828_v32 = vld [vmem:[#allocation5 + $0x70] sm:$0xff] }
 0x632   :  { %2309 = vmatprep.subr.bf16.mxu0 %v1822_v55  ;;  %2473 = vmatprep.subr.bf16.mxu1 %v1824_v57  ;;  %v1830_v39 = vld [vmem:[#allocation5 + $0x80] sm:$0xff]  ;;  %v1836_v63 = vld [vmem:[#allocation5 + $0xb0] sm:$0xff]  ;;  %v1835_v40 = vld [vmem:[#allocation5 + $0xa8] sm:$0xff] }
 0x633   :  { %v1838_v44 = vld [vmem:[#allocation5 + $0xc0] sm:$0xff]  ;;  %v1837_v14 = vld [vmem:[#allocation5 + $0xb8] sm:$0xff]  ;;  %v1843_v46 = vld [vmem:[#allocation5 + $0xe8] sm:$0xff] }
 0x634   :  { %v1845_v59 = vld [vmem:[#allocation5 + $0xf8] sm:$0xff]  ;;  %v1842_v49 = vld [vmem:[#allocation5 + $0xe0] sm:$0xff]  ;;  %v1844_v51 = vld [vmem:[#allocation5 + $0xf0] sm:$0xff] }
 0x635   :  { %2310 = vmatpush1.bf16.msra.mxu0 %v1821_v58  ;;  %2474 = vmatpush1.bf16.msra.mxu1 %v1823_v48  ;;  %v1850_v60 = vld [vmem:[#allocation5 + $0x120] sm:$0xff]  ;;  %v1852_v62 = vld [vmem:[#allocation5 + $0x130] sm:$0xff]  ;;  %v1849_v2 = vld [vmem:[#allocation5 + $0x118] sm:$0xff] }
 0x636   :  { %2311 = vmatprep.subr.bf16.mxu0 %v1829_v18  ;;  %2475 = vmatprep.subr.bf16.mxu1 %v1831_v1  ;;  %v1851_v3 = vld [vmem:[#allocation5 + $0x128] sm:$0xff]  ;;  %v1857_v16 = vld [vmem:[#allocation5 + $0x158] sm:$0xff]  ;;  %v1856_v4 = vld [vmem:[#allocation5 + $0x150] sm:$0xff] }
 0x637   :  { %v1859_v30 = vld [vmem:[#allocation5 + $0x168] sm:$0xff]  ;;  %v1858_v5 = vld [vmem:[#allocation5 + $0x160] sm:$0xff]  ;;  %v1864_v20 = vld [vmem:[#allocation5 + $0x190] sm:$0xff] }
 0x638   :  { %v1866_v0 = vld [vmem:[#allocation5 + $0x1a0] sm:$0xff]  ;;  %v1863_v6 = vld [vmem:[#allocation5 + $0x188] sm:$0xff]  ;;  %v1865_v7 = vld [vmem:[#allocation5 + $0x198] sm:$0xff] }
 0x639   :  { %2312 = vmatpush1.bf16.msra.mxu0 %v1828_v32  ;;  %2476 = vmatpush1.bf16.msra.mxu1 %v1830_v39  ;;  %v1871_v8 = vld [vmem:[#allocation5 + $0x1c8] sm:$0xff]  ;;  %v1873_v19 = vld [vmem:[#allocation5 + $0x1d8] sm:$0xff]  ;;  %v1870_v9 = vld [vmem:[#allocation5 + $0x1c0] sm:$0xff] }
 0x63a   :  { %2313 = vmatprep.subr.bf16.mxu0 %v1836_v63  ;;  %2477 = vmatprep.subr.bf16.mxu1 %v1838_v44  ;;  %v1872_v10 = vld [vmem:[#allocation5 + $0x1d0] sm:$0xff]  ;;  %v1878_v11 = vld [vmem:[#allocation5 + $0x200] sm:$0xff]  ;;  %v1877_v61 = vld [vmem:[#allocation5 + $0x1f8] sm:$0xff] }
 0x63b   :  { %v1880_v22 = vld [vmem:[#allocation5 + $0x210] sm:$0xff]  ;;  %v1879_v24 = vld [vmem:[#allocation5 + $0x208] sm:$0xff]  ;;  %v1885_v35 = vld [vmem:[#allocation5 + $0x238] sm:$0xff] }
 0x63c   :  { %v1887_v38 = vld [vmem:[#allocation5 + $0x248] sm:$0xff]  ;;  %v1884_v12 = vld [vmem:[#allocation5 + $0x230] sm:$0xff]  ;;  %v1886_v13 = vld [vmem:[#allocation5 + $0x240] sm:$0xff] }
 0x63d   :  { %2314 = vmatpush1.bf16.msra.mxu0 %v1835_v40  ;;  %2478 = vmatpush1.bf16.msra.mxu1 %v1837_v14  ;;  %v1892_v15 = vld [vmem:[#allocation5 + $0x270] sm:$0xff]  ;;  %v1894_v42 = vld [vmem:[#allocation5 + $0x280] sm:$0xff]  ;;  %v1891_v43 = vld [vmem:[#allocation5 + $0x268] sm:$0xff] }
 0x63e   :  { %2315 = vmatprep.subr.bf16.mxu0 %v1843_v46  ;;  %2479 = vmatprep.subr.bf16.mxu1 %v1845_v59  ;;  %v1893_v45 = vld [vmem:[#allocation5 + $0x278] sm:$0xff]  ;;  %v1899_v37 = vld [vmem:[#allocation5 + $0x2a8] sm:$0xff]  ;;  %v1898_v41 = vld [vmem:[#allocation5 + $0x2a0] sm:$0xff]  ;;  %v3745_v59 = vpack.c.bf16 %v3725_v47, %v3725_v47 }
 0x63f   :  { %v1901_v23 = vld [vmem:[#allocation5 + $0x2b8] sm:$0xff]  ;;  %v1900_v52 = vld [vmem:[#allocation5 + $0x2b0] sm:$0xff]  ;;  %v1906_v54 = vld [vmem:[#allocation5 + $0x2e0] sm:$0xff] }
 0x640   :  { %v1908_v55 = vld [vmem:[#allocation5 + $0x2f0] sm:$0xff]  ;;  %v1905_v57 = vld [vmem:[#allocation5 + $0x2d8] sm:$0xff]  ;;  %v1907_v58 = vld [vmem:[#allocation5 + $0x2e8] sm:$0xff] }
 0x641   :  { %2316 = vmatpush1.bf16.msra.mxu0 %v1842_v49  ;;  %2480 = vmatpush1.bf16.msra.mxu1 %v1844_v51  ;;  %v1913_v48 = vld [vmem:[#allocation5 + $0x318] sm:$0xff]  ;;  %v1915_v18 = vld [vmem:[#allocation5 + $0x328] sm:$0xff]  ;;  %v1912_v1 = vld [vmem:[#allocation5 + $0x310] sm:$0xff] }
 0x642   :  { %2317 = vmatprep.subr.bf16.mxu0 %v1850_v60  ;;  %2481 = vmatprep.subr.bf16.mxu1 %v1852_v62  ;;  %v1914_v32 = vld [vmem:[#allocation5 + $0x320] sm:$0xff]  ;;  %v1920_v39 = vld [vmem:[#allocation5 + $0x350] sm:$0xff]  ;;  %v1919_v44 = vld [vmem:[#allocation5 + $0x348] sm:$0xff] }
 0x643   :  { %v1922_v63 = vld [vmem:[#allocation5 + $0x360] sm:$0xff]  ;;  %v1921_v40 = vld [vmem:[#allocation5 + $0x358] sm:$0xff]  ;;  %v1927_v14 = vld [vmem:[#allocation5 + $0x388] sm:$0xff] }
 0x644   :  { %v1929_v46 = vld [vmem:[#allocation5 + $0x398] sm:$0xff]  ;;  %v1926_v49 = vld [vmem:[#allocation5 + $0x380] sm:$0xff]  ;;  %v1928_v51 = vld [vmem:[#allocation5 + $0x390] sm:$0xff] }
 0x645   :  { %2318 = vmatpush1.bf16.msra.mxu0 %v1849_v2  ;;  %2482 = vmatpush1.bf16.msra.mxu1 %v1851_v3  ;;  %v1934_v60 = vld [vmem:[#allocation5 + $0x3c0] sm:$0xff]  ;;  %v1936_v62 = vld [vmem:[#allocation5 + $0x3d0] sm:$0xff]  ;;  %v3749_v2 = vpack.c.bf16 %v3729_v17, %v3729_v17  ;;  %v1933_v47 = vld [vmem:[#allocation5 + $0x3b8] sm:$0xff] }
 0x646   :  { %2319 = vmatprep.subr.bf16.mxu0 %v1857_v16  ;;  %2483 = vmatprep.subr.bf16.mxu1 %v1859_v30  ;;  %v1935_v3 = vld [vmem:[#allocation5 + $0x3c8] sm:$0xff]  ;;  %v1941_v16 = vld [vmem:[#allocation5 + $0x3f8] sm:$0xff]  ;;  %v1940_v17 = vld [vmem:[#allocation5 + $0x3f0] sm:$0xff] }
 0x647   :  { %v1943_v30 = vld [vmem:[#allocation5 + $0x408] sm:$0xff] }
 0x649   :  { %2320 = vmatpush1.bf16.msra.mxu0 %v1856_v4  ;;  %2484 = vmatpush1.bf16.msra.mxu1 %v1858_v5  ;;  %v1942_v4 = vld [vmem:[#allocation5 + $0x400] sm:$0xff]  ;;  %v1948_v5 = vld [vmem:[#allocation5 + $0x430] sm:$0xff] }
 0x64a   :  { %2321 = vmatprep.subr.bf16.mxu0 %v1864_v20  ;;  %2485 = vmatprep.subr.bf16.mxu1 %v1866_v0  ;;  %v1950_v20 = vld [vmem:[#allocation5 + $0x440] sm:$0xff]  ;;  %v1947_v0 = vld [vmem:[#allocation5 + $0x428] sm:$0xff] }
 0x64d   :  { %2322 = vmatpush1.bf16.msra.mxu0 %v1863_v6  ;;  %2486 = vmatpush1.bf16.msra.mxu1 %v1865_v7  ;;  %v1949_v6 = vld [vmem:[#allocation5 + $0x438] sm:$0xff]  ;;  %v1955_v7 = vld [vmem:[#allocation5 + $0x468] sm:$0xff] }
 0x64e   :  { %2323 = vmatprep.subr.bf16.mxu0 %v1871_v8  ;;  %2487 = vmatprep.subr.bf16.mxu1 %v1873_v19  ;;  %v1957_v8 = vld [vmem:[#allocation5 + $0x478] sm:$0xff]  ;;  %v1954_v19 = vld [vmem:[#allocation5 + $0x460] sm:$0xff] }
 0x651   :  { %2324 = vmatpush1.bf16.msra.mxu0 %v1870_v9  ;;  %2488 = vmatpush1.bf16.msra.mxu1 %v1872_v10  ;;  %v1956_v9 = vld [vmem:[#allocation5 + $0x470] sm:$0xff]  ;;  %v1962_v10 = vld [vmem:[#allocation5 + $0x4a0] sm:$0xff] }
 0x652   :  { %2325 = vmatprep.subr.bf16.mxu0 %v1878_v11  ;;  %2489 = vmatprep.subr.bf16.mxu1 %v1880_v22  ;;  %v1964_v11 = vld [vmem:[#allocation5 + $0x4b0] sm:$0xff]  ;;  %v1961_v22 = vld [vmem:[#allocation5 + $0x498] sm:$0xff] }
 0x655   :  { %2326 = vmatpush1.bf16.msra.mxu0 %v1877_v61  ;;  %2490 = vmatpush1.bf16.msra.mxu1 %v1879_v24  ;;  %v1963_v61 = vld [vmem:[#allocation5 + $0x4a8] sm:$0xff]  ;;  %v1969_v24 = vld [vmem:[#allocation5 + $0x4d8] sm:$0xff] }
 0x656   :  { %2327 = vmatprep.subr.bf16.mxu0 %v1885_v35  ;;  %2491 = vmatprep.subr.bf16.mxu1 %v1887_v38  ;;  %v1971_v35 = vld [vmem:[#allocation5 + $0x4e8] sm:$0xff]  ;;  %v1968_v38 = vld [vmem:[#allocation5 + $0x4d0] sm:$0xff] }
 0x659   :  { %2328 = vmatpush1.bf16.msra.mxu0 %v1884_v12  ;;  %2492 = vmatpush1.bf16.msra.mxu1 %v1886_v13  ;;  %v1970_v12 = vld [vmem:[#allocation5 + $0x4e0] sm:$0xff]  ;;  %v1976_v13 = vld [vmem:[#allocation5 + $0x510] sm:$0xff] }
 0x65a   :  { %2329 = vmatprep.subr.bf16.mxu0 %v1892_v15  ;;  %2493 = vmatprep.subr.bf16.mxu1 %v1894_v42  ;;  %v1978_v15 = vld [vmem:[#allocation5 + $0x520] sm:$0xff]  ;;  %v1975_v42 = vld [vmem:[#allocation5 + $0x508] sm:$0xff] }
 0x65d   :  { %2330 = vmatpush1.bf16.msra.mxu0 %v1891_v43  ;;  %2494 = vmatpush1.bf16.msra.mxu1 %v1893_v45  ;;  %v1977_v43 = vld [vmem:[#allocation5 + $0x518] sm:$0xff]  ;;  %v1983_v45 = vld [vmem:[#allocation5 + $0x548] sm:$0xff] }
 0x65e   :  { %2331 = vmatprep.subr.bf16.mxu0 %v1899_v37  ;;  %2495 = vmatprep.subr.bf16.mxu1 %v1901_v23  ;;  %v1985_v37 = vld [vmem:[#allocation5 + $0x558] sm:$0xff]  ;;  %v1982_v23 = vld [vmem:[#allocation5 + $0x540] sm:$0xff] }
 0x661   :  { %2332 = vmatpush1.bf16.msra.mxu0 %v1898_v41  ;;  %2496 = vmatpush1.bf16.msra.mxu1 %v1900_v52  ;;  %v1984_v41 = vld [vmem:[#allocation5 + $0x550] sm:$0xff]  ;;  %v1990_v52 = vld [vmem:[#allocation5 + $0x580] sm:$0xff] }
 0x662   :  { %2333 = vmatprep.subr.bf16.mxu0 %v1906_v54  ;;  %2497 = vmatprep.subr.bf16.mxu1 %v1908_v55  ;;  %v1992_v54 = vld [vmem:[#allocation5 + $0x590] sm:$0xff]  ;;  %v1989_v55 = vld [vmem:[#allocation5 + $0x578] sm:$0xff] }
 0x665   :  { %2334 = vmatpush1.bf16.msra.mxu0 %v1905_v57  ;;  %2498 = vmatpush1.bf16.msra.mxu1 %v1907_v58  ;;  %v1991_v57 = vld [vmem:[#allocation5 + $0x588] sm:$0xff]  ;;  %v1997_v58 = vld [vmem:[#allocation5 + $0x5b8] sm:$0xff] }
 0x666   :  { %2335 = vmatprep.subr.bf16.mxu0 %v1913_v48  ;;  %2499 = vmatprep.subr.bf16.mxu1 %v1915_v18  ;;  %v1999_v48 = vld [vmem:[#allocation5 + $0x5c8] sm:$0xff]  ;;  %v1996_v18 = vld [vmem:[#allocation5 + $0x5b0] sm:$0xff] }
 0x669   :  { %2336 = vmatpush1.bf16.msra.mxu0 %v1912_v1  ;;  %2500 = vmatpush1.bf16.msra.mxu1 %v1914_v32  ;;  %v1998_v1 = vld [vmem:[#allocation5 + $0x5c0] sm:$0xff]  ;;  %v2004_v32 = vld [vmem:[#allocation5 + $0x5f0] sm:$0xff] }
 0x66a   :  { %2337 = vmatprep.subr.bf16.mxu0 %v1920_v39  ;;  %2501 = vmatprep.subr.bf16.mxu1 %v1922_v63  ;;  %v2006_v39 = vld [vmem:[#allocation5 + $0x600] sm:$0xff]  ;;  %v2003_v63 = vld [vmem:[#allocation5 + $0x5e8] sm:$0xff] }
 0x66d   :  { %2338 = vmatpush1.bf16.msra.mxu0 %v1919_v44  ;;  %2502 = vmatpush1.bf16.msra.mxu1 %v1921_v40  ;;  %v2005_v44 = vld [vmem:[#allocation5 + $0x5f8] sm:$0xff]  ;;  %v2011_v40 = vld [vmem:[#allocation5 + $0x628] sm:$0xff] }
 0x66e   :  { %2348 = vmatprep.subr.bf16.mxu0 %v1927_v14  ;;  %2512 = vmatprep.subr.bf16.mxu1 %v1929_v46  ;;  %v2013_v14 = vld [vmem:[#allocation5 + $0x638] sm:$0xff]  ;;  %v2010_v46 = vld [vmem:[#allocation5 + $0x620] sm:$0xff] }
 0x670   :  { %2340 = vmatmul.mubr.bf16.vlgmr.msra.gmra.mrb[12].mxu0 %v3745_v59  ;;  %2504 = vmatmul.mubr.bf16.vlgmr.msra.gmra.mrb[20].mxu1 %v3745_v59 }
 0x671   :  { %2349 = vmatpush1.bf16.msra.mxu0 %v1926_v49  ;;  %2513 = vmatpush1.bf16.msra.mxu1 %v1928_v51  ;;  %v2012_v49 = vld [vmem:[#allocation5 + $0x630] sm:$0xff]  ;;  %v2018_v51 = vld [vmem:[#allocation5 + $0x660] sm:$0xff] }
 0x672   :  { %2350 = vmatprep.subr.bf16.mxu0 %v1934_v60  ;;  %2514 = vmatprep.subr.bf16.mxu1 %v1936_v62  ;;  %v2020_v60 = vld [vmem:[#allocation5 + $0x670] sm:$0xff]  ;;  %v2017_v62 = vld [vmem:[#allocation5 + $0x658] sm:$0xff] }
 0x673   :  { %2380 = vmatprep.mubr.bf16.mxu0 %v3749_v2  ;;  %2544 = vmatprep.mubr.bf16.mxu1 %v3749_v2 }
 0x675   :  { %2351 = vmatpush1.bf16.msra.mxu0 %v1933_v47  ;;  %2515 = vmatpush1.bf16.msra.mxu1 %v1935_v3  ;;  %v2019_v47 = vld [vmem:[#allocation5 + $0x668] sm:$0xff]  ;;  %v2025_v3 = vld [vmem:[#allocation5 + $0x698] sm:$0xff] }
 0x676   :  { %2352 = vmatprep.subr.bf16.mxu0 %v1941_v16  ;;  %2516 = vmatprep.subr.bf16.mxu1 %v1943_v30  ;;  %v2027_v16 = vld [vmem:[#allocation5 + $0x6a8] sm:$0xff]  ;;  %v2024_v30 = vld [vmem:[#allocation5 + $0x690] sm:$0xff] }
 0x679   :  { %2353 = vmatpush1.bf16.msra.mxu0 %v1940_v17  ;;  %2517 = vmatpush1.bf16.msra.mxu1 %v1942_v4  ;;  %v2026_v17 = vld [vmem:[#allocation5 + $0x6a0] sm:$0xff]  ;;  %v2032_v4 = vld [vmem:[#allocation5 + $0x6d0] sm:$0xff] }
 0x67a   :  { %2354 = vmatprep.subr.bf16.mxu0 %v1948_v5  ;;  %2518 = vmatprep.subr.bf16.mxu1 %v1950_v20  ;;  %v2034_v5 = vld [vmem:[#allocation5 + $0x6e0] sm:$0xff]  ;;  %v2031_v20 = vld [vmem:[#allocation5 + $0x6c8] sm:$0xff] }
 0x67d   :  { %2355 = vmatpush1.bf16.msra.mxu0 %v1947_v0  ;;  %2519 = vmatpush1.bf16.msra.mxu1 %v1949_v6  ;;  %v2033_v0 = vld [vmem:[#allocation5 + $0x6d8] sm:$0xff]  ;;  %v2039_v6 = vld [vmem:[#allocation5 + $0x708] sm:$0xff] }
 0x67e   :  { %2356 = vmatprep.subr.bf16.mxu0 %v1955_v7  ;;  %2520 = vmatprep.subr.bf16.mxu1 %v1957_v8  ;;  %v2041_v7 = vld [vmem:[#allocation5 + $0x718] sm:$0xff]  ;;  %v3757_v8 = vpack.c.bf16 %v3727_v34, %v3727_v34 }
 0x67f   :  { %v2045_v34 = vld [vmem:[#allocation5 + $0x738] sm:$0xff] }
 0x681   :  { %2357 = vmatpush1.bf16.msra.mxu0 %v1954_v19  ;;  %2521 = vmatpush1.bf16.msra.mxu1 %v1956_v9  ;;  %v2038_v19 = vld [vmem:[#allocation5 + $0x700] sm:$0xff]  ;;  %v2040_v9 = vld [vmem:[#allocation5 + $0x710] sm:$0xff] }
 0x682   :  { %2358 = vmatprep.subr.bf16.mxu0 %v1962_v10  ;;  %2522 = vmatprep.subr.bf16.mxu1 %v1964_v11  ;;  %v2046_v10 = vld [vmem:[#allocation5 + $0x740] sm:$0xff]  ;;  %v2048_v11 = vld [vmem:[#allocation5 + $0x750] sm:$0xff] }
 0x685   :  { %2359 = vmatpush1.bf16.msra.mxu0 %v1961_v22  ;;  %2523 = vmatpush1.bf16.msra.mxu1 %v1963_v61  ;;  %v3761_v22 = vpack.c.bf16 %v3733_v21, %v3733_v21  ;;  %v2047_v61 = vld [vmem:[#allocation5 + $0x748] sm:$0xff]  ;;  %v2052_v21 = vld [vmem:[#allocation5 + $0x770] sm:$0xff] }
 0x686   :  { %2360 = vmatprep.subr.bf16.mxu0 %v1969_v24  ;;  %2524 = vmatprep.subr.bf16.mxu1 %v1971_v35  ;;  %v2053_v24 = vld [vmem:[#allocation5 + $0x778] sm:$0xff]  ;;  %v2055_v35 = vld [vmem:[#allocation5 + $0x788] sm:$0xff] }
 0x689   :  { %2361 = vmatpush1.bf16.msra.mxu0 %v1968_v38  ;;  %2525 = vmatpush1.bf16.msra.mxu1 %v1970_v12  ;;  %v2054_v38 = vld [vmem:[#allocation5 + $0x780] sm:$0xff]  ;;  %v2060_v12 = vld [vmem:[#allocation5 + $0x7b0] sm:$0xff] }
 0x68a   :  { %2362 = vmatprep.subr.bf16.mxu0 %v1976_v13  ;;  %2526 = vmatprep.subr.bf16.mxu1 %v1978_v15  ;;  %v2062_v13 = vld [vmem:[#allocation5 + $0x7c0] sm:$0xff]  ;;  %v2059_v15 = vld [vmem:[#allocation5 + $0x7a8] sm:$0xff] }
 0x68d   :  { %2363 = vmatpush1.bf16.msra.mxu0 %v1975_v42  ;;  %2527 = vmatpush1.bf16.msra.mxu1 %v1977_v43  ;;  %v2061_v42 = vld [vmem:[#allocation5 + $0x7b8] sm:$0xff]  ;;  %v2067_v43 = vld [vmem:[#allocation5 + $0x7e8] sm:$0xff] }
 0x68e   :  { %2364 = vmatprep.subr.bf16.mxu0 %v1983_v45  ;;  %2528 = vmatprep.subr.bf16.mxu1 %v1985_v37  ;;  %v2069_v45 = vld [vmem:[#allocation5 + $0x7f8] sm:$0xff]  ;;  %v2066_v37 = vld [vmem:[#allocation5 + $0x7e0] sm:$0xff] }
 0x691   :  { %2365 = vmatpush1.bf16.msra.mxu0 %v1982_v23  ;;  %2529 = vmatpush1.bf16.msra.mxu1 %v1984_v41  ;;  %v2068_v23 = vld [vmem:[#allocation5 + $0x7f0] sm:$0xff]  ;;  %v2074_v41 = vld [vmem:[#allocation5 + $0x820] sm:$0xff] }
 0x692   :  { %2366 = vmatprep.subr.bf16.mxu0 %v1990_v52  ;;  %2530 = vmatprep.subr.bf16.mxu1 %v1992_v54  ;;  %v2076_v52 = vld [vmem:[#allocation5 + $0x830] sm:$0xff]  ;;  %v2073_v54 = vld [vmem:[#allocation5 + $0x818] sm:$0xff] }
 0x695   :  { %2367 = vmatpush1.bf16.msra.mxu0 %v1989_v55  ;;  %2531 = vmatpush1.bf16.msra.mxu1 %v1991_v57  ;;  %v2075_v55 = vld [vmem:[#allocation5 + $0x828] sm:$0xff]  ;;  %v2081_v57 = vld [vmem:[#allocation5 + $0x858] sm:$0xff] }
 0x696   :  { %2368 = vmatprep.subr.bf16.mxu0 %v1997_v58  ;;  %2532 = vmatprep.subr.bf16.mxu1 %v1999_v48  ;;  %v2083_v58 = vld [vmem:[#allocation5 + $0x868] sm:$0xff]  ;;  %v2080_v48 = vld [vmem:[#allocation5 + $0x850] sm:$0xff] }
 0x699   :  { %2369 = vmatpush1.bf16.msra.mxu0 %v1996_v18  ;;  %2533 = vmatpush1.bf16.msra.mxu1 %v1998_v1  ;;  %v2082_v18 = vld [vmem:[#allocation5 + $0x860] sm:$0xff]  ;;  %v2088_v1 = vld [vmem:[#allocation5 + $0x890] sm:$0xff] }
 0x69a   :  { %2370 = vmatprep.subr.bf16.mxu0 %v2004_v32  ;;  %2534 = vmatprep.subr.bf16.mxu1 %v2006_v39  ;;  %v2090_v32 = vld [vmem:[#allocation5 + $0x8a0] sm:$0xff]  ;;  %v2087_v39 = vld [vmem:[#allocation5 + $0x888] sm:$0xff] }
 0x69d   :  { %2371 = vmatpush1.bf16.msra.mxu0 %v2003_v63  ;;  %2535 = vmatpush1.bf16.msra.mxu1 %v2005_v44  ;;  %v2089_v63 = vld [vmem:[#allocation5 + $0x898] sm:$0xff]  ;;  %v2095_v44 = vld [vmem:[#allocation5 + $0x8c8] sm:$0xff] }
 0x69e   :  { %2372 = vmatprep.subr.bf16.mxu0 %v2011_v40  ;;  %2536 = vmatprep.subr.bf16.mxu1 %v2013_v14  ;;  %v2097_v40 = vld [vmem:[#allocation5 + $0x8d8] sm:$0xff]  ;;  %v2094_v14 = vld [vmem:[#allocation5 + $0x8c0] sm:$0xff] }
 0x6a1   :  { %2373 = vmatpush1.bf16.msra.mxu0 %v2010_v46  ;;  %2537 = vmatpush1.bf16.msra.mxu1 %v2012_v49  ;;  %v2096_v46 = vld [vmem:[#allocation5 + $0x8d0] sm:$0xff]  ;;  %v2102_v49 = vld [vmem:[#allocation5 + $0x900] sm:$0xff] }
 0x6a2   :  { %2374 = vmatprep.subr.bf16.mxu0 %v2018_v51  ;;  %2538 = vmatprep.subr.bf16.mxu1 %v2020_v60  ;;  %v2104_v51 = vld [vmem:[#allocation5 + $0x910] sm:$0xff]  ;;  %v2101_v60 = vld [vmem:[#allocation5 + $0x8f8] sm:$0xff] }
 0x6a5   :  { %2375 = vmatpush1.bf16.msra.mxu0 %v2017_v62  ;;  %2539 = vmatpush1.bf16.msra.mxu1 %v2019_v47  ;;  %v2103_v62 = vld [vmem:[#allocation5 + $0x908] sm:$0xff]  ;;  %v2109_v47 = vld [vmem:[#allocation5 + $0x938] sm:$0xff] }
 0x6a6   :  { %2376 = vmatprep.subr.bf16.mxu0 %v2025_v3  ;;  %2540 = vmatprep.subr.bf16.mxu1 %v2027_v16  ;;  %v2111_v3 = vld [vmem:[#allocation5 + $0x948] sm:$0xff]  ;;  %v2108_v16 = vld [vmem:[#allocation5 + $0x930] sm:$0xff] }
 0x6a9   :  { %2377 = vmatpush1.bf16.msra.mxu0 %v2024_v30  ;;  %2541 = vmatpush1.bf16.msra.mxu1 %v2026_v17  ;;  %v2110_v30 = vld [vmem:[#allocation5 + $0x940] sm:$0xff]  ;;  %v2116_v17 = vld [vmem:[#allocation5 + $0x970] sm:$0xff] }
 0x6aa   :  { %2378 = vmatprep.subr.bf16.mxu0 %v2032_v4  ;;  %2542 = vmatprep.subr.bf16.mxu1 %v2034_v5  ;;  %v2118_v4 = vld [vmem:[#allocation5 + $0x980] sm:$0xff]  ;;  %v2115_v5 = vld [vmem:[#allocation5 + $0x968] sm:$0xff] }
 0x6ad   :  { %2379 = vmatpush1.bf16.msra.mxu0 %v2031_v20  ;;  %2543 = vmatpush1.bf16.msra.mxu1 %v2033_v0  ;;  %v2117_v20 = vld [vmem:[#allocation5 + $0x978] sm:$0xff]  ;;  %v2123_v0 = vld [vmem:[#allocation5 + $0x9a8] sm:$0xff] }
 0x6ae   :  { %2389 = vmatprep.subr.bf16.mxu0 %v2039_v6  ;;  %2553 = vmatprep.subr.bf16.mxu1 %v2041_v7  ;;  %v2125_v6 = vld [vmem:[#allocation5 + $0x9b8] sm:$0xff]  ;;  %v2122_v7 = vld [vmem:[#allocation5 + $0x9a0] sm:$0xff] }
 0x6b0   :  { %2381 = vmatmul.mubr.bf16.vlgmr.msra.gmra.mrb[12].mxu0 %v3757_v8  ;;  %2545 = vmatmul.mubr.bf16.vlgmr.msra.gmra.mrb[20].mxu1 %v3757_v8 }
 0x6b1   :  { %2390 = vmatpush1.bf16.msra.mxu0 %v2038_v19  ;;  %2554 = vmatpush1.bf16.msra.mxu1 %v2040_v9  ;;  %v2124_v19 = vld [vmem:[#allocation5 + $0x9b0] sm:$0xff]  ;;  %v2130_v9 = vld [vmem:[#allocation5 + $0x9e0] sm:$0xff] }
 0x6b2   :  { %2391 = vmatprep.subr.bf16.mxu0 %v2046_v10  ;;  %2555 = vmatprep.subr.bf16.mxu1 %v2048_v11  ;;  %v2132_v10 = vld [vmem:[#allocation5 + $0x9f0] sm:$0xff]  ;;  %v2129_v11 = vld [vmem:[#allocation5 + $0x9d8] sm:$0xff] }
 0x6b3   :  { %2421 = vmatprep.mubr.bf16.mxu0 %v3761_v22  ;;  %2585 = vmatprep.mubr.bf16.mxu1 %v3761_v22 }
 0x6b5   :  { %2392 = vmatpush1.bf16.msra.mxu0 %v2045_v34  ;;  %2556 = vmatpush1.bf16.msra.mxu1 %v2047_v61  ;;  %v2131_v34 = vld [vmem:[#allocation5 + $0x9e8] sm:$0xff]  ;;  %v2137_v61 = vld [vmem:[#allocation5 + $0xa18] sm:$0xff] }
 0x6b6   :  { %2393 = vmatprep.subr.bf16.mxu0 %v2053_v24  ;;  %2557 = vmatprep.subr.bf16.mxu1 %v2055_v35  ;;  %v2139_v24 = vld [vmem:[#allocation5 + $0xa28] sm:$0xff]  ;;  %v2136_v35 = vld [vmem:[#allocation5 + $0xa10] sm:$0xff] }
 0x6b9   :  { %2394 = vmatpush1.bf16.msra.mxu0 %v2052_v21  ;;  %2558 = vmatpush1.bf16.msra.mxu1 %v2054_v38  ;;  %v2138_v21 = vld [vmem:[#allocation5 + $0xa20] sm:$0xff]  ;;  %v2144_v38 = vld [vmem:[#allocation5 + $0xa50] sm:$0xff] }
 0x6ba   :  { %2395 = vmatprep.subr.bf16.mxu0 %v2060_v12  ;;  %2559 = vmatprep.subr.bf16.mxu1 %v2062_v13  ;;  %v2146_v12 = vld [vmem:[#allocation5 + $0xa60] sm:$0xff]  ;;  %v2143_v13 = vld [vmem:[#allocation5 + $0xa48] sm:$0xff] }
 0x6bd   :  { %2396 = vmatpush1.bf16.msra.mxu0 %v2059_v15  ;;  %2560 = vmatpush1.bf16.msra.mxu1 %v2061_v42  ;;  %v2145_v15 = vld [vmem:[#allocation5 + $0xa58] sm:$0xff]  ;;  %v2151_v42 = vld [vmem:[#allocation5 + $0xa88] sm:$0xff] }
 0x6be   :  { %2397 = vmatprep.subr.bf16.mxu0 %v2067_v43  ;;  %2561 = vmatprep.subr.bf16.mxu1 %v2069_v45  ;;  %v2153_v43 = vld [vmem:[#allocation5 + $0xa98] sm:$0xff]  ;;  %v3769_v45 = vpack.c.bf16 %v3731_v50, %v3731_v50 }
 0x6bf   :  { %v2157_v50 = vld [vmem:[#allocation5 + $0xab8] sm:$0xff] }
 0x6c1   :  { %2398 = vmatpush1.bf16.msra.mxu0 %v2066_v37  ;;  %2562 = vmatpush1.bf16.msra.mxu1 %v2068_v23  ;;  %v2150_v37 = vld [vmem:[#allocation5 + $0xa80] sm:$0xff]  ;;  %v2152_v23 = vld [vmem:[#allocation5 + $0xa90] sm:$0xff] }
 0x6c2   :  { %2399 = vmatprep.subr.bf16.mxu0 %v2074_v41  ;;  %2563 = vmatprep.subr.bf16.mxu1 %v2076_v52  ;;  %v2158_v41 = vld [vmem:[#allocation5 + $0xac0] sm:$0xff]  ;;  %v2160_v52 = vld [vmem:[#allocation5 + $0xad0] sm:$0xff] }
 0x6c5   :  { %2400 = vmatpush1.bf16.msra.mxu0 %v2073_v54  ;;  %2564 = vmatpush1.bf16.msra.mxu1 %v2075_v55  ;;  %v3773_v54 = vpack.c.bf16 %v3737_v56, %v3737_v56  ;;  %v2159_v55 = vld [vmem:[#allocation5 + $0xac8] sm:$0xff]  ;;  %v2164_v56 = vld [vmem:[#allocation5 + $0xaf0] sm:$0xff] }
 0x6c6   :  { %2401 = vmatprep.subr.bf16.mxu0 %v2081_v57  ;;  %2565 = vmatprep.subr.bf16.mxu1 %v2083_v58  ;;  %v2165_v57 = vld [vmem:[#allocation5 + $0xaf8] sm:$0xff]  ;;  %v2167_v58 = vld [vmem:[#allocation5 + $0xb08] sm:$0xff] }
 0x6c9   :  { %2402 = vmatpush1.bf16.msra.mxu0 %v2080_v48  ;;  %2566 = vmatpush1.bf16.msra.mxu1 %v2082_v18  ;;  %v2166_v48 = vld [vmem:[#allocation5 + $0xb00] sm:$0xff]  ;;  %v2172_v18 = vld [vmem:[#allocation5 + $0xb30] sm:$0xff] }
 0x6ca   :  { %2403 = vmatprep.subr.bf16.mxu0 %v2088_v1  ;;  %2567 = vmatprep.subr.bf16.mxu1 %v2090_v32  ;;  %v2174_v1 = vld [vmem:[#allocation5 + $0xb40] sm:$0xff]  ;;  %v2171_v32 = vld [vmem:[#allocation5 + $0xb28] sm:$0xff] }
 0x6cd   :  { %2404 = vmatpush1.bf16.msra.mxu0 %v2087_v39  ;;  %2568 = vmatpush1.bf16.msra.mxu1 %v2089_v63  ;;  %v2173_v39 = vld [vmem:[#allocation5 + $0xb38] sm:$0xff]  ;;  %v2179_v63 = vld [vmem:[#allocation5 + $0xb68] sm:$0xff] }
 0x6ce   :  { %2405 = vmatprep.subr.bf16.mxu0 %v2095_v44  ;;  %2569 = vmatprep.subr.bf16.mxu1 %v2097_v40  ;;  %v2181_v44 = vld [vmem:[#allocation5 + $0xb78] sm:$0xff]  ;;  %v2178_v40 = vld [vmem:[#allocation5 + $0xb60] sm:$0xff] }
 0x6d1   :  { %2406 = vmatpush1.bf16.msra.mxu0 %v2094_v14  ;;  %2570 = vmatpush1.bf16.msra.mxu1 %v2096_v46  ;;  %v2180_v14 = vld [vmem:[#allocation5 + $0xb70] sm:$0xff]  ;;  %v2186_v46 = vld [vmem:[#allocation5 + $0xba0] sm:$0xff] }
 0x6d2   :  { %2407 = vmatprep.subr.bf16.mxu0 %v2102_v49  ;;  %2571 = vmatprep.subr.bf16.mxu1 %v2104_v51  ;;  %v2188_v49 = vld [vmem:[#allocation5 + $0xbb0] sm:$0xff]  ;;  %v2185_v51 = vld [vmem:[#allocation5 + $0xb98] sm:$0xff] }
 0x6d5   :  { %2408 = vmatpush1.bf16.msra.mxu0 %v2101_v60  ;;  %2572 = vmatpush1.bf16.msra.mxu1 %v2103_v62  ;;  %v2187_v60 = vld [vmem:[#allocation5 + $0xba8] sm:$0xff]  ;;  %v2193_v62 = vld [vmem:[#allocation5 + $0xbd8] sm:$0xff] }
 0x6d6   :  { %2409 = vmatprep.subr.bf16.mxu0 %v2109_v47  ;;  %2573 = vmatprep.subr.bf16.mxu1 %v2111_v3  ;;  %v2195_v47 = vld [vmem:[#allocation5 + $0xbe8] sm:$0xff]  ;;  %v2192_v3 = vld [vmem:[#allocation5 + $0xbd0] sm:$0xff] }
 0x6d9   :  { %2410 = vmatpush1.bf16.msra.mxu0 %v2108_v16  ;;  %2574 = vmatpush1.bf16.msra.mxu1 %v2110_v30  ;;  %v2194_v16 = vld [vmem:[#allocation5 + $0xbe0] sm:$0xff]  ;;  %v2200_v30 = vld [vmem:[#allocation5 + $0xc10] sm:$0xff] }
 0x6da   :  { %2411 = vmatprep.subr.bf16.mxu0 %v2116_v17  ;;  %2575 = vmatprep.subr.bf16.mxu1 %v2118_v4  ;;  %v2202_v17 = vld [vmem:[#allocation5 + $0xc20] sm:$0xff]  ;;  %v2199_v4 = vld [vmem:[#allocation5 + $0xc08] sm:$0xff] }
 0x6dd   :  { %2412 = vmatpush1.bf16.msra.mxu0 %v2115_v5  ;;  %2576 = vmatpush1.bf16.msra.mxu1 %v2117_v20  ;;  %v2201_v5 = vld [vmem:[#allocation5 + $0xc18] sm:$0xff]  ;;  %v2207_v20 = vld [vmem:[#allocation5 + $0xc48] sm:$0xff] }
 0x6de   :  { %2413 = vmatprep.subr.bf16.mxu0 %v2123_v0  ;;  %2577 = vmatprep.subr.bf16.mxu1 %v2125_v6  ;;  %v2209_v0 = vld [vmem:[#allocation5 + $0xc58] sm:$0xff]  ;;  %v2206_v6 = vld [vmem:[#allocation5 + $0xc40] sm:$0xff] }
 0x6e1   :  { %2414 = vmatpush1.bf16.msra.mxu0 %v2122_v7  ;;  %2578 = vmatpush1.bf16.msra.mxu1 %v2124_v19  ;;  %v2208_v7 = vld [vmem:[#allocation5 + $0xc50] sm:$0xff]  ;;  %v2214_v19 = vld [vmem:[#allocation5 + $0xc80] sm:$0xff] }
 0x6e2   :  { %2415 = vmatprep.subr.bf16.mxu0 %v2130_v9  ;;  %2579 = vmatprep.subr.bf16.mxu1 %v2132_v10  ;;  %v2216_v9 = vld [vmem:[#allocation5 + $0xc90] sm:$0xff]  ;;  %v2213_v10 = vld [vmem:[#allocation5 + $0xc78] sm:$0xff] }
 0x6e5   :  { %2416 = vmatpush1.bf16.msra.mxu0 %v2129_v11  ;;  %2580 = vmatpush1.bf16.msra.mxu1 %v2131_v34  ;;  %v2215_v11 = vld [vmem:[#allocation5 + $0xc88] sm:$0xff]  ;;  %v2221_v34 = vld [vmem:[#allocation5 + $0xcb8] sm:$0xff] }
 0x6e6   :  { %2417 = vmatprep.subr.bf16.mxu0 %v2137_v61  ;;  %2581 = vmatprep.subr.bf16.mxu1 %v2139_v24  ;;  %v2223_v61 = vld [vmem:[#allocation5 + $0xcc8] sm:$0xff]  ;;  %v2220_v24 = vld [vmem:[#allocation5 + $0xcb0] sm:$0xff] }
 0x6e9   :  { %2418 = vmatpush1.bf16.msra.mxu0 %v2136_v35  ;;  %2582 = vmatpush1.bf16.msra.mxu1 %v2138_v21  ;;  %v2222_v35 = vld [vmem:[#allocation5 + $0xcc0] sm:$0xff]  ;;  %v2228_v21 = vld [vmem:[#allocation5 + $0xcf0] sm:$0xff] }
 0x6ea   :  { %2419 = vmatprep.subr.bf16.mxu0 %v2144_v38  ;;  %2583 = vmatprep.subr.bf16.mxu1 %v2146_v12  ;;  %v2230_v38 = vld [vmem:[#allocation5 + $0xd00] sm:$0xff]  ;;  %v2227_v12 = vld [vmem:[#allocation5 + $0xce8] sm:$0xff] }
 0x6ed   :  { %2420 = vmatpush1.bf16.msra.mxu0 %v2143_v13  ;;  %2584 = vmatpush1.bf16.msra.mxu1 %v2145_v15  ;;  %v2229_v13 = vld [vmem:[#allocation5 + $0xcf8] sm:$0xff]  ;;  %v2235_v15 = vld [vmem:[#allocation5 + $0xd28] sm:$0xff] }
 0x6ee   :  { %2430 = vmatprep.subr.bf16.mxu0 %v2151_v42  ;;  %2594 = vmatprep.subr.bf16.mxu1 %v2153_v43  ;;  %v2237_v42 = vld [vmem:[#allocation5 + $0xd38] sm:$0xff]  ;;  %v2234_v43 = vld [vmem:[#allocation5 + $0xd20] sm:$0xff] }
 0x6f0   :  { %2422 = vmatmul.mubr.bf16.vlgmr.msra.gmra.mrb[12].mxu0 %v3769_v45  ;;  %2586 = vmatmul.mubr.bf16.vlgmr.msra.gmra.mrb[20].mxu1 %v3769_v45 }
 0x6f1   :  { %2431 = vmatpush1.bf16.msra.mxu0 %v2150_v37  ;;  %2595 = vmatpush1.bf16.msra.mxu1 %v2152_v23  ;;  %v2236_v37 = vld [vmem:[#allocation5 + $0xd30] sm:$0xff]  ;;  %v2242_v23 = vld [vmem:[#allocation5 + $0xd60] sm:$0xff] }
 0x6f2   :  { %2432 = vmatprep.subr.bf16.mxu0 %v2158_v41  ;;  %2596 = vmatprep.subr.bf16.mxu1 %v2160_v52  ;;  %v2244_v41 = vld [vmem:[#allocation5 + $0xd70] sm:$0xff]  ;;  %v2241_v52 = vld [vmem:[#allocation5 + $0xd58] sm:$0xff] }
 0x6f3   :  { %2462 = vmatprep.mubr.bf16.mxu0 %v3773_v54  ;;  %2626 = vmatprep.mubr.bf16.mxu1 %v3773_v54 }
 0x6f5   :  { %2433 = vmatpush1.bf16.msra.mxu0 %v2157_v50  ;;  %2597 = vmatpush1.bf16.msra.mxu1 %v2159_v55  ;;  %v2243_v50 = vld [vmem:[#allocation5 + $0xd68] sm:$0xff]  ;;  %v2249_v55 = vld [vmem:[#allocation5 + $0xd98] sm:$0xff] }
 0x6f6   :  { %2434 = vmatprep.subr.bf16.mxu0 %v2165_v57  ;;  %2598 = vmatprep.subr.bf16.mxu1 %v2167_v58  ;;  %v2251_v57 = vld [vmem:[#allocation5 + $0xda8] sm:$0xff]  ;;  %v2248_v58 = vld [vmem:[#allocation5 + $0xd90] sm:$0xff] }
 0x6f9   :  { %2435 = vmatpush1.bf16.msra.mxu0 %v2164_v56  ;;  %2599 = vmatpush1.bf16.msra.mxu1 %v2166_v48  ;;  %v2250_v56 = vld [vmem:[#allocation5 + $0xda0] sm:$0xff]  ;;  %v2256_v48 = vld [vmem:[#allocation5 + $0xdd0] sm:$0xff] }
 0x6fa   :  { %2436 = vmatprep.subr.bf16.mxu0 %v2172_v18  ;;  %2600 = vmatprep.subr.bf16.mxu1 %v2174_v1  ;;  %v2258_v18 = vld [vmem:[#allocation5 + $0xde0] sm:$0xff]  ;;  %v2255_v1 = vld [vmem:[#allocation5 + $0xdc8] sm:$0xff] }
 0x6fd   :  { %2437 = vmatpush1.bf16.msra.mxu0 %v2171_v32  ;;  %2601 = vmatpush1.bf16.msra.mxu1 %v2173_v39  ;;  %v2257_v32 = vld [vmem:[#allocation5 + $0xdd8] sm:$0xff]  ;;  %v1819_v39 = vld [vmem:[#allocation5 + $0x28] sm:$0xff] }
 0x6fe   :  { %2438 = vmatprep.subr.bf16.mxu0 %v2179_v63  ;;  %2602 = vmatprep.subr.bf16.mxu1 %v2181_v44  ;;  %v1876_v63 = vld [vmem:[#allocation5 + $0x1f0] sm:$0xff]  ;;  %v3781_v44 = vpack.c.bf16 %v3735_v53, %v3735_v53  ;;  %v1833_v53 = vld [vmem:[#allocation5 + $0x98] sm:$0xff] }
 0x701   :  { %2439 = vmatpush1.bf16.msra.mxu0 %v2178_v40  ;;  %2603 = vmatpush1.bf16.msra.mxu1 %v2180_v14  ;;  %v1818_v40 = vld [vmem:[#allocation5 + $0x20] sm:$0xff]  ;;  %v1820_v14 = vld [vmem:[#allocation5 + $0x30] sm:$0xff] }
 0x702   :  { %2440 = vmatprep.subr.bf16.mxu0 %v2186_v46  ;;  %2604 = vmatprep.subr.bf16.mxu1 %v2188_v49  ;;  %v1826_v46 = vld [vmem:[#allocation5 + $0x60] sm:$0xff]  ;;  %v1883_v49 = vld [vmem:[#allocation5 + $0x228] sm:$0xff] }
 0x705   :  { %2441 = vmatpush1.bf16.msra.mxu0 %v2185_v51  ;;  %2605 = vmatpush1.bf16.msra.mxu1 %v2187_v60  ;;  %v1825_v51 = vld [vmem:[#allocation5 + $0x58] sm:$0xff]  ;;  %v1827_v60 = vld [vmem:[#allocation5 + $0x68] sm:$0xff] }
 0x706   :  { %2442 = vmatprep.subr.bf16.mxu0 %v2193_v62  ;;  %2606 = vmatprep.subr.bf16.mxu1 %v2195_v47  ;;  %v1890_v62 = vld [vmem:[#allocation5 + $0x260] sm:$0xff]  ;;  %v1832_v47 = vld [vmem:[#allocation5 + $0x90] sm:$0xff] }
 0x709   :  { %2443 = vmatpush1.bf16.msra.mxu0 %v2192_v3  ;;  %2607 = vmatpush1.bf16.msra.mxu1 %v2194_v16  ;;  %v1834_v3 = vld [vmem:[#allocation5 + $0xa0] sm:$0xff]  ;;  %v1840_v16 = vld [vmem:[#allocation5 + $0xd0] sm:$0xff] }
 0x70a   :  { %2444 = vmatprep.subr.bf16.mxu0 %v2200_v30  ;;  %2608 = vmatprep.subr.bf16.mxu1 %v2202_v17  ;;  %v1897_v30 = vld [vmem:[#allocation5 + $0x298] sm:$0xff]  ;;  %v1839_v17 = vld [vmem:[#allocation5 + $0xc8] sm:$0xff] }
 0x70d   :  { %2445 = vmatpush1.bf16.msra.mxu0 %v2199_v4  ;;  %2609 = vmatpush1.bf16.msra.mxu1 %v2201_v5  ;;  %v1841_v4 = vld [vmem:[#allocation5 + $0xd8] sm:$0xff]  ;;  %v1847_v5 = vld [vmem:[#allocation5 + $0x108] sm:$0xff] }
 0x70e   :  { %2446 = vmatprep.subr.bf16.mxu0 %v2207_v20  ;;  %2610 = vmatprep.subr.bf16.mxu1 %v2209_v0  ;;  %v1904_v20 = vld [vmem:[#allocation5 + $0x2d0] sm:$0xff] }
 0x70f   :  { %v1848_v0 = vld [vmem:[#allocation5 + $0x110] sm:$0xff] }
 0x711   :  { %2447 = vmatpush1.bf16.msra.mxu0 %v2206_v6  ;;  %2611 = vmatpush1.bf16.msra.mxu1 %v2208_v7  ;;  %v1854_v6 = vld [vmem:[#allocation5 + $0x140] sm:$0xff]  ;;  %v1911_v7 = vld [vmem:[#allocation5 + $0x308] sm:$0xff] }
 0x712   :  { %2448 = vmatprep.subr.bf16.mxu0 %v2214_v19  ;;  %2612 = vmatprep.subr.bf16.mxu1 %v2216_v9  ;;  %v1853_v19 = vld [vmem:[#allocation5 + $0x138] sm:$0xff]  ;;  %v1855_v9 = vld [vmem:[#allocation5 + $0x148] sm:$0xff] }
 0x715   :  { %2449 = vmatpush1.bf16.msra.mxu0 %v2213_v10  ;;  %2613 = vmatpush1.bf16.msra.mxu1 %v2215_v11  ;;  %v1861_v10 = vld [vmem:[#allocation5 + $0x178] sm:$0xff]  ;;  %v1918_v11 = vld [vmem:[#allocation5 + $0x340] sm:$0xff] }
 0x716   :  { %2450 = vmatprep.subr.bf16.mxu0 %v2221_v34  ;;  %2614 = vmatprep.subr.bf16.mxu1 %v2223_v61  ;;  %v1860_v34 = vld [vmem:[#allocation5 + $0x170] sm:$0xff]  ;;  %v1862_v61 = vld [vmem:[#allocation5 + $0x180] sm:$0xff] }
 0x719   :  { %2451 = vmatpush1.bf16.msra.mxu0 %v2220_v24  ;;  %2615 = vmatpush1.bf16.msra.mxu1 %v2222_v35  ;;  %v1868_v24 = vld [vmem:[#allocation5 + $0x1b0] sm:$0xff]  ;;  %v1925_v35 = vld [vmem:[#allocation5 + $0x378] sm:$0xff] }
 0x71a   :  { %2452 = vmatprep.subr.bf16.mxu0 %v2228_v21  ;;  %2616 = vmatprep.subr.bf16.mxu1 %v2230_v38  ;;  %v1867_v21 = vld [vmem:[#allocation5 + $0x1a8] sm:$0xff]  ;;  %v1869_v38 = vld [vmem:[#allocation5 + $0x1b8] sm:$0xff] }
 0x71d   :  { %2453 = vmatpush1.bf16.msra.mxu0 %v2227_v12  ;;  %2617 = vmatpush1.bf16.msra.mxu1 %v2229_v13  ;;  %v1875_v12 = vld [vmem:[#allocation5 + $0x1e8] sm:$0xff]  ;;  %v1988_v13 = vld [vmem:[#allocation5 + $0x570] sm:$0xff] }
 0x71e   :  { %2454 = vmatprep.subr.bf16.mxu0 %v2235_v15  ;;  %2618 = vmatprep.subr.bf16.mxu1 %v2237_v42  ;;  %v1874_v15 = vld [vmem:[#allocation5 + $0x1e0] sm:$0xff]  ;;  %v1932_v42 = vld [vmem:[#allocation5 + $0x3b0] sm:$0xff] }
 0x721   :  { %2455 = vmatpush1.bf16.msra.mxu0 %v2234_v43  ;;  %2619 = vmatpush1.bf16.msra.mxu1 %v2236_v37  ;;  %v1882_v43 = vld [vmem:[#allocation5 + $0x220] sm:$0xff]  ;;  %v1995_v37 = vld [vmem:[#allocation5 + $0x5a8] sm:$0xff] }
 0x722   :  { %2456 = vmatprep.subr.bf16.mxu0 %v2242_v23  ;;  %2620 = vmatprep.subr.bf16.mxu1 %v2244_v41  ;;  %v1881_v23 = vld [vmem:[#allocation5 + $0x218] sm:$0xff]  ;;  %v1939_v41 = vld [vmem:[#allocation5 + $0x3e8] sm:$0xff] }
 0x725   :  { %2457 = vmatpush1.bf16.msra.mxu0 %v2241_v52  ;;  %2621 = vmatpush1.bf16.msra.mxu1 %v2243_v50  ;;  %v1889_v52 = vld [vmem:[#allocation5 + $0x258] sm:$0xff]  ;;  %v2002_v50 = vld [vmem:[#allocation5 + $0x5e0] sm:$0xff] }
 0x726   :  { %2458 = vmatprep.subr.bf16.mxu0 %v2249_v55  ;;  %2622 = vmatprep.subr.bf16.mxu1 %v2251_v57  ;;  %v1888_v55 = vld [vmem:[#allocation5 + $0x250] sm:$0xff]  ;;  %v1946_v57 = vld [vmem:[#allocation5 + $0x420] sm:$0xff] }
 0x729   :  { %2459 = vmatpush1.bf16.msra.mxu0 %v2248_v58  ;;  %2623 = vmatpush1.bf16.msra.mxu1 %v2250_v56  ;;  %v1896_v58 = vld [vmem:[#allocation5 + $0x290] sm:$0xff]  ;;  %v2009_v56 = vld [vmem:[#allocation5 + $0x618] sm:$0xff] }
 0x72a   :  { %2460 = vmatprep.subr.bf16.mxu0 %v2256_v48  ;;  %2624 = vmatprep.subr.bf16.mxu1 %v2258_v18  ;;  %v1895_v48 = vld [vmem:[#allocation5 + $0x288] sm:$0xff]  ;;  %v1953_v18 = vld [vmem:[#allocation5 + $0x458] sm:$0xff] }
 0x72d   :  { %2461 = vmatpush1.bf16.msra.mxu0 %v2255_v1  ;;  %2625 = vmatpush1.bf16.msra.mxu1 %v2257_v32  ;;  %v1903_v1 = vld [vmem:[#allocation5 + $0x2c8] sm:$0xff]  ;;  %v2016_v32 = vld [vmem:[#allocation5 + $0x650] sm:$0xff] }
 0x72e   :  { %2635 = vmatprep.subr.bf16.mxu0 %v1819_v39  ;;  %3036 = vmatprep.subr.bf16.mxu1 %v1876_v63  ;;  %v1902_v39 = vld [vmem:[#allocation5 + $0x2c0] sm:$0xff]  ;;  %v1960_v63 = vld [vmem:[#allocation5 + $0x490] sm:$0xff] }
 0x730   :  { %2463 = vmatmul.mubr.bf16.vlgmr.msra.gmra.mrb[12].mxu0 %v3781_v44  ;;  %2627 = vmatmul.mubr.bf16.vlgmr.msra.gmra.mrb[20].mxu1 %v3781_v44 }
 0x731   :  { %2636 = vmatpush1.bf16.msra.mxu0 %v1818_v40  ;;  %3037 = vmatpush3.bf16.msra.mxu1 %v1820_v14  ;;  %v1910_v40 = vld [vmem:[#allocation5 + $0x300] sm:$0xff]  ;;  %v2023_v14 = vld [vmem:[#allocation5 + $0x688] sm:$0xff] }
 0x732   :  { %2637 = vmatprep.subr.bf16.mxu0 %v1826_v46  ;;  %3038 = vmatprep.subr.bf16.mxu1 %v1883_v49  ;;  %v1909_v46 = vld [vmem:[#allocation5 + $0x2f8] sm:$0xff]  ;;  %v1967_v49 = vld [vmem:[#allocation5 + $0x4c8] sm:$0xff] }
 0x733   :  { %2667 = vmatprep.mubr.bf16.mxu0 %v3739_v36  ;;  %2831 = vmatprep.mubr.bf16.mxu1 %v3739_v36  ;;  %v1846_v36 = vld [vmem:[#allocation5 + $0x100] sm:$0xff] }
 0x735   :  { %2638 = vmatpush1.bf16.msra.mxu0 %v1825_v51  ;;  %3039 = vmatpush3.bf16.msra.mxu1 %v1827_v60  ;;  %v1917_v51 = vld [vmem:[#allocation5 + $0x338] sm:$0xff]  ;;  %v2030_v60 = vld [vmem:[#allocation5 + $0x6c0] sm:$0xff] }
 0x736   :  { %2639 = vmatprep.subr.bf16.mxu0 %v1833_v53  ;;  %3040 = vmatprep.subr.bf16.mxu1 %v1890_v62  ;;  %v1916_v53 = vld [vmem:[#allocation5 + $0x330] sm:$0xff]  ;;  %v1974_v62 = vld [vmem:[#allocation5 + $0x500] sm:$0xff] }
 0x739   :  { %2640 = vmatpush1.bf16.msra.mxu0 %v1832_v47  ;;  %3041 = vmatpush3.bf16.msra.mxu1 %v1834_v3  ;;  %v1924_v47 = vld [vmem:[#allocation5 + $0x370] sm:$0xff]  ;;  %v2037_v3 = vld [vmem:[#allocation5 + $0x6f8] sm:$0xff] }
 0x73a   :  { %2641 = vmatprep.subr.bf16.mxu0 %v1840_v16  ;;  %3042 = vmatprep.subr.bf16.mxu1 %v1897_v30  ;;  %v1923_v16 = vld [vmem:[#allocation5 + $0x368] sm:$0xff]  ;;  %v1981_v30 = vld [vmem:[#allocation5 + $0x538] sm:$0xff] }
 0x73d   :  { %2642 = vmatpush1.bf16.msra.mxu0 %v1839_v17  ;;  %3043 = vmatpush3.bf16.msra.mxu1 %v1841_v4  ;;  %v1931_v17 = vld [vmem:[#allocation5 + $0x3a8] sm:$0xff]  ;;  %v2100_v4 = vld [vmem:[#allocation5 + $0x8f0] sm:$0xff] }
 0x73e   :  { %2643 = vmatprep.subr.bf16.mxu0 %v1847_v5  ;;  %3044 = vmatprep.subr.bf16.mxu1 %v1904_v20  ;;  %v1930_v5 = vld [vmem:[#allocation5 + $0x3a0] sm:$0xff]  ;;  %v2044_v20 = vld [vmem:[#allocation5 + $0x730] sm:$0xff] }
 0x741   :  { %2644 = vmatpush1.bf16.msra.mxu0 %v1846_v36  ;;  %3045 = vmatpush3.bf16.msra.mxu1 %v1848_v0  ;;  %v1938_v36 = vld [vmem:[#allocation5 + $0x3e0] sm:$0xff]  ;;  %v2107_v0 = vld [vmem:[#allocation5 + $0x928] sm:$0xff] }
 0x742   :  { %2645 = vmatprep.subr.bf16.mxu0 %v1854_v6  ;;  %3046 = vmatprep.subr.bf16.mxu1 %v1911_v7  ;;  %v1937_v6 = vld [vmem:[#allocation5 + $0x3d8] sm:$0xff]  ;;  %v2051_v7 = vld [vmem:[#allocation5 + $0x768] sm:$0xff] }
 0x745   :  { %2646 = vmatpush1.bf16.msra.mxu0 %v1853_v19  ;;  %3047 = vmatpush3.bf16.msra.mxu1 %v1855_v9  ;;  %v1945_v19 = vld [vmem:[#allocation5 + $0x418] sm:$0xff]  ;;  %v2114_v9 = vld [vmem:[#allocation5 + $0x960] sm:$0xff] }
 0x746   :  { %2647 = vmatprep.subr.bf16.mxu0 %v1861_v10  ;;  %3048 = vmatprep.subr.bf16.mxu1 %v1918_v11  ;;  %v1944_v10 = vld [vmem:[#allocation5 + $0x410] sm:$0xff] }
 0x747   :  { %v1952_v11 = vld [vmem:[#allocation5 + $0x450] sm:$0xff] }
 0x749   :  { %2648 = vmatpush1.bf16.msra.mxu0 %v1860_v34  ;;  %3049 = vmatpush3.bf16.msra.mxu1 %v1862_v61  ;;  %v2121_v34 = vld [vmem:[#allocation5 + $0x998] sm:$0xff]  ;;  %v1951_v61 = vld [vmem:[#allocation5 + $0x448] sm:$0xff] }
 0x74a   :  { %2649 = vmatprep.subr.bf16.mxu0 %v1868_v24  ;;  %3050 = vmatprep.subr.bf16.mxu1 %v1925_v35  ;;  %v2065_v24 = vld [vmem:[#allocation5 + $0x7d8] sm:$0xff]  ;;  %v1959_v35 = vld [vmem:[#allocation5 + $0x488] sm:$0xff] }
 0x74d   :  { %2650 = vmatpush1.bf16.msra.mxu0 %v1867_v21  ;;  %3051 = vmatpush3.bf16.msra.mxu1 %v1869_v38  ;;  %v2128_v21 = vld [vmem:[#allocation5 + $0x9d0] sm:$0xff] }
 0x74e   :  { %2651 = vmatprep.subr.bf16.mxu0 %v1875_v12  ;;  %3058 = vmatprep.subr.bf16.mxu1 %v1988_v13  ;;  %v2072_v38 = vld [vmem:[#allocation5 + $0x810] sm:$0xff]  ;;  %v1966_v12 = vld [vmem:[#allocation5 + $0x4c0] sm:$0xff]  ;;  %v2135_v13 = vld [vmem:[#allocation5 + $0xa08] sm:$0xff] }
 0x750   :  { %2832 = vmatmul.mubr.bf16.vlgmr.msra.gmra.mrb[24].mxu1 %v3745_v59 }
 0x751   :  { %2652 = vmatpush1.bf16.msra.mxu0 %v1874_v15  ;;  %3059 = vmatpush3.bf16.msra.mxu1 %v1932_v42  ;;  %v1965_v15 = vld [vmem:[#allocation5 + $0x4b8] sm:$0xff]  ;;  %v2079_v42 = vld [vmem:[#allocation5 + $0x848] sm:$0xff] }
 0x752   :  { %2653 = vmatprep.subr.bf16.mxu0 %v1882_v43  ;;  %3060 = vmatprep.subr.bf16.mxu1 %v1995_v37  ;;  %v1973_v43 = vld [vmem:[#allocation5 + $0x4f8] sm:$0xff]  ;;  %v2142_v37 = vld [vmem:[#allocation5 + $0xa40] sm:$0xff] }
 0x753   :  { %2871 = vmatprep.mubr.bf16.mxu1 %v3749_v2 }
 0x755   :  { %2654 = vmatpush1.bf16.msra.mxu0 %v1881_v23  ;;  %3061 = vmatpush3.bf16.msra.mxu1 %v1939_v41  ;;  %v1972_v23 = vld [vmem:[#allocation5 + $0x4f0] sm:$0xff]  ;;  %v2086_v41 = vld [vmem:[#allocation5 + $0x880] sm:$0xff] }
 0x756   :  { %2655 = vmatprep.subr.bf16.mxu0 %v1889_v52  ;;  %3062 = vmatprep.subr.bf16.mxu1 %v2002_v50  ;;  %v1980_v52 = vld [vmem:[#allocation5 + $0x530] sm:$0xff]  ;;  %v2149_v50 = vld [vmem:[#allocation5 + $0xa78] sm:$0xff] }
 0x759   :  { %2656 = vmatpush1.bf16.msra.mxu0 %v1888_v55  ;;  %3063 = vmatpush3.bf16.msra.mxu1 %v1946_v57  ;;  %v1979_v55 = vld [vmem:[#allocation5 + $0x528] sm:$0xff]  ;;  %v2093_v57 = vld [vmem:[#allocation5 + $0x8b8] sm:$0xff] }
 0x75a   :  { %2657 = vmatprep.subr.bf16.mxu0 %v1896_v58  ;;  %3064 = vmatprep.subr.bf16.mxu1 %v2009_v56  ;;  %v1987_v58 = vld [vmem:[#allocation5 + $0x568] sm:$0xff]  ;;  %v2212_v56 = vld [vmem:[#allocation5 + $0xc70] sm:$0xff] }
 0x75d   :  { %2658 = vmatpush1.bf16.msra.mxu0 %v1895_v48  ;;  %3065 = vmatpush3.bf16.msra.mxu1 %v1953_v18  ;;  %v1986_v48 = vld [vmem:[#allocation5 + $0x560] sm:$0xff]  ;;  %v2156_v18 = vld [vmem:[#allocation5 + $0xab0] sm:$0xff] }
 0x75e   :  { %2659 = vmatprep.subr.bf16.mxu0 %v1903_v1  ;;  %3066 = vmatprep.subr.bf16.mxu1 %v2016_v32  ;;  %v1994_v1 = vld [vmem:[#allocation5 + $0x5a0] sm:$0xff]  ;;  %v2219_v32 = vld [vmem:[#allocation5 + $0xca8] sm:$0xff] }
 0x761   :  { %2660 = vmatpush1.bf16.msra.mxu0 %v1902_v39  ;;  %3067 = vmatpush3.bf16.msra.mxu1 %v1960_v63  ;;  %v1993_v39 = vld [vmem:[#allocation5 + $0x598] sm:$0xff]  ;;  %v2163_v63 = vld [vmem:[#allocation5 + $0xae8] sm:$0xff] }
 0x762   :  { %2661 = vmatprep.subr.bf16.mxu0 %v1910_v40  ;;  %3068 = vmatprep.subr.bf16.mxu1 %v2023_v14  ;;  %v2001_v40 = vld [vmem:[#allocation5 + $0x5d8] sm:$0xff]  ;;  %v2226_v14 = vld [vmem:[#allocation5 + $0xce0] sm:$0xff] }
 0x765   :  { %2662 = vmatpush1.bf16.msra.mxu0 %v1909_v46  ;;  %3069 = vmatpush3.bf16.msra.mxu1 %v1967_v49  ;;  %v2000_v46 = vld [vmem:[#allocation5 + $0x5d0] sm:$0xff]  ;;  %v2170_v49 = vld [vmem:[#allocation5 + $0xb20] sm:$0xff] }
 0x766   :  { %2663 = vmatprep.subr.bf16.mxu0 %v1917_v51  ;;  %3070 = vmatprep.subr.bf16.mxu1 %v2030_v60  ;;  %v2008_v51 = vld [vmem:[#allocation5 + $0x610] sm:$0xff]  ;;  %v2233_v60 = vld [vmem:[#allocation5 + $0xd18] sm:$0xff] }
 0x769   :  { %2664 = vmatpush1.bf16.msra.mxu0 %v1916_v53  ;;  %3071 = vmatpush3.bf16.msra.mxu1 %v1974_v62  ;;  %v2007_v53 = vld [vmem:[#allocation5 + $0x608] sm:$0xff]  ;;  %v2177_v62 = vld [vmem:[#allocation5 + $0xb58] sm:$0xff] }
 0x76a   :  { %2665 = vmatprep.subr.bf16.mxu0 %v1924_v47  ;;  %3072 = vmatprep.subr.bf16.mxu1 %v2037_v3  ;;  %v2015_v47 = vld [vmem:[#allocation5 + $0x648] sm:$0xff]  ;;  %v2240_v3 = vld [vmem:[#allocation5 + $0xd50] sm:$0xff] }
 0x76d   :  { %2666 = vmatpush1.bf16.msra.mxu0 %v1923_v16  ;;  %3073 = vmatpush3.bf16.msra.mxu1 %v1981_v30  ;;  %v2014_v16 = vld [vmem:[#allocation5 + $0x640] sm:$0xff]  ;;  %v2184_v30 = vld [vmem:[#allocation5 + $0xb90] sm:$0xff] }
 0x76e   :  { %2676 = vmatprep.subr.bf16.mxu0 %v1931_v17  ;;  %3080 = vmatprep.subr.bf16.mxu1 %v2100_v4  ;;  %v2022_v17 = vld [vmem:[#allocation5 + $0x680] sm:$0xff]  ;;  %v2247_v4 = vld [vmem:[#allocation5 + $0xd88] sm:$0xff] }
 0x770   :  { %2668 = vmatmul.mubr.bf16.vlgmr.msra.gmra.mrb[16].mxu0 %v3745_v59  ;;  %2872 = vmatmul.mubr.bf16.vlgmr.msra.gmra.mrb[28].mxu1 %v3757_v8  ;;  %v2058_v59 = vld [vmem:[#allocation5 + $0x7a0] sm:$0xff] }
 0x771   :  { %2677 = vmatpush1.bf16.msra.mxu0 %v1930_v5  ;;  %3081 = vmatpush3.bf16.msra.mxu1 %v2044_v20  ;;  %v2021_v5 = vld [vmem:[#allocation5 + $0x678] sm:$0xff]  ;;  %v2191_v20 = vld [vmem:[#allocation5 + $0xbc8] sm:$0xff] }
 0x772   :  { %2678 = vmatprep.subr.bf16.mxu0 %v1938_v36  ;;  %3082 = vmatprep.subr.bf16.mxu1 %v2107_v0  ;;  %v2029_v36 = vld [vmem:[#allocation5 + $0x6b8] sm:$0xff]  ;;  %v2254_v0 = vld [vmem:[#allocation5 + $0xdc0] sm:$0xff] }
 0x773   :  { %2708 = vmatprep.mubr.bf16.mxu0 %v3749_v2  ;;  %2911 = vmatprep.mubr.bf16.mxu1 %v3761_v22  ;;  %v1958_v2 = vld [vmem:[#allocation5 + $0x480] sm:$0xff] }
 0x775   :  { %2679 = vmatpush1.bf16.msra.mxu0 %v1937_v6  ;;  %3083 = vmatpush3.bf16.msra.mxu1 %v2051_v7  ;;  %v2028_v6 = vld [vmem:[#allocation5 + $0x6b0] sm:$0xff]  ;;  %v2198_v7 = vld [vmem:[#allocation5 + $0xc00] sm:$0xff] }
 0x776   :  { %2680 = vmatprep.subr.bf16.mxu0 %v1945_v19  ;;  %3084 = vmatprep.subr.bf16.mxu1 %v2114_v9  ;;  %v2036_v19 = vld [vmem:[#allocation5 + $0x6f0] sm:$0xff]  ;;  %v2261_v9 = vld [vmem:[#allocation5 + $0xdf8] sm:$0xff] }
 0x779   :  { %2681 = vmatpush1.bf16.msra.mxu0 %v1944_v10  ;;  %3085 = vmatpush3.bf16.msra.mxu1 %v2058_v59  ;;  %v2035_v10 = vld [vmem:[#allocation5 + $0x6e8] sm:$0xff]  ;;  %v2205_v59 = vld [vmem:[#allocation5 + $0xc38] sm:$0xff] }
 0x77a   :  { %2682 = vmatprep.subr.bf16.mxu0 %v1952_v11  ;;  %3086 = vmatprep.subr.bf16.mxu1 %v2121_v34  ;;  %v2043_v11 = vld [vmem:[#allocation5 + $0x728] sm:$0xff]  ;;  %v2042_v34 = vld [vmem:[#allocation5 + $0x720] sm:$0xff] }
 0x77d   :  { %2683 = vmatpush1.bf16.msra.mxu0 %v1951_v61  ;;  %3087 = vmatpush3.bf16.msra.mxu1 %v2065_v24  ;;  %v2050_v61 = vld [vmem:[#allocation5 + $0x760] sm:$0xff]  ;;  %v2049_v24 = vld [vmem:[#allocation5 + $0x758] sm:$0xff] }
 0x77e   :  { %2684 = vmatprep.subr.bf16.mxu0 %v1959_v35  ;;  %3088 = vmatprep.subr.bf16.mxu1 %v2128_v21  ;;  %v2057_v35 = vld [vmem:[#allocation5 + $0x798] sm:$0xff]  ;;  %v2056_v21 = vld [vmem:[#allocation5 + $0x790] sm:$0xff] }
 0x781   :  { %2685 = vmatpush1.bf16.msra.mxu0 %v1958_v2  ;;  %3089 = vmatpush3.bf16.msra.mxu1 %v2072_v38  ;;  %v2064_v2 = vld [vmem:[#allocation5 + $0x7d0] sm:$0xff]  ;;  %v2063_v38 = vld [vmem:[#allocation5 + $0x7c8] sm:$0xff] }
 0x782   :  { %2686 = vmatprep.subr.bf16.mxu0 %v1966_v12  ;;  %3090 = vmatprep.subr.bf16.mxu1 %v2135_v13  ;;  %v2071_v12 = vld [vmem:[#allocation5 + $0x808] sm:$0xff]  ;;  %v2070_v13 = vld [vmem:[#allocation5 + $0x800] sm:$0xff] }
 0x785   :  { %2687 = vmatpush1.bf16.msra.mxu0 %v1965_v15  ;;  %3091 = vmatpush3.bf16.msra.mxu1 %v2079_v42  ;;  %v2077_v15 = vld [vmem:[#allocation5 + $0x838] sm:$0xff] }
 0x786   :  { %2688 = vmatprep.subr.bf16.mxu0 %v1973_v43  ;;  %3092 = vmatprep.subr.bf16.mxu1 %v2142_v37  ;;  %v2085_v42 = vld [vmem:[#allocation5 + $0x878] sm:$0xff]  ;;  %v2092_v43 = vld [vmem:[#allocation5 + $0x8b0] sm:$0xff]  ;;  %v2091_v37 = vld [vmem:[#allocation5 + $0x8a8] sm:$0xff] }
 0x789   :  { %2689 = vmatpush1.bf16.msra.mxu0 %v1972_v23  ;;  %3093 = vmatpush3.bf16.msra.mxu1 %v2086_v41  ;;  %v2099_v23 = vld [vmem:[#allocation5 + $0x8e8] sm:$0xff]  ;;  %v2098_v41 = vld [vmem:[#allocation5 + $0x8e0] sm:$0xff] }
 0x78a   :  { %2690 = vmatprep.subr.bf16.mxu0 %v1980_v52  ;;  %3094 = vmatprep.subr.bf16.mxu1 %v2149_v50  ;;  %v2106_v52 = vld [vmem:[#allocation5 + $0x920] sm:$0xff]  ;;  %v2105_v50 = vld [vmem:[#allocation5 + $0x918] sm:$0xff] }
 0x78d   :  { %2691 = vmatpush1.bf16.msra.mxu0 %v1979_v55  ;;  %3095 = vmatpush3.bf16.msra.mxu1 %v2093_v57  ;;  %v2113_v55 = vld [vmem:[#allocation5 + $0x958] sm:$0xff]  ;;  %v2112_v57 = vld [vmem:[#allocation5 + $0x950] sm:$0xff] }
 0x78e   :  { %2692 = vmatprep.subr.bf16.mxu0 %v1987_v58  ;;  %3102 = vmatprep.subr.bf16.mxu1 %v2212_v56  ;;  %v2120_v58 = vld [vmem:[#allocation5 + $0x990] sm:$0xff]  ;;  %v2119_v56 = vld [vmem:[#allocation5 + $0x988] sm:$0xff] }
 0x790   :  { %2912 = vmatmul.mubr.bf16.vlgmr.msra.gmra.mrb[32].mxu1 %v3769_v45 }
 0x791   :  { %2693 = vmatpush1.bf16.msra.mxu0 %v1986_v48  ;;  %3103 = vmatpush3.bf16.msra.mxu1 %v2156_v18  ;;  %v2127_v48 = vld [vmem:[#allocation5 + $0x9c8] sm:$0xff]  ;;  %v2126_v18 = vld [vmem:[#allocation5 + $0x9c0] sm:$0xff] }
 0x792   :  { %2694 = vmatprep.subr.bf16.mxu0 %v1994_v1  ;;  %3104 = vmatprep.subr.bf16.mxu1 %v2219_v32  ;;  %v2134_v1 = vld [vmem:[#allocation5 + $0xa00] sm:$0xff]  ;;  %v2133_v32 = vld [vmem:[#allocation5 + $0x9f8] sm:$0xff] }
 0x793   :  { %2951 = vmatprep.mubr.bf16.mxu1 %v3773_v54 }
 0x795   :  { %2695 = vmatpush1.bf16.msra.mxu0 %v1993_v39  ;;  %3105 = vmatpush3.bf16.msra.mxu1 %v2163_v63  ;;  %v2141_v39 = vld [vmem:[#allocation5 + $0xa38] sm:$0xff]  ;;  %v2140_v63 = vld [vmem:[#allocation5 + $0xa30] sm:$0xff] }
 0x796   :  { %2696 = vmatprep.subr.bf16.mxu0 %v2001_v40  ;;  %3106 = vmatprep.subr.bf16.mxu1 %v2226_v14  ;;  %v2148_v40 = vld [vmem:[#allocation5 + $0xa70] sm:$0xff]  ;;  %v2147_v14 = vld [vmem:[#allocation5 + $0xa68] sm:$0xff] }
 0x799   :  { %2697 = vmatpush1.bf16.msra.mxu0 %v2000_v46  ;;  %3107 = vmatpush3.bf16.msra.mxu1 %v2170_v49  ;;  %v2155_v46 = vld [vmem:[#allocation5 + $0xaa8] sm:$0xff]  ;;  %v2154_v49 = vld [vmem:[#allocation5 + $0xaa0] sm:$0xff] }
 0x79a   :  { %2698 = vmatprep.subr.bf16.mxu0 %v2008_v51  ;;  %3108 = vmatprep.subr.bf16.mxu1 %v2233_v60  ;;  %v2162_v51 = vld [vmem:[#allocation5 + $0xae0] sm:$0xff]  ;;  %v2161_v60 = vld [vmem:[#allocation5 + $0xad8] sm:$0xff] }
 0x79d   :  { %2699 = vmatpush1.bf16.msra.mxu0 %v2007_v53  ;;  %3109 = vmatpush3.bf16.msra.mxu1 %v2177_v62  ;;  %v2169_v53 = vld [vmem:[#allocation5 + $0xb18] sm:$0xff]  ;;  %v2168_v62 = vld [vmem:[#allocation5 + $0xb10] sm:$0xff] }
 0x79e   :  { %2700 = vmatprep.subr.bf16.mxu0 %v2015_v47  ;;  %3110 = vmatprep.subr.bf16.mxu1 %v2240_v3  ;;  %v2176_v47 = vld [vmem:[#allocation5 + $0xb50] sm:$0xff]  ;;  %v2175_v3 = vld [vmem:[#allocation5 + $0xb48] sm:$0xff] }
 0x7a1   :  { %2701 = vmatpush1.bf16.msra.mxu0 %v2014_v16  ;;  %3111 = vmatpush3.bf16.msra.mxu1 %v2184_v30  ;;  %v2183_v16 = vld [vmem:[#allocation5 + $0xb88] sm:$0xff]  ;;  %v3800_v30 = vld [vmem:[#allocation9 + $0x1d] sm:$0xff] }
 0x7a2   :  { %2702 = vmatprep.subr.bf16.mxu0 %v2022_v17  ;;  %3112 = vmatprep.subr.bf16.mxu1 %v2247_v4  ;;  %v2182_v17 = vld [vmem:[#allocation5 + $0xb80] sm:$0xff]  ;;  %v2283_v4 = vrot.slane %v3800_v30, %v3547_v28 }
 0x7a5   :  { %2703 = vmatpush1.bf16.msra.mxu0 %v2021_v5  ;;  %3113 = vmatpush3.bf16.msra.mxu1 %v2191_v20  ;;  %v2279_v5 = vrot.slane %v3800_v30, %v3497_v26  ;;  %v2287_v20 = vrot.slane %v3800_v30, %v3550_v29  ;;  %v2204_v29 = vld [vmem:[#allocation5 + $0xc30] sm:$0xff] }
 0x7a6   :  { %2704 = vmatprep.subr.bf16.mxu0 %v2029_v36  ;;  %3114 = vmatprep.subr.bf16.mxu1 %v2254_v0  ;;  %v2189_v36 = vld [vmem:[#allocation5 + $0xbb8] sm:$0xff] }
 0x7a9   :  { %2705 = vmatpush1.bf16.msra.mxu0 %v2028_v6  ;;  %3115 = vmatpush3.bf16.msra.mxu1 %v2198_v7  ;;  %v2197_v7 = vld [vmem:[#allocation5 + $0xbf8] sm:$0xff] }
 0x7aa   :  { %2706 = vmatprep.subr.bf16.mxu0 %v2036_v19  ;;  %3116 = vmatprep.subr.bf16.mxu1 %v2261_v9 }
 0x7ad   :  { %2707 = vmatpush1.bf16.msra.mxu0 %v2035_v10  ;;  %3117 = vmatpush3.bf16.msra.mxu1 %v2205_v59 }
 0x7ae   :  { %2717 = vmatprep.subr.bf16.mxu0 %v2043_v11 }
 0x7b0   :  { %2709 = vmatmul.mubr.bf16.vlgmr.msra.gmra.mrb[16].mxu0 %v3757_v8  ;;  %2952 = vmatmul.mubr.bf16.vlgmr.msra.gmra.mrb[36].mxu1 %v3781_v44  ;;  %v2078_v8 = vld [vmem:[#allocation5 + $0x840] sm:$0xff] }
 0x7b1   :  { %2718 = vmatpush1.bf16.msra.mxu0 %v2042_v34  ;;  %2749 = vmatprep.mubr.bf16.mxu0 %v3761_v22  ;;  %v2084_v22 = vld [vmem:[#allocation5 + $0x870] sm:$0xff] }
 0x7b2   :  { %2719 = vmatprep.subr.bf16.mxu0 %v2050_v61 }
 0x7b5   :  { %2720 = vmatpush1.bf16.msra.mxu0 %v2049_v24  ;;  %v2196_v24 = vld [vmem:[#allocation5 + $0xbf0] sm:$0xff] }
 0x7b6   :  { %2721 = vmatprep.subr.bf16.mxu0 %v2057_v35  ;;  %v2203_v35 = vld [vmem:[#allocation5 + $0xc28] sm:$0xff] }
 0x7b9   :  { %2722 = vmatpush1.bf16.msra.mxu0 %v2056_v21  ;;  %v2211_v21 = vld [vmem:[#allocation5 + $0xc68] sm:$0xff] }
 0x7ba   :  { %2723 = vmatprep.subr.bf16.mxu0 %v2064_v2  ;;  %v2210_v2 = vld [vmem:[#allocation5 + $0xc60] sm:$0xff] }
 0x7bd   :  { %2724 = vmatpush1.bf16.msra.mxu0 %v2063_v38  ;;  %v2218_v38 = vld [vmem:[#allocation5 + $0xca0] sm:$0xff] }
 0x7be   :  { %2725 = vmatprep.subr.bf16.mxu0 %v2071_v12 }
 0x7c1   :  { %2726 = vmatpush1.bf16.msra.mxu0 %v2070_v13 }
 0x7c2   :  { %2727 = vmatprep.subr.bf16.mxu0 %v2078_v8 }
 0x7c5   :  { %2728 = vmatpush1.bf16.msra.mxu0 %v2077_v15  ;;  %v2217_v15 = vld [vmem:[#allocation5 + $0xc98] sm:$0xff] }
 0x7c6   :  { %2729 = vmatprep.subr.bf16.mxu0 %v2085_v42 }
 0x7c9   :  { %2730 = vmatpush1.bf16.msra.mxu0 %v2084_v22  ;;  %v2225_v22 = vld [vmem:[#allocation5 + $0xcd8] sm:$0xff] }
 0x7ca   :  { %2731 = vmatprep.subr.bf16.mxu0 %v2092_v43  ;;  %v2224_v43 = vld [vmem:[#allocation5 + $0xcd0] sm:$0xff] }
 0x7cd   :  { %2732 = vmatpush1.bf16.msra.mxu0 %v2091_v37  ;;  %v2232_v37 = vld [vmem:[#allocation5 + $0xd10] sm:$0xff] }
 0x7ce   :  { %2733 = vmatprep.subr.bf16.mxu0 %v2099_v23  ;;  %v2231_v23 = vld [vmem:[#allocation5 + $0xd08] sm:$0xff] }
 0x7d1   :  { %2734 = vmatpush1.bf16.msra.mxu0 %v2098_v41  ;;  %v2239_v41 = vld [vmem:[#allocation5 + $0xd48] sm:$0xff] }
 0x7d2   :  { %2735 = vmatprep.subr.bf16.mxu0 %v2106_v52  ;;  %v2238_v52 = vld [vmem:[#allocation5 + $0xd40] sm:$0xff] }
 0x7d5   :  { %2736 = vmatpush1.bf16.msra.mxu0 %v2105_v50  ;;  %v2246_v50 = vld [vmem:[#allocation5 + $0xd80] sm:$0xff] }
 0x7d6   :  { %2737 = vmatprep.subr.bf16.mxu0 %v2113_v55  ;;  %v2245_v55 = vld [vmem:[#allocation5 + $0xd78] sm:$0xff] }
 0x7d9   :  { %2738 = vmatpush1.bf16.msra.mxu0 %v2112_v57  ;;  %v2253_v57 = vld [vmem:[#allocation5 + $0xdb8] sm:$0xff] }
 0x7da   :  { %2739 = vmatprep.subr.bf16.mxu0 %v2120_v58 }
 0x7dd   :  { %2740 = vmatpush1.bf16.msra.mxu0 %v2119_v56 }
 0x7de   :  { %2741 = vmatprep.subr.bf16.mxu0 %v2127_v48 }
 0x7e1   :  { %2742 = vmatpush1.bf16.msra.mxu0 %v2126_v18 }
 0x7e2   :  { %2743 = vmatprep.subr.bf16.mxu0 %v2134_v1  ;;  %v2252_v1 = vld [vmem:[#allocation5 + $0xdb0] sm:$0xff] }
 0x7e5   :  { %2744 = vmatpush1.bf16.msra.mxu0 %v2133_v32 }
 0x7e6   :  { %2745 = vmatprep.subr.bf16.mxu0 %v2141_v39  ;;  %v2260_v39 = vld [vmem:[#allocation5 + $0xdf0] sm:$0xff] }
 0x7e9   :  { %2746 = vmatpush1.bf16.msra.mxu0 %v2140_v63  ;;  %v2259_v63 = vld [vmem:[#allocation5 + $0xde8] sm:$0xff] }
 0x7ea   :  { %2747 = vmatprep.subr.bf16.mxu0 %v2148_v40  ;;  %v2299_v40 = vrot.slane %v3800_v30, %v3690_v33 }
 0x7ed   :  { %2748 = vmatpush1.bf16.msra.mxu0 %v2147_v14 }
 0x7ee   :  { %2758 = vmatprep.subr.bf16.mxu0 %v2155_v46 }
 0x7f0   :  { %2750 = vmatmul.mubr.bf16.vlgmr.msra.gmra.mrb[16].mxu0 %v3769_v45  ;;  %v2190_v45 = vld [vmem:[#allocation5 + $0xbc0] sm:$0xff] }
 0x7f1   :  { %2759 = vmatpush1.bf16.msra.mxu0 %v2154_v49  ;;  %2790 = vmatprep.mubr.bf16.mxu0 %v3773_v54  ;;  %v2275_v54 = vrot.slane %v3800_v30, %v3494_v25 }
 0x7f2   :  { %2760 = vmatprep.subr.bf16.mxu0 %v2162_v51 }
 0x7f5   :  { %2761 = vmatpush1.bf16.msra.mxu0 %v2161_v60 }
 0x7f6   :  { %2762 = vmatprep.subr.bf16.mxu0 %v2169_v53 }
 0x7f9   :  { %2763 = vmatpush1.bf16.msra.mxu0 %v2168_v62 }
 0x7fa   :  { %2764 = vmatprep.subr.bf16.mxu0 %v2176_v47 }
 0x7fd   :  { %2765 = vmatpush1.bf16.msra.mxu0 %v2175_v3 }
 0x7fe   :  { %2766 = vmatprep.subr.bf16.mxu0 %v2183_v16 }
 0x801   :  { %2767 = vmatpush1.bf16.msra.mxu0 %v2182_v17 }
 0x802   :  { %2768 = vmatprep.subr.bf16.mxu0 %v2190_v45 }
 0x803   :  { %v2464_v0 = vpop.f32.mrb[12].mxu0  ;;  %v2628_v6 = vpop.f32.mrb[20].mxu1 }
 0x804   :  { %v3144_v19 = vadd.f32 %v2464_v0, %v2275_v54  ;;  %v3146_v9 = vadd.f32 %v2628_v6, %v2283_v4  ;;  %v2466_v10 = vpop.f32.mrb[13].mxu0  ;;  %v2630_v59 = vpop.f32.mrb[21].mxu1  ;;  %v2291_v6 = vrot.slane %v3800_v30, %v3684_v27 }
 0x805   :  { %v3145_v25 = vadd.f32 %v2466_v10, %v2279_v5  ;;  %v3147_v11 = vadd.f32 %v2630_v59, %v2287_v20  ;;  %v2468_v34 = vpop.f32.mrb[14].mxu0  ;;  %v2632_v28 = vpop.f32.mrb[22].mxu1  ;;  %2769 = vmatpush1.bf16.msra.mxu0 %v2189_v36 }
 0x806   :  { %3267 = vtanh.f32 %v3144_v19  ;;  %v2469_v61 = vpop.f32.mrb[15].mxu0  ;;  %v2633_v26 = vpop.f32.mrb[23].mxu1  ;;  %2770 = vmatprep.subr.bf16.mxu0 %v2197_v7  ;;  %v2295_v7 = vrot.slane %v3800_v30, %v3687_v31 }
 0x807   :  { %3269 = vtanh.f32 %v3146_v9 }
 0x808   :  { %3271 = vtanh.f32 %v3145_v25 }
 0x809   :  { %3273 = vtanh.f32 %v3147_v11  ;;  %2771 = vmatpush1.bf16.msra.mxu0 %v2196_v24 }
 0x80a   :  { %2772 = vmatprep.subr.bf16.mxu0 %v2204_v29 }
 0x80d   :  { %2773 = vmatpush1.bf16.msra.mxu0 %v2203_v35 }
 0x80e   :  { %2774 = vmatprep.subr.bf16.mxu0 %v2211_v21 }
 0x810   :  { %v3268_v12 = vpop.eup %3267 }
 0x811   :  { %v3270_v13 = vpop.eup %3269  ;;  %2966 = vst [vmem:[%s3845_s7] sm:$0xff] %v3268_v12  ;;  %2775 = vmatpush1.bf16.msra.mxu0 %v2210_v2 }
 0x812   :  { %v3272_v8 = vpop.eup %3271  ;;  %2968 = vst [vmem:[%s3845_s7 + $0x10] sm:$0xff] %v3270_v13  ;;  %2776 = vmatprep.subr.bf16.mxu0 %v2218_v38 }
 0x813   :  { %v3274_v42 = vpop.eup %3273  ;;  %2967 = vst [vmem:[%s3845_s7 + $0x8] sm:$0xff] %v3272_v8 }
 0x814   :  { %2969 = vst [vmem:[%s3845_s7 + $0x18] sm:$0xff] %v3274_v42 }
 0x815   :  { %2777 = vmatpush1.bf16.msra.mxu0 %v2217_v15 }
 0x816   :  { %2778 = vmatprep.subr.bf16.mxu0 %v2225_v22 }
 0x819   :  { %2779 = vmatpush1.bf16.msra.mxu0 %v2224_v43 }
 0x81a   :  { %2780 = vmatprep.subr.bf16.mxu0 %v2232_v37 }
 0x81d   :  { %2781 = vmatpush1.bf16.msra.mxu0 %v2231_v23 }
 0x81e   :  { %2782 = vmatprep.subr.bf16.mxu0 %v2239_v41 }
 0x821   :  { %2783 = vmatpush1.bf16.msra.mxu0 %v2238_v52 }
 0x822   :  { %2784 = vmatprep.subr.bf16.mxu0 %v2246_v50 }
 0x823   :  { %v3052_v58 = vpop.f32.mrb[24].mxu1 }
 0x824   :  { %v3053_v56 = vpop.f32.mrb[25].mxu1 }
 0x825   :  { %2785 = vmatpush1.bf16.msra.mxu0 %v2245_v55  ;;  %v3054_v48 = vadd.f32 %v3053_v56, %v3052_v58  ;;  %v3055_v18 = vpop.f32.mrb[26].mxu1 }
 0x826   :  { %2786 = vmatprep.subr.bf16.mxu0 %v2253_v57  ;;  %v3056_v32 = vpop.f32.mrb[27].mxu1 }
 0x827   :  { %v2834_v14 = vadd.f32 %v3054_v48, %v2299_v40 }
 0x829   :  { %2787 = vmatpush1.bf16.msra.mxu0 %v2252_v1 }
 0x82a   :  { %2788 = vmatprep.subr.bf16.mxu0 %v2260_v39 }
 0x82d   :  { %2789 = vmatpush1.bf16.msra.mxu0 %v2259_v63 }
 0x830   :  { %2791 = vmatmul.mubr.bf16.vlgmr.msra.gmra.mrb[16].mxu0 %v3781_v44 }
 0x843   :  { %v3074_v46 = vpop.f32.mrb[28].mxu1 }
 0x844   :  { %v3075_v49 = vpop.f32.mrb[29].mxu1 }
 0x845   :  { %v3076_v51 = vadd.f32 %v3075_v49, %v3074_v46  ;;  %v3077_v60 = vpop.f32.mrb[30].mxu1 }
 0x846   :  { %v3078_v53 = vpop.f32.mrb[31].mxu1 }
 0x847   :  { %v2874_v62 = vadd.f32 %v3076_v51, %v2834_v14 }
 0x863   :  { %v3096_v47 = vpop.f32.mrb[32].mxu1 }
 0x864   :  { %v3097_v3 = vpop.f32.mrb[33].mxu1 }
 0x865   :  { %v3098_v16 = vadd.f32 %v3097_v3, %v3096_v47  ;;  %v3099_v17 = vpop.f32.mrb[34].mxu1 }
 0x866   :  { %v3100_v45 = vpop.f32.mrb[35].mxu1 }
 0x867   :  { %v2914_v54 = vadd.f32 %v3098_v16, %v2874_v62 }
 0x883   :  { %v3118_v4 = vpop.f32.mrb[36].mxu1 }
 0x884   :  { %v3119_v5 = vpop.f32.mrb[37].mxu1 }
 0x885   :  { %v3120_v20 = vadd.f32 %v3119_v5, %v3118_v4  ;;  %v3121_v44 = vpop.f32.mrb[38].mxu1 }
 0x886   :  { %v3122_v36 = vpop.f32.mrb[39].mxu1 }
 0x887   :  { %v2954_v0 = vadd.f32 %v3120_v20, %v2914_v54 }
 0x889   :  { %3275 = vtanh.f32 %v2954_v0 }
 0x893   :  { %v3276_v33 = vpop.eup %3275 }
 0x894   :  { %2972 = vst [vmem:[%s3845_s7 + $0x30] sm:$0xff] %v3276_v33 }
 0x903   :  { %v2792_v19 = vpop.f32.mrb[16].mxu0 }
 0x904   :  { %v3148_v9 = vadd.f32 %v2792_v19, %v2291_v6  ;;  %v2794_v10 = vpop.f32.mrb[17].mxu0 }
 0x905   :  { %v3149_v59 = vadd.f32 %v2794_v10, %v2295_v7  ;;  %v2796_v25 = vpop.f32.mrb[18].mxu0 }
 0x906   :  { %3277 = vtanh.f32 %v3148_v9  ;;  %v2797_v11 = vpop.f32.mrb[19].mxu0 }
 0x907   :  { %3279 = vtanh.f32 %v3149_v59 }
 0x910   :  { %v3278_v34 = vpop.eup %3277 }
 0x911   :  { %v3280_v28 = vpop.eup %3279  ;;  %2970 = vst [vmem:[%s3845_s7 + $0x20] sm:$0xff] %v3278_v34 }
 0x912   :  { %2971 = vst [vmem:[%s3845_s7 + $0x28] sm:$0xff] %v3280_v28 }
 0x913   :  { %2977 = vsyncpa [#allocation8], 1 }
 0x914   :  { %2978 = vsyncpa [#allocation10], 1 }
 0x915   :  { %2979 = vsyncmov [#allocation6] }
 0x918   :  { %s2980_s1 = vpop.sfrf %2979 }
 0x919   :  { %p3023_p2 = scmp.ne.s32.totalorder %s2980_s1, 0 }
 0x91b   :  { %2984 = shalt.err (%p3023_p2)  }
 0x91c   :  { %2986 = vsyncmov [#allocation6 + $0x1] }
 0x91f   :  { %s2987_s4 = vpop.sfrf %2986 }
 0x920   :  { %p3024_p3 = scmp.ne.s32.totalorder %s2987_s4, 0 }
 0x922   :  { %2991 = shalt.err (%p3024_p3)  }
 0x923   :  { %2993 = vsyncmov [#allocation6 + $0x2] }
 0x926   :  { %s2994_s25 = vpop.sfrf %2993 }
 0x927   :  { %p3025_p4 = scmp.ne.s32.totalorder %s2994_s25, 0 }
 0x929   :  { %2998 = shalt.err (%p3025_p4)  }
 0x92a   :  { %3000 = vsyncmov [#allocation6 + $0x3] }
 0x92d   :  { %s3001_s26 = vpop.sfrf %3000 }
 0x92e   :  { %p3026_p5 = scmp.ne.s32.totalorder %s3001_s26, 0 }
 0x930   :  { %3005 = shalt.err (%p3026_p5)  }

</bundles_post_ra>
